<compile_context>
chip_gen: v5e
topology: v5e:2x2
jax: 0.10.0
libtpu: 0.0.40
codegen_flags: <defaults>
</compile_context>

<pallas_src>
from functools import partial
from typing import NamedTuple

import jax
import jax.numpy as jnp
from jax import lax
from jax.experimental import pallas as pl
from jax.experimental.pallas import tpu as pltpu

_K_PAD = 128  # lane-dense running top-k width; wrapper slices back to num_samples


def _round_up(x: int, m: int) -> int:
    return ((x + m - 1) // m) * m


def _sortable16(x_f32):
    """Monotone int32 code in [0, 65535] of a bf16-representable f32 value."""
    bits = pltpu.bitcast(x_f32, jnp.int32)
    u16 = (bits >> 16) & 0xFFFF
    return jnp.where(bits < 0, 65535 - u16, u16 + 32768)


def _decode16(enc):
    """Inverse of _sortable16: int32 code in [0, 65535] -> f32 value."""
    u16 = jnp.where(enc >= 32768, enc - 32768, 65535 - enc)
    return pltpu.bitcast(u16 << 16, jnp.float32)


def _retrieval_kernel(q_ref, db_ref, val_ref, idx_ref, qn_ref, *,
                      num_samples: int, n_valid: int, n_tile: int,
                      mask_tail: bool):
    """One (batch block, DB tile) grid step of the streaming retrieval top-k.

    q_ref  : (B_TILE, Dp)   raw image embeddings (f32, zero padded)
    db_ref : (Dp, N_TILE)   pre-transposed bf16 database tile
    val_ref: (B_TILE, 128)  running top-k scores (f32 holding bf16 values)
    idx_ref: (B_TILE, 128)  running top-k global indices (i32)
    qn_ref : (B_TILE, Dp)   VMEM scratch: normalized bf16 queries
    """
    n_i = pl.program_id(1)
    neg_inf = jnp.float32(-jnp.inf)

    # --- Once per batch block (first DB tile): init accumulator, normalize q.
    @pl.when(n_i == 0)
    def _init():
        val_ref[...] = jnp.full_like(val_ref, neg_inf)
        idx_ref[...] = jnp.zeros_like(idx_ref)
        q = q_ref[...].astype(jnp.float32)
        inv_norm = lax.rsqrt(jnp.maximum(
            jnp.sum(q * q, axis=-1, keepdims=True), jnp.float32(1e-12)))
        qn_ref[...] = (q * inv_norm).astype(qn_ref.dtype)

    # --- Similarity of this tile on the MXU: (B, Dp) x (Dp, N_TILE) -> f32.
    scores = jnp.dot(qn_ref[...], db_ref[...],
                     preferred_element_type=jnp.float32)

    base = n_i * n_tile
    if mask_tail:
        # Padded DB rows are zero vectors (score 0.0) and must not enter the
        # top-k; mask them before the early-exit row-max.
        col_m = lax.broadcasted_iota(jnp.int32, scores.shape, 1)
        scores = jnp.where(col_m + base < n_valid, scores, neg_inf)

    # --- Threshold early-exit: skip the merge unless some row improves.
    kth = val_ref[:, num_samples - 1:num_samples]          # (B, 1)
    tile_max = jnp.max(scores, axis=-1, keepdims=True)     # (B, 1)
    any_better = jnp.max(jnp.where(tile_max > kth, 1.0, 0.0)) > 0.0

    @pl.when(any_better)
    def _merge():
        b = scores.shape[0]
        n_cand = _K_PAD + n_tile
        # Packed keys: bf16 score code in the high 16 bits, reversed slot in
        # the low 16, so an int32 max tie-breaks toward smaller slots (running
        # entries first, then earlier DB columns) — matching top_k tie-break.
        lane128 = lax.broadcasted_iota(jnp.int32, (b, _K_PAD), 1)
        run_key = ((_sortable16(val_ref[...]) - 32768) * 65536
                   + (n_cand - 1 - lane128))
        col = lax.broadcasted_iota(jnp.int32, scores.shape, 1)
        s_r = scores.astype(jnp.bfloat16).astype(jnp.float32)
        tile_key = ((_sortable16(s_r) - 32768) * 65536
                    + (n_tile - 1 - col))
        cand_key = jnp.concatenate([run_key, tile_key], axis=-1)   # (B, C)

        idx_run = idx_ref[...]                                     # (B, 128)
        new_enc = jnp.full((b, _K_PAD), 127, jnp.int32)            # 127 == enc(-inf)
        new_idx = jnp.zeros((b, _K_PAD), jnp.int32)
        consumed = jnp.iinfo(jnp.int32).min

        for k in range(num_samples):
            m_key = jnp.max(cand_key, axis=-1, keepdims=True)      # ONE wide max
            rev = m_key & 0xFFFF
            slot = (n_cand - 1) - rev
            enc = (m_key >> 16) + 32768
            # Global index: running entries via a 128-lane one-hot gather,
            # tile entries directly from base + column.
            gi_run = jnp.max(jnp.where(lane128 == slot, idx_run, -1),
                             axis=-1, keepdims=True)
            gi = jnp.where(slot < _K_PAD, gi_run, base + (slot - _K_PAD))
            sel = lane128 == k
            new_enc = jnp.where(sel, enc, new_enc)
            new_idx = jnp.where(sel, gi, new_idx)
            cand_key = jnp.where(cand_key == m_key, consumed, cand_key)

        val_ref[...] = _decode16(new_enc)
        idx_ref[...] = new_idx


class PreparedDatabase(NamedTuple):
    """Padded / bf16 / transposed retrieval database, built once and reused."""
    db_t: jax.Array       # (Dp, Np) bf16, zero padded, transposed
    num_entries: int      # N valid rows
    n_tile: int           # DB tile width the kernel streams


def prepare_retrieval_database(db_embeds: jax.Array, *,
                               n_tile: int = 2048) -> PreparedDatabase:
    """One-time database prep (pad to tiles, cast to bf16, transpose to (D, N)).

    Doing this at vocabulary-construction time keeps the per-query path free of
    a full read+write (and transpose) of the database.
    """
    N, D = db_embeds.shape
    Dp = _round_up(D, 128)
    n_tile = min(n_tile, 65536 - _K_PAD)          # slot fits the low 16 key bits
    n_tile = _round_up(max(8, min(n_tile, N)), 128)
    assert _K_PAD + n_tile <= 65536
    Np = _round_up(N, n_tile)
    db_t = jnp.zeros((Dp, Np), jnp.bfloat16).at[:D, :N].set(
        db_embeds.T.astype(jnp.bfloat16))
    # TODO(synk): int8 (v5e/v6e) or fp8 (v7x) DB quantization would halve the
    # HBM stream again but perturbs near-tie orderings; not applied here.
    return PreparedDatabase(db_t, int(N), int(n_tile))


def retrieval_vocabulary_query(images_z: jax.Array,
                               database,
                               num_samples: int = 10,
                               *,
                               b_tile: int = 128):
    """Pallas-backed numeric core of RetrievalVocabulary.forward.

    images_z : (B, D) image embeddings (any float dtype).
    database : PreparedDatabase (preferred, prepared once) or raw (N, D) array.
    Returns  : (scores (B, K) f32 (bf16-rounded), indices (B, K) i32).

    Note: on v6e/v7x with large batches, b_tile=256 fills the 256-wide MXU;
    128 is right for v5e and small batches.
    """
    if not isinstance(database, PreparedDatabase):
        database = prepare_retrieval_database(database)
    db_t, N, n_tile = database
    Dp, Np = db_t.shape
    B, D = images_z.shape
    assert D <= Dp
    assert 1 <= num_samples <= min(N, _K_PAD)

    b_tile = min(_round_up(b_tile, 8), _round_up(B, 8))
    Bp = _round_up(B, b_tile)
    q = jnp.zeros((Bp, Dp), jnp.float32).at[:B, :D].set(
        images_z.astype(jnp.float32))

    grid = (Bp // b_tile, Np // n_tile)

    # Explicit VMEM budget: db double buffer + q block + resident outputs +
    # qn scratch + headroom for the merge's candidate/score temporaries.
    vmem_bytes = (2 * Dp * n_tile * 2              # db bf16 double buffer
                  + 2 * b_tile * Dp * 4            # q f32 double buffer
                  + b_tile * Dp * 2                # qn scratch
                  + 2 * 2 * b_tile * _K_PAD * 4    # val/idx output buffers
                  + 8 * b_tile * (n_tile + _K_PAD) * 4)   # merge temporaries
    vmem_limit = max(32 * 1024 * 1024,
                     min(int(vmem_bytes) + (4 << 20), 64 * 1024 * 1024))

    kernel = partial(_retrieval_kernel, num_samples=num_samples,
                     n_valid=N, n_tile=n_tile, mask_tail=(Np != N))
    vals, idxs = pl.pallas_call(
        kernel,
        out_shape=(
            jax.ShapeDtypeStruct((Bp, _K_PAD), jnp.float32),
            jax.ShapeDtypeStruct((Bp, _K_PAD), jnp.int32),
        ),
        grid=grid,
        in_specs=[
            pl.BlockSpec((b_tile, Dp), lambda b, n: (b, 0)),
            pl.BlockSpec((Dp, n_tile), lambda b, n: (0, n)),
        ],
        out_specs=(
            pl.BlockSpec((b_tile, _K_PAD), lambda b, n: (b, 0)),
            pl.BlockSpec((b_tile, _K_PAD), lambda b, n: (b, 0)),
        ),
        scratch_shapes=[pltpu.VMEM((b_tile, Dp), jnp.bfloat16)],
        compiler_params=pltpu.CompilerParams(
            dimension_semantics=("parallel", "arbitrary"),
            vmem_limit_bytes=vmem_limit,
        ),
    )(q, db_t)
    # TODO(synk): on v7x (2 TensorCores) with a single batch block, the N axis
    # could be split across cores into two partial top-k's merged in the
    # wrapper for ~2x; kept single-stream here for portability.
    return vals[:B, :num_samples], idxs[:B, :num_samples]


if __name__ == "__main__":
    # Deterministic synthetic setup (no checkpoint / JSON / downloads — the
    # retrieval database is built in-script).  N spans three DB tiles with a
    # ragged tail so the streaming merge, early-exit and tail masking all run.
    B, D, K = 2, 32, 8          # batch, embedding dim, num_samples
    N = 5000                    # database entries (Np = 6144 at n_tile = 2048)

    key = jax.random.PRNGKey(0)
    k_img, k_db = jax.random.split(key)
    images_z = jax.random.normal(k_img, (B, D), dtype=jnp.float32)
    db_embeds = jax.random.normal(k_db, (N, D), dtype=jnp.float32)
    db_embeds = db_embeds / jnp.linalg.norm(db_embeds, axis=-1, keepdims=True)

    # Synthetic caption table standing in for RetrievalDatabase's caption store.
    # TODO(synk): the real RetrievalDatabase / caption text has no Pallas
    # equivalent; a synthetic caption list is used for the string glue.
    captions = [f"caption_{i:05d}" for i in range(N)]

    database = prepare_retrieval_database(db_embeds)        # one-time prep
    scores, indices = retrieval_vocabulary_query(images_z, database,
                                                 num_samples=K)
    scores = jax.block_until_ready(scores)
    indices = jax.block_until_ready(indices)

    # Pure-JAX reference at matching (bf16 inputs) precision.
    qn_ref = images_z / jnp.linalg.norm(images_z, axis=-1, keepdims=True)
    q_bf = qn_ref.astype(jnp.bfloat16).astype(jnp.float32)
    db_bf = db_embeds.astype(jnp.bfloat16).astype(jnp.float32)
    sim_ref = q_bf @ db_bf.T
    ref_vals, _ = lax.top_k(sim_ref, K)

    # Kernel scores are bf16-rounded sort keys; compare with matching slack.
    assert jnp.allclose(scores, ref_vals, atol=8e-3), "top-k score mismatch"
    gathered = jnp.take_along_axis(sim_ref, indices, axis=-1)
    assert jnp.allclose(gathered, scores, atol=5e-3), "index/score mismatch"
    assert bool(jnp.all(gathered >= ref_vals[:, -1:] - 8e-3)), \
        "selected entries are not among the top-k"
    assert bool(jnp.all(scores[:, :-1] >= scores[:, 1:])), "scores not sorted"
    assert bool(jnp.all((indices >= 0) & (indices < N))), "index out of range"
    idx_host = jax.device_get(indices)
    assert all(len({int(j) for j in row}) == K for row in idx_host), \
        "duplicate indices in a row"

    # Glue: indices -> caption strings (the module's list[list[str]] output).
    vocabularies = [[captions[int(j)] for j in row] for row in idx_host]
    assert len(vocabularies) == B and all(len(v) == K for v in vocabularies)

    print("KERNEL_OK")
</pallas_src>

<mosaic_0001>
module attributes {stable_mosaic.version = 11 : i64} {
  func.func @_retrieval_kernel(%arg0: i32, %arg1: i32, %arg2: memref<8x128xf32, #tpu.memory_space<vmem>>, %arg3: memref<128x2048xbf16, #tpu.memory_space<vmem>>, %arg4: memref<8x128xf32, #tpu.memory_space<vmem>>, %arg5: memref<8x128xi32, #tpu.memory_space<vmem>>, %arg6: memref<8x128xbf16, #tpu.memory_space<vmem>>) attributes {dimension_semantics = [#tpu.dimension_semantics<parallel>, #tpu.dimension_semantics<arbitrary>], iteration_bounds = array<i64: 1, 3>, scalar_prefetch = 0 : i64, scratch_operands = 1 : i64, tpu.core_type = #tpu.core_type<tc>, window_params = [{transform_indices = @transform_0, window_bounds = array<i64: 8, 128>}, {transform_indices = @transform_1, window_bounds = array<i64: 128, 2048>}, {transform_indices = @transform_2, window_bounds = array<i64: 8, 128>}, {transform_indices = @transform_3, window_bounds = array<i64: 8, 128>}]} {
    %c0_i32 = arith.constant 0 : i32
    %0 = arith.cmpi eq, %arg1, %c0_i32 : i32
    %1 = arith.extui %0 : i1 to i32
    %cst = arith.constant 0xFF800000 : f32
    %c0_i32_0 = arith.constant 0 : i32
    %2 = arith.cmpi ne, %1, %c0_i32_0 : i32
    scf.if %2 {
      %28 = vector.broadcast %cst : f32 to vector<8x128xf32>
      %c0_13 = arith.constant 0 : index
      %c0_14 = arith.constant 0 : index
      %29 = vector.load %arg4[%c0_13, %c0_14] : memref<8x128xf32, #tpu.memory_space<vmem>>, vector<8x128xf32>
      tpu.vector_store %arg4[%c0_13, %c0_14], %28 {strides = array<i32>} : memref<8x128xf32, #tpu.memory_space<vmem>>, vector<8x128xf32>,
      %c0_i32_15 = arith.constant 0 : i32
      %30 = vector.broadcast %c0_i32_15 : i32 to vector<8x128xi32>
      %c0_16 = arith.constant 0 : index
      %c0_17 = arith.constant 0 : index
      %31 = vector.load %arg5[%c0_16, %c0_17] : memref<8x128xi32, #tpu.memory_space<vmem>>, vector<8x128xi32>
      tpu.vector_store %arg5[%c0_16, %c0_17], %30 {strides = array<i32>} : memref<8x128xi32, #tpu.memory_space<vmem>>, vector<8x128xi32>,
      %c0_18 = arith.constant 0 : index
      %c0_19 = arith.constant 0 : index
      %32 = vector.load %arg2[%c0_18, %c0_19] : memref<8x128xf32, #tpu.memory_space<vmem>>, vector<8x128xf32>
      %33 = arith.mulf %32, %32 : vector<8x128xf32>
      %cst_20 = arith.constant dense<0.000000e+00> : vector<8xf32>
      %34 = vector.multi_reduction <add>, %33, %cst_20 [1] : vector<8x128xf32> to vector<8xf32>
      %35 = vector.shape_cast %34 : vector<8xf32> to vector<8x1xf32>
      %cst_21 = arith.constant 9.99999996E-13 : f32
      %36 = vector.broadcast %cst_21 : f32 to vector<8x1xf32>
      %37 = arith.maximumf %35, %36 : vector<8x1xf32>
      %38 = math.rsqrt %37 : vector<8x1xf32>
      %39 = vector.broadcast %38 : vector<8x1xf32> to vector<8x128xf32>
      %40 = arith.mulf %32, %39 : vector<8x128xf32>
      %41 = arith.truncf %40 : vector<8x128xf32> to vector<8x128xbf16>
      %c0_22 = arith.constant 0 : index
      %c0_23 = arith.constant 0 : index
      %42 = vector.load %arg6[%c0_22, %c0_23] : memref<8x128xbf16, #tpu.memory_space<vmem>>, vector<8x128xbf16>
      tpu.vector_store %arg6[%c0_22, %c0_23], %41 {strides = array<i32>} : memref<8x128xbf16, #tpu.memory_space<vmem>>, vector<8x128xbf16>,
    } else {
    }
    %c0 = arith.constant 0 : index
    %c0_1 = arith.constant 0 : index
    %3 = vector.load %arg6[%c0, %c0_1] : memref<8x128xbf16, #tpu.memory_space<vmem>>, vector<8x128xbf16>
    %c0_2 = arith.constant 0 : index
    %c0_3 = arith.constant 0 : index
    %4 = vector.load %arg3[%c0_2, %c0_3] : memref<128x2048xbf16, #tpu.memory_space<vmem>>, vector<128x2048xbf16>
    %cst_4 = arith.constant dense<0.000000e+00> : vector<8x2048xf32>
    %5 = tpu.matmul %3, %4, %cst_4 {dimension_numbers = #tpu.dot_dimension_numbers<[1], [0], [0], [1], [0, 0, 1, 1], [], []>} : vector<8x128xbf16>, vector<128x2048xbf16>, vector<8x2048xf32> -> vector<8x2048xf32>
    %c2048_i32 = arith.constant 2048 : i32
    %6 = arith.muli %arg1, %c2048_i32 : i32
    %7 = tpu.iota {dimensions = array<i32: 1>} : vector<8x2048xi32>
    %8 = vector.broadcast %6 : i32 to vector<8x2048xi32>
    %9 = arith.addi %7, %8 : vector<8x2048xi32>
    %c5000_i32 = arith.constant 5000 : i32
    %10 = vector.broadcast %c5000_i32 : i32 to vector<8x2048xi32>
    %11 = arith.cmpi slt, %9, %10 : vector<8x2048xi32>
    %cst_5 = arith.constant 0xFF800000 : f32
    %12 = vector.broadcast %cst_5 : f32 to vector<8x2048xf32>
    %13 = arith.select %11, %5, %12 : vector<8x2048xi1>, vector<8x2048xf32>
    %c0_6 = arith.constant 0 : index
    %c7 = arith.constant 7 : index
    %14 = vector.load %arg4[%c0_6, %c7] : memref<8x128xf32, #tpu.memory_space<vmem>>, vector<8x1xf32>
    %cst_7 = arith.constant dense<0xFF800000> : vector<8xf32>
    %15 = vector.multi_reduction <maximumf>, %13, %cst_7 [1] : vector<8x2048xf32> to vector<8xf32>
    %16 = vector.shape_cast %15 : vector<8xf32> to vector<8x1xf32>
    %17 = arith.cmpf ogt, %16, %14 : vector<8x1xf32>
    %cst_8 = arith.constant 1.000000e+00 : f32
    %cst_9 = arith.constant 0.000000e+00 : f32
    %18 = vector.broadcast %cst_8 : f32 to vector<8x1xf32>
    %19 = vector.broadcast %cst_9 : f32 to vector<8x1xf32>
    %20 = arith.select %17, %18, %19 : vector<8x1xi1>, vector<8x1xf32>
    %21 = vector.shape_cast %20 : vector<8x1xf32> to vector<1x8x1xf32>
    %cst_10 = arith.constant dense<0xFF800000> : vector<1xf32>
    %22 = vector.multi_reduction <maximumf>, %21, %cst_10 [1, 2] : vector<1x8x1xf32> to vector<1xf32>
    %23 = vector.shape_cast %22 : vector<1xf32> to vector<1x1x1xf32>
    %24 = vector.extract %23[0, 0, 0] : f32 from vector<1x1x1xf32>
    %cst_11 = arith.constant 0.000000e+00 : f32
    %25 = arith.cmpf ogt, %24, %cst_11 : f32
    %26 = arith.extui %25 : i1 to i32
    %c0_i32_12 = arith.constant 0 : i32
    %27 = arith.cmpi ne, %26, %c0_i32_12 : i32
    scf.if %27 {
      %28 = tpu.iota {dimensions = array<i32: 1>} : vector<8x128xi32>
      %c0_13 = arith.constant 0 : index
      %c0_14 = arith.constant 0 : index
      %29 = vector.load %arg4[%c0_13, %c0_14] : memref<8x128xf32, #tpu.memory_space<vmem>>, vector<8x128xf32>
      %30 = tpu.bitcast %29 : vector<8x128xf32> -> vector<8x128xi32>
      %c16_i32 = arith.constant 16 : i32
      %31 = vector.broadcast %c16_i32 : i32 to vector<8x128xi32>
      %32 = arith.shrsi %30, %31 : vector<8x128xi32>
      %c65535_i32 = arith.constant 65535 : i32
      %33 = vector.broadcast %c65535_i32 : i32 to vector<8x128xi32>
      %34 = arith.andi %32, %33 : vector<8x128xi32>
      %c0_i32_15 = arith.constant 0 : i32
      %35 = vector.broadcast %c0_i32_15 : i32 to vector<8x128xi32>
      %36 = arith.cmpi slt, %30, %35 : vector<8x128xi32>
      %c65535_i32_16 = arith.constant 65535 : i32
      %37 = vector.broadcast %c65535_i32_16 : i32 to vector<8x128xi32>
      %38 = arith.subi %37, %34 : vector<8x128xi32>
      %c32768_i32 = arith.constant 32768 : i32
      %39 = vector.broadcast %c32768_i32 : i32 to vector<8x128xi32>
      %40 = arith.addi %34, %39 : vector<8x128xi32>
      %41 = arith.select %36, %38, %40 : vector<8x128xi1>, vector<8x128xi32>
      %c32768_i32_17 = arith.constant 32768 : i32
      %42 = vector.broadcast %c32768_i32_17 : i32 to vector<8x128xi32>
      %43 = arith.subi %41, %42 : vector<8x128xi32>
      %c65536_i32 = arith.constant 65536 : i32
      %44 = vector.broadcast %c65536_i32 : i32 to vector<8x128xi32>
      %45 = arith.muli %43, %44 : vector<8x128xi32>
      %c2175_i32 = arith.constant 2175 : i32
      %46 = vector.broadcast %c2175_i32 : i32 to vector<8x128xi32>
      %47 = arith.subi %46, %28 : vector<8x128xi32>
      %48 = arith.addi %45, %47 : vector<8x128xi32>
      %49 = tpu.iota {dimensions = array<i32: 1>} : vector<8x2048xi32>
      %50 = arith.truncf %13 : vector<8x2048xf32> to vector<8x2048xbf16>
      %51 = arith.extf %50 : vector<8x2048xbf16> to vector<8x2048xf32>
      %52 = tpu.bitcast %51 : vector<8x2048xf32> -> vector<8x2048xi32>
      %c16_i32_18 = arith.constant 16 : i32
      %53 = vector.broadcast %c16_i32_18 : i32 to vector<8x2048xi32>
      %54 = arith.shrsi %52, %53 : vector<8x2048xi32>
      %c65535_i32_19 = arith.constant 65535 : i32
      %55 = vector.broadcast %c65535_i32_19 : i32 to vector<8x2048xi32>
      %56 = arith.andi %54, %55 : vector<8x2048xi32>
      %c0_i32_20 = arith.constant 0 : i32
      %57 = vector.broadcast %c0_i32_20 : i32 to vector<8x2048xi32>
      %58 = arith.cmpi slt, %52, %57 : vector<8x2048xi32>
      %c65535_i32_21 = arith.constant 65535 : i32
      %59 = vector.broadcast %c65535_i32_21 : i32 to vector<8x2048xi32>
      %60 = arith.subi %59, %56 : vector<8x2048xi32>
      %c32768_i32_22 = arith.constant 32768 : i32
      %61 = vector.broadcast %c32768_i32_22 : i32 to vector<8x2048xi32>
      %62 = arith.addi %56, %61 : vector<8x2048xi32>
      %63 = arith.select %58, %60, %62 : vector<8x2048xi1>, vector<8x2048xi32>
      %c32768_i32_23 = arith.constant 32768 : i32
      %64 = vector.broadcast %c32768_i32_23 : i32 to vector<8x2048xi32>
      %65 = arith.subi %63, %64 : vector<8x2048xi32>
      %c65536_i32_24 = arith.constant 65536 : i32
      %66 = vector.broadcast %c65536_i32_24 : i32 to vector<8x2048xi32>
      %67 = arith.muli %65, %66 : vector<8x2048xi32>
      %c2047_i32 = arith.constant 2047 : i32
      %68 = vector.broadcast %c2047_i32 : i32 to vector<8x2048xi32>
      %69 = arith.subi %68, %49 : vector<8x2048xi32>
      %70 = arith.addi %67, %69 : vector<8x2048xi32>
      %71 = tpu.concatenate %48, %70 in 1 : vector<8x128xi32>, vector<8x2048xi32> -> vector<8x2176xi32>
      %c0_25 = arith.constant 0 : index
      %c0_26 = arith.constant 0 : index
      %72 = vector.load %arg5[%c0_25, %c0_26] : memref<8x128xi32, #tpu.memory_space<vmem>>, vector<8x128xi32>
      %c127_i32 = arith.constant 127 : i32
      %73 = vector.broadcast %c127_i32 : i32 to vector<8x128xi32>
      %c0_i32_27 = arith.constant 0 : i32
      %74 = vector.broadcast %c0_i32_27 : i32 to vector<8x128xi32>
      %cst_28 = arith.constant dense<-2147483648> : vector<8xi32>
      %75 = vector.multi_reduction <maxsi>, %71, %cst_28 [1] : vector<8x2176xi32> to vector<8xi32>
      %76 = vector.shape_cast %75 : vector<8xi32> to vector<8x1xi32>
      %c65535_i32_29 = arith.constant 65535 : i32
      %77 = vector.broadcast %c65535_i32_29 : i32 to vector<8x1xi32>
      %78 = arith.andi %76, %77 : vector<8x1xi32>
      %c2175_i32_30 = arith.constant 2175 : i32
      %79 = vector.broadcast %c2175_i32_30 : i32 to vector<8x1xi32>
      %80 = arith.subi %79, %78 : vector<8x1xi32>
      %c16_i32_31 = arith.constant 16 : i32
      %81 = vector.broadcast %c16_i32_31 : i32 to vector<8x1xi32>
      %82 = arith.shrsi %76, %81 : vector<8x1xi32>
      %c32768_i32_32 = arith.constant 32768 : i32
      %83 = vector.broadcast %c32768_i32_32 : i32 to vector<8x1xi32>
      %84 = arith.addi %82, %83 : vector<8x1xi32>
      %85 = vector.broadcast %80 : vector<8x1xi32> to vector<8x128xi32>
      %86 = arith.cmpi eq, %28, %85 : vector<8x128xi32>
      %c-1_i32 = arith.constant -1 : i32
      %87 = vector.broadcast %c-1_i32 : i32 to vector<8x128xi32>
      %88 = arith.select %86, %72, %87 : vector<8x128xi1>, vector<8x128xi32>
      %cst_33 = arith.constant dense<-2147483648> : vector<8xi32>
      %89 = vector.multi_reduction <maxsi>, %88, %cst_33 [1] : vector<8x128xi32> to vector<8xi32>
      %90 = vector.shape_cast %89 : vector<8xi32> to vector<8x1xi32>
      %c128_i32 = arith.constant 128 : i32
      %91 = vector.broadcast %c128_i32 : i32 to vector<8x1xi32>
      %92 = arith.cmpi slt, %80, %91 : vector<8x1xi32>
      %c128_i32_34 = arith.constant 128 : i32
      %93 = vector.broadcast %c128_i32_34 : i32 to vector<8x1xi32>
      %94 = arith.subi %80, %93 : vector<8x1xi32>
      %95 = vector.broadcast %6 : i32 to vector<8x1xi32>
      %96 = arith.addi %95, %94 : vector<8x1xi32>
      %97 = arith.select %92, %90, %96 : vector<8x1xi1>, vector<8x1xi32>
      %c0_i32_35 = arith.constant 0 : i32
      %98 = vector.broadcast %c0_i32_35 : i32 to vector<8x128xi32>
      %99 = arith.cmpi eq, %28, %98 : vector<8x128xi32>
      %100 = vector.shape_cast %84 : vector<8x1xi32> to vector<8x1xi32>
      %101 = vector.broadcast %100 : vector<8x1xi32> to vector<8x128xi32>
      %102 = arith.select %99, %101, %73 : vector<8x128xi1>, vector<8x128xi32>
      %103 = vector.shape_cast %97 : vector<8x1xi32> to vector<8x1xi32>
      %104 = vector.broadcast %103 : vector<8x1xi32> to vector<8x128xi32>
      %105 = arith.select %99, %104, %74 : vector<8x128xi1>, vector<8x128xi32>
      %106 = vector.broadcast %76 : vector<8x1xi32> to vector<8x2176xi32>
      %107 = arith.cmpi eq, %71, %106 : vector<8x2176xi32>
      %c-2147483648_i32 = arith.constant -2147483648 : i32
      %108 = vector.broadcast %c-2147483648_i32 : i32 to vector<8x2176xi32>
      %109 = arith.select %107, %108, %71 : vector<8x2176xi1>, vector<8x2176xi32>
      %cst_36 = arith.constant dense<-2147483648> : vector<8xi32>
      %110 = vector.multi_reduction <maxsi>, %109, %cst_36 [1] : vector<8x2176xi32> to vector<8xi32>
      %111 = vector.shape_cast %110 : vector<8xi32> to vector<8x1xi32>
      %c65535_i32_37 = arith.constant 65535 : i32
      %112 = vector.broadcast %c65535_i32_37 : i32 to vector<8x1xi32>
      %113 = arith.andi %111, %112 : vector<8x1xi32>
      %c2175_i32_38 = arith.constant 2175 : i32
      %114 = vector.broadcast %c2175_i32_38 : i32 to vector<8x1xi32>
      %115 = arith.subi %114, %113 : vector<8x1xi32>
      %c16_i32_39 = arith.constant 16 : i32
      %116 = vector.broadcast %c16_i32_39 : i32 to vector<8x1xi32>
      %117 = arith.shrsi %111, %116 : vector<8x1xi32>
      %c32768_i32_40 = arith.constant 32768 : i32
      %118 = vector.broadcast %c32768_i32_40 : i32 to vector<8x1xi32>
      %119 = arith.addi %117, %118 : vector<8x1xi32>
      %120 = vector.broadcast %115 : vector<8x1xi32> to vector<8x128xi32>
      %121 = arith.cmpi eq, %28, %120 : vector<8x128xi32>
      %c-1_i32_41 = arith.constant -1 : i32
      %122 = vector.broadcast %c-1_i32_41 : i32 to vector<8x128xi32>
      %123 = arith.select %121, %72, %122 : vector<8x128xi1>, vector<8x128xi32>
      %cst_42 = arith.constant dense<-2147483648> : vector<8xi32>
      %124 = vector.multi_reduction <maxsi>, %123, %cst_42 [1] : vector<8x128xi32> to vector<8xi32>
      %125 = vector.shape_cast %124 : vector<8xi32> to vector<8x1xi32>
      %c128_i32_43 = arith.constant 128 : i32
      %126 = vector.broadcast %c128_i32_43 : i32 to vector<8x1xi32>
      %127 = arith.cmpi slt, %115, %126 : vector<8x1xi32>
      %c128_i32_44 = arith.constant 128 : i32
      %128 = vector.broadcast %c128_i32_44 : i32 to vector<8x1xi32>
      %129 = arith.subi %115, %128 : vector<8x1xi32>
      %130 = vector.broadcast %6 : i32 to vector<8x1xi32>
      %131 = arith.addi %130, %129 : vector<8x1xi32>
      %132 = arith.select %127, %125, %131 : vector<8x1xi1>, vector<8x1xi32>
      %c1_i32 = arith.constant 1 : i32
      %133 = vector.broadcast %c1_i32 : i32 to vector<8x128xi32>
      %134 = arith.cmpi eq, %28, %133 : vector<8x128xi32>
      %135 = vector.shape_cast %119 : vector<8x1xi32> to vector<8x1xi32>
      %136 = vector.broadcast %135 : vector<8x1xi32> to vector<8x128xi32>
      %137 = arith.select %134, %136, %102 : vector<8x128xi1>, vector<8x128xi32>
      %138 = vector.shape_cast %132 : vector<8x1xi32> to vector<8x1xi32>
      %139 = vector.broadcast %138 : vector<8x1xi32> to vector<8x128xi32>
      %140 = arith.select %134, %139, %105 : vector<8x128xi1>, vector<8x128xi32>
      %141 = vector.broadcast %111 : vector<8x1xi32> to vector<8x2176xi32>
      %142 = arith.cmpi eq, %109, %141 : vector<8x2176xi32>
      %c-2147483648_i32_45 = arith.constant -2147483648 : i32
      %143 = vector.broadcast %c-2147483648_i32_45 : i32 to vector<8x2176xi32>
      %144 = arith.select %142, %143, %109 : vector<8x2176xi1>, vector<8x2176xi32>
      %cst_46 = arith.constant dense<-2147483648> : vector<8xi32>
      %145 = vector.multi_reduction <maxsi>, %144, %cst_46 [1] : vector<8x2176xi32> to vector<8xi32>
      %146 = vector.shape_cast %145 : vector<8xi32> to vector<8x1xi32>
      %c65535_i32_47 = arith.constant 65535 : i32
      %147 = vector.broadcast %c65535_i32_47 : i32 to vector<8x1xi32>
      %148 = arith.andi %146, %147 : vector<8x1xi32>
      %c2175_i32_48 = arith.constant 2175 : i32
      %149 = vector.broadcast %c2175_i32_48 : i32 to vector<8x1xi32>
      %150 = arith.subi %149, %148 : vector<8x1xi32>
      %c16_i32_49 = arith.constant 16 : i32
      %151 = vector.broadcast %c16_i32_49 : i32 to vector<8x1xi32>
      %152 = arith.shrsi %146, %151 : vector<8x1xi32>
      %c32768_i32_50 = arith.constant 32768 : i32
      %153 = vector.broadcast %c32768_i32_50 : i32 to vector<8x1xi32>
      %154 = arith.addi %152, %153 : vector<8x1xi32>
      %155 = vector.broadcast %150 : vector<8x1xi32> to vector<8x128xi32>
      %156 = arith.cmpi eq, %28, %155 : vector<8x128xi32>
      %c-1_i32_51 = arith.constant -1 : i32
      %157 = vector.broadcast %c-1_i32_51 : i32 to vector<8x128xi32>
      %158 = arith.select %156, %72, %157 : vector<8x128xi1>, vector<8x128xi32>
      %cst_52 = arith.constant dense<-2147483648> : vector<8xi32>
      %159 = vector.multi_reduction <maxsi>, %158, %cst_52 [1] : vector<8x128xi32> to vector<8xi32>
      %160 = vector.shape_cast %159 : vector<8xi32> to vector<8x1xi32>
      %c128_i32_53 = arith.constant 128 : i32
      %161 = vector.broadcast %c128_i32_53 : i32 to vector<8x1xi32>
      %162 = arith.cmpi slt, %150, %161 : vector<8x1xi32>
      %c128_i32_54 = arith.constant 128 : i32
      %163 = vector.broadcast %c128_i32_54 : i32 to vector<8x1xi32>
      %164 = arith.subi %150, %163 : vector<8x1xi32>
      %165 = vector.broadcast %6 : i32 to vector<8x1xi32>
      %166 = arith.addi %165, %164 : vector<8x1xi32>
      %167 = arith.select %162, %160, %166 : vector<8x1xi1>, vector<8x1xi32>
      %c2_i32 = arith.constant 2 : i32
      %168 = vector.broadcast %c2_i32 : i32 to vector<8x128xi32>
      %169 = arith.cmpi eq, %28, %168 : vector<8x128xi32>
      %170 = vector.shape_cast %154 : vector<8x1xi32> to vector<8x1xi32>
      %171 = vector.broadcast %170 : vector<8x1xi32> to vector<8x128xi32>
      %172 = arith.select %169, %171, %137 : vector<8x128xi1>, vector<8x128xi32>
      %173 = vector.shape_cast %167 : vector<8x1xi32> to vector<8x1xi32>
      %174 = vector.broadcast %173 : vector<8x1xi32> to vector<8x128xi32>
      %175 = arith.select %169, %174, %140 : vector<8x128xi1>, vector<8x128xi32>
      %176 = vector.broadcast %146 : vector<8x1xi32> to vector<8x2176xi32>
      %177 = arith.cmpi eq, %144, %176 : vector<8x2176xi32>
      %c-2147483648_i32_55 = arith.constant -2147483648 : i32
      %178 = vector.broadcast %c-2147483648_i32_55 : i32 to vector<8x2176xi32>
      %179 = arith.select %177, %178, %144 : vector<8x2176xi1>, vector<8x2176xi32>
      %cst_56 = arith.constant dense<-2147483648> : vector<8xi32>
      %180 = vector.multi_reduction <maxsi>, %179, %cst_56 [1] : vector<8x2176xi32> to vector<8xi32>
      %181 = vector.shape_cast %180 : vector<8xi32> to vector<8x1xi32>
      %c65535_i32_57 = arith.constant 65535 : i32
      %182 = vector.broadcast %c65535_i32_57 : i32 to vector<8x1xi32>
      %183 = arith.andi %181, %182 : vector<8x1xi32>
      %c2175_i32_58 = arith.constant 2175 : i32
      %184 = vector.broadcast %c2175_i32_58 : i32 to vector<8x1xi32>
      %185 = arith.subi %184, %183 : vector<8x1xi32>
      %c16_i32_59 = arith.constant 16 : i32
      %186 = vector.broadcast %c16_i32_59 : i32 to vector<8x1xi32>
      %187 = arith.shrsi %181, %186 : vector<8x1xi32>
      %c32768_i32_60 = arith.constant 32768 : i32
      %188 = vector.broadcast %c32768_i32_60 : i32 to vector<8x1xi32>
      %189 = arith.addi %187, %188 : vector<8x1xi32>
      %190 = vector.broadcast %185 : vector<8x1xi32> to vector<8x128xi32>
      %191 = arith.cmpi eq, %28, %190 : vector<8x128xi32>
      %c-1_i32_61 = arith.constant -1 : i32
      %192 = vector.broadcast %c-1_i32_61 : i32 to vector<8x128xi32>
      %193 = arith.select %191, %72, %192 : vector<8x128xi1>, vector<8x128xi32>
      %cst_62 = arith.constant dense<-2147483648> : vector<8xi32>
      %194 = vector.multi_reduction <maxsi>, %193, %cst_62 [1] : vector<8x128xi32> to vector<8xi32>
      %195 = vector.shape_cast %194 : vector<8xi32> to vector<8x1xi32>
      %c128_i32_63 = arith.constant 128 : i32
      %196 = vector.broadcast %c128_i32_63 : i32 to vector<8x1xi32>
      %197 = arith.cmpi slt, %185, %196 : vector<8x1xi32>
      %c128_i32_64 = arith.constant 128 : i32
      %198 = vector.broadcast %c128_i32_64 : i32 to vector<8x1xi32>
      %199 = arith.subi %185, %198 : vector<8x1xi32>
      %200 = vector.broadcast %6 : i32 to vector<8x1xi32>
      %201 = arith.addi %200, %199 : vector<8x1xi32>
      %202 = arith.select %197, %195, %201 : vector<8x1xi1>, vector<8x1xi32>
      %c3_i32 = arith.constant 3 : i32
      %203 = vector.broadcast %c3_i32 : i32 to vector<8x128xi32>
      %204 = arith.cmpi eq, %28, %203 : vector<8x128xi32>
      %205 = vector.shape_cast %189 : vector<8x1xi32> to vector<8x1xi32>
      %206 = vector.broadcast %205 : vector<8x1xi32> to vector<8x128xi32>
      %207 = arith.select %204, %206, %172 : vector<8x128xi1>, vector<8x128xi32>
      %208 = vector.shape_cast %202 : vector<8x1xi32> to vector<8x1xi32>
      %209 = vector.broadcast %208 : vector<8x1xi32> to vector<8x128xi32>
      %210 = arith.select %204, %209, %175 : vector<8x128xi1>, vector<8x128xi32>
      %211 = vector.broadcast %181 : vector<8x1xi32> to vector<8x2176xi32>
      %212 = arith.cmpi eq, %179, %211 : vector<8x2176xi32>
      %c-2147483648_i32_65 = arith.constant -2147483648 : i32
      %213 = vector.broadcast %c-2147483648_i32_65 : i32 to vector<8x2176xi32>
      %214 = arith.select %212, %213, %179 : vector<8x2176xi1>, vector<8x2176xi32>
      %cst_66 = arith.constant dense<-2147483648> : vector<8xi32>
      %215 = vector.multi_reduction <maxsi>, %214, %cst_66 [1] : vector<8x2176xi32> to vector<8xi32>
      %216 = vector.shape_cast %215 : vector<8xi32> to vector<8x1xi32>
      %c65535_i32_67 = arith.constant 65535 : i32
      %217 = vector.broadcast %c65535_i32_67 : i32 to vector<8x1xi32>
      %218 = arith.andi %216, %217 : vector<8x1xi32>
      %c2175_i32_68 = arith.constant 2175 : i32
      %219 = vector.broadcast %c2175_i32_68 : i32 to vector<8x1xi32>
      %220 = arith.subi %219, %218 : vector<8x1xi32>
      %c16_i32_69 = arith.constant 16 : i32
      %221 = vector.broadcast %c16_i32_69 : i32 to vector<8x1xi32>
      %222 = arith.shrsi %216, %221 : vector<8x1xi32>
      %c32768_i32_70 = arith.constant 32768 : i32
      %223 = vector.broadcast %c32768_i32_70 : i32 to vector<8x1xi32>
      %224 = arith.addi %222, %223 : vector<8x1xi32>
      %225 = vector.broadcast %220 : vector<8x1xi32> to vector<8x128xi32>
      %226 = arith.cmpi eq, %28, %225 : vector<8x128xi32>
      %c-1_i32_71 = arith.constant -1 : i32
      %227 = vector.broadcast %c-1_i32_71 : i32 to vector<8x128xi32>
      %228 = arith.select %226, %72, %227 : vector<8x128xi1>, vector<8x128xi32>
      %cst_72 = arith.constant dense<-2147483648> : vector<8xi32>
      %229 = vector.multi_reduction <maxsi>, %228, %cst_72 [1] : vector<8x128xi32> to vector<8xi32>
      %230 = vector.shape_cast %229 : vector<8xi32> to vector<8x1xi32>
      %c128_i32_73 = arith.constant 128 : i32
      %231 = vector.broadcast %c128_i32_73 : i32 to vector<8x1xi32>
      %232 = arith.cmpi slt, %220, %231 : vector<8x1xi32>
      %c128_i32_74 = arith.constant 128 : i32
      %233 = vector.broadcast %c128_i32_74 : i32 to vector<8x1xi32>
      %234 = arith.subi %220, %233 : vector<8x1xi32>
      %235 = vector.broadcast %6 : i32 to vector<8x1xi32>
      %236 = arith.addi %235, %234 : vector<8x1xi32>
      %237 = arith.select %232, %230, %236 : vector<8x1xi1>, vector<8x1xi32>
      %c4_i32 = arith.constant 4 : i32
      %238 = vector.broadcast %c4_i32 : i32 to vector<8x128xi32>
      %239 = arith.cmpi eq, %28, %238 : vector<8x128xi32>
      %240 = vector.shape_cast %224 : vector<8x1xi32> to vector<8x1xi32>
      %241 = vector.broadcast %240 : vector<8x1xi32> to vector<8x128xi32>
      %242 = arith.select %239, %241, %207 : vector<8x128xi1>, vector<8x128xi32>
      %243 = vector.shape_cast %237 : vector<8x1xi32> to vector<8x1xi32>
      %244 = vector.broadcast %243 : vector<8x1xi32> to vector<8x128xi32>
      %245 = arith.select %239, %244, %210 : vector<8x128xi1>, vector<8x128xi32>
      %246 = vector.broadcast %216 : vector<8x1xi32> to vector<8x2176xi32>
      %247 = arith.cmpi eq, %214, %246 : vector<8x2176xi32>
      %c-2147483648_i32_75 = arith.constant -2147483648 : i32
      %248 = vector.broadcast %c-2147483648_i32_75 : i32 to vector<8x2176xi32>
      %249 = arith.select %247, %248, %214 : vector<8x2176xi1>, vector<8x2176xi32>
      %cst_76 = arith.constant dense<-2147483648> : vector<8xi32>
      %250 = vector.multi_reduction <maxsi>, %249, %cst_76 [1] : vector<8x2176xi32> to vector<8xi32>
      %251 = vector.shape_cast %250 : vector<8xi32> to vector<8x1xi32>
      %c65535_i32_77 = arith.constant 65535 : i32
      %252 = vector.broadcast %c65535_i32_77 : i32 to vector<8x1xi32>
      %253 = arith.andi %251, %252 : vector<8x1xi32>
      %c2175_i32_78 = arith.constant 2175 : i32
      %254 = vector.broadcast %c2175_i32_78 : i32 to vector<8x1xi32>
      %255 = arith.subi %254, %253 : vector<8x1xi32>
      %c16_i32_79 = arith.constant 16 : i32
      %256 = vector.broadcast %c16_i32_79 : i32 to vector<8x1xi32>
      %257 = arith.shrsi %251, %256 : vector<8x1xi32>
      %c32768_i32_80 = arith.constant 32768 : i32
      %258 = vector.broadcast %c32768_i32_80 : i32 to vector<8x1xi32>
      %259 = arith.addi %257, %258 : vector<8x1xi32>
      %260 = vector.broadcast %255 : vector<8x1xi32> to vector<8x128xi32>
      %261 = arith.cmpi eq, %28, %260 : vector<8x128xi32>
      %c-1_i32_81 = arith.constant -1 : i32
      %262 = vector.broadcast %c-1_i32_81 : i32 to vector<8x128xi32>
      %263 = arith.select %261, %72, %262 : vector<8x128xi1>, vector<8x128xi32>
      %cst_82 = arith.constant dense<-2147483648> : vector<8xi32>
      %264 = vector.multi_reduction <maxsi>, %263, %cst_82 [1] : vector<8x128xi32> to vector<8xi32>
      %265 = vector.shape_cast %264 : vector<8xi32> to vector<8x1xi32>
      %c128_i32_83 = arith.constant 128 : i32
      %266 = vector.broadcast %c128_i32_83 : i32 to vector<8x1xi32>
      %267 = arith.cmpi slt, %255, %266 : vector<8x1xi32>
      %c128_i32_84 = arith.constant 128 : i32
      %268 = vector.broadcast %c128_i32_84 : i32 to vector<8x1xi32>
      %269 = arith.subi %255, %268 : vector<8x1xi32>
      %270 = vector.broadcast %6 : i32 to vector<8x1xi32>
      %271 = arith.addi %270, %269 : vector<8x1xi32>
      %272 = arith.select %267, %265, %271 : vector<8x1xi1>, vector<8x1xi32>
      %c5_i32 = arith.constant 5 : i32
      %273 = vector.broadcast %c5_i32 : i32 to vector<8x128xi32>
      %274 = arith.cmpi eq, %28, %273 : vector<8x128xi32>
      %275 = vector.shape_cast %259 : vector<8x1xi32> to vector<8x1xi32>
      %276 = vector.broadcast %275 : vector<8x1xi32> to vector<8x128xi32>
      %277 = arith.select %274, %276, %242 : vector<8x128xi1>, vector<8x128xi32>
      %278 = vector.shape_cast %272 : vector<8x1xi32> to vector<8x1xi32>
      %279 = vector.broadcast %278 : vector<8x1xi32> to vector<8x128xi32>
      %280 = arith.select %274, %279, %245 : vector<8x128xi1>, vector<8x128xi32>
      %281 = vector.broadcast %251 : vector<8x1xi32> to vector<8x2176xi32>
      %282 = arith.cmpi eq, %249, %281 : vector<8x2176xi32>
      %c-2147483648_i32_85 = arith.constant -2147483648 : i32
      %283 = vector.broadcast %c-2147483648_i32_85 : i32 to vector<8x2176xi32>
      %284 = arith.select %282, %283, %249 : vector<8x2176xi1>, vector<8x2176xi32>
      %cst_86 = arith.constant dense<-2147483648> : vector<8xi32>
      %285 = vector.multi_reduction <maxsi>, %284, %cst_86 [1] : vector<8x2176xi32> to vector<8xi32>
      %286 = vector.shape_cast %285 : vector<8xi32> to vector<8x1xi32>
      %c65535_i32_87 = arith.constant 65535 : i32
      %287 = vector.broadcast %c65535_i32_87 : i32 to vector<8x1xi32>
      %288 = arith.andi %286, %287 : vector<8x1xi32>
      %c2175_i32_88 = arith.constant 2175 : i32
      %289 = vector.broadcast %c2175_i32_88 : i32 to vector<8x1xi32>
      %290 = arith.subi %289, %288 : vector<8x1xi32>
      %c16_i32_89 = arith.constant 16 : i32
      %291 = vector.broadcast %c16_i32_89 : i32 to vector<8x1xi32>
      %292 = arith.shrsi %286, %291 : vector<8x1xi32>
      %c32768_i32_90 = arith.constant 32768 : i32
      %293 = vector.broadcast %c32768_i32_90 : i32 to vector<8x1xi32>
      %294 = arith.addi %292, %293 : vector<8x1xi32>
      %295 = vector.broadcast %290 : vector<8x1xi32> to vector<8x128xi32>
      %296 = arith.cmpi eq, %28, %295 : vector<8x128xi32>
      %c-1_i32_91 = arith.constant -1 : i32
      %297 = vector.broadcast %c-1_i32_91 : i32 to vector<8x128xi32>
      %298 = arith.select %296, %72, %297 : vector<8x128xi1>, vector<8x128xi32>
      %cst_92 = arith.constant dense<-2147483648> : vector<8xi32>
      %299 = vector.multi_reduction <maxsi>, %298, %cst_92 [1] : vector<8x128xi32> to vector<8xi32>
      %300 = vector.shape_cast %299 : vector<8xi32> to vector<8x1xi32>
      %c128_i32_93 = arith.constant 128 : i32
      %301 = vector.broadcast %c128_i32_93 : i32 to vector<8x1xi32>
      %302 = arith.cmpi slt, %290, %301 : vector<8x1xi32>
      %c128_i32_94 = arith.constant 128 : i32
      %303 = vector.broadcast %c128_i32_94 : i32 to vector<8x1xi32>
      %304 = arith.subi %290, %303 : vector<8x1xi32>
      %305 = vector.broadcast %6 : i32 to vector<8x1xi32>
      %306 = arith.addi %305, %304 : vector<8x1xi32>
      %307 = arith.select %302, %300, %306 : vector<8x1xi1>, vector<8x1xi32>
      %c6_i32 = arith.constant 6 : i32
      %308 = vector.broadcast %c6_i32 : i32 to vector<8x128xi32>
      %309 = arith.cmpi eq, %28, %308 : vector<8x128xi32>
      %310 = vector.shape_cast %294 : vector<8x1xi32> to vector<8x1xi32>
      %311 = vector.broadcast %310 : vector<8x1xi32> to vector<8x128xi32>
      %312 = arith.select %309, %311, %277 : vector<8x128xi1>, vector<8x128xi32>
      %313 = vector.shape_cast %307 : vector<8x1xi32> to vector<8x1xi32>
      %314 = vector.broadcast %313 : vector<8x1xi32> to vector<8x128xi32>
      %315 = arith.select %309, %314, %280 : vector<8x128xi1>, vector<8x128xi32>
      %316 = vector.broadcast %286 : vector<8x1xi32> to vector<8x2176xi32>
      %317 = arith.cmpi eq, %284, %316 : vector<8x2176xi32>
      %c-2147483648_i32_95 = arith.constant -2147483648 : i32
      %318 = vector.broadcast %c-2147483648_i32_95 : i32 to vector<8x2176xi32>
      %319 = arith.select %317, %318, %284 : vector<8x2176xi1>, vector<8x2176xi32>
      %cst_96 = arith.constant dense<-2147483648> : vector<8xi32>
      %320 = vector.multi_reduction <maxsi>, %319, %cst_96 [1] : vector<8x2176xi32> to vector<8xi32>
      %321 = vector.shape_cast %320 : vector<8xi32> to vector<8x1xi32>
      %c65535_i32_97 = arith.constant 65535 : i32
      %322 = vector.broadcast %c65535_i32_97 : i32 to vector<8x1xi32>
      %323 = arith.andi %321, %322 : vector<8x1xi32>
      %c2175_i32_98 = arith.constant 2175 : i32
      %324 = vector.broadcast %c2175_i32_98 : i32 to vector<8x1xi32>
      %325 = arith.subi %324, %323 : vector<8x1xi32>
      %c16_i32_99 = arith.constant 16 : i32
      %326 = vector.broadcast %c16_i32_99 : i32 to vector<8x1xi32>
      %327 = arith.shrsi %321, %326 : vector<8x1xi32>
      %c32768_i32_100 = arith.constant 32768 : i32
      %328 = vector.broadcast %c32768_i32_100 : i32 to vector<8x1xi32>
      %329 = arith.addi %327, %328 : vector<8x1xi32>
      %330 = vector.broadcast %325 : vector<8x1xi32> to vector<8x128xi32>
      %331 = arith.cmpi eq, %28, %330 : vector<8x128xi32>
      %c-1_i32_101 = arith.constant -1 : i32
      %332 = vector.broadcast %c-1_i32_101 : i32 to vector<8x128xi32>
      %333 = arith.select %331, %72, %332 : vector<8x128xi1>, vector<8x128xi32>
      %cst_102 = arith.constant dense<-2147483648> : vector<8xi32>
      %334 = vector.multi_reduction <maxsi>, %333, %cst_102 [1] : vector<8x128xi32> to vector<8xi32>
      %335 = vector.shape_cast %334 : vector<8xi32> to vector<8x1xi32>
      %c128_i32_103 = arith.constant 128 : i32
      %336 = vector.broadcast %c128_i32_103 : i32 to vector<8x1xi32>
      %337 = arith.cmpi slt, %325, %336 : vector<8x1xi32>
      %c128_i32_104 = arith.constant 128 : i32
      %338 = vector.broadcast %c128_i32_104 : i32 to vector<8x1xi32>
      %339 = arith.subi %325, %338 : vector<8x1xi32>
      %340 = vector.broadcast %6 : i32 to vector<8x1xi32>
      %341 = arith.addi %340, %339 : vector<8x1xi32>
      %342 = arith.select %337, %335, %341 : vector<8x1xi1>, vector<8x1xi32>
      %c7_i32 = arith.constant 7 : i32
      %343 = vector.broadcast %c7_i32 : i32 to vector<8x128xi32>
      %344 = arith.cmpi eq, %28, %343 : vector<8x128xi32>
      %345 = vector.shape_cast %329 : vector<8x1xi32> to vector<8x1xi32>
      %346 = vector.broadcast %345 : vector<8x1xi32> to vector<8x128xi32>
      %347 = arith.select %344, %346, %312 : vector<8x128xi1>, vector<8x128xi32>
      %348 = vector.shape_cast %342 : vector<8x1xi32> to vector<8x1xi32>
      %349 = vector.broadcast %348 : vector<8x1xi32> to vector<8x128xi32>
      %350 = arith.select %344, %349, %315 : vector<8x128xi1>, vector<8x128xi32>
      %c32768_i32_105 = arith.constant 32768 : i32
      %351 = vector.broadcast %c32768_i32_105 : i32 to vector<8x128xi32>
      %352 = arith.cmpi sge, %347, %351 : vector<8x128xi32>
      %c32768_i32_106 = arith.constant 32768 : i32
      %353 = vector.broadcast %c32768_i32_106 : i32 to vector<8x128xi32>
      %354 = arith.subi %347, %353 : vector<8x128xi32>
      %c65535_i32_107 = arith.constant 65535 : i32
      %355 = vector.broadcast %c65535_i32_107 : i32 to vector<8x128xi32>
      %356 = arith.subi %355, %347 : vector<8x128xi32>
      %357 = arith.select %352, %354, %356 : vector<8x128xi1>, vector<8x128xi32>
      %c16_i32_108 = arith.constant 16 : i32
      %358 = vector.broadcast %c16_i32_108 : i32 to vector<8x128xi32>
      %359 = arith.shli %357, %358 : vector<8x128xi32>
      %360 = tpu.bitcast %359 : vector<8x128xi32> -> vector<8x128xf32>
      %c0_109 = arith.constant 0 : index
      %c0_110 = arith.constant 0 : index
      %361 = vector.load %arg4[%c0_109, %c0_110] : memref<8x128xf32, #tpu.memory_space<vmem>>, vector<8x128xf32>
      tpu.vector_store %arg4[%c0_109, %c0_110], %360 {strides = array<i32>} : memref<8x128xf32, #tpu.memory_space<vmem>>, vector<8x128xf32>,
      %c0_111 = arith.constant 0 : index
      %c0_112 = arith.constant 0 : index
      %362 = vector.load %arg5[%c0_111, %c0_112] : memref<8x128xi32, #tpu.memory_space<vmem>>, vector<8x128xi32>
      tpu.vector_store %arg5[%c0_111, %c0_112], %350 {strides = array<i32>} : memref<8x128xi32, #tpu.memory_space<vmem>>, vector<8x128xi32>,
    } else {
    }
    return
  }
  func.func @transform_0(%arg0: i32, %arg1: i32) -> (i32, i32) {
    %c0_i32 = arith.constant 0 : i32
    %c0_i32_0 = arith.constant 0 : i32
    return %arg0, %c0_i32 : i32, i32
  }
  func.func @transform_1(%arg0: i32, %arg1: i32) -> (i32, i32) {
    %c0_i32 = arith.constant 0 : i32
    %c0_i32_0 = arith.constant 0 : i32
    return %c0_i32, %arg1 : i32, i32
  }
  func.func @transform_2(%arg0: i32, %arg1: i32) -> (i32, i32) {
    %c0_i32 = arith.constant 0 : i32
    %c0_i32_0 = arith.constant 0 : i32
    return %arg0, %c0_i32 : i32, i32
  }
  func.func @transform_3(%arg0: i32, %arg1: i32) -> (i32, i32) {
    %c0_i32 = arith.constant 0 : i32
    %c0_i32_0 = arith.constant 0 : i32
    return %arg0, %c0_i32 : i32, i32
  }
}

</mosaic_0001>

<bundles_post_ra>
// kernel: tpu_custom_call.1
= control target key start
LH: loop header
LB: loop body
LE: loop exit
PB: predicated region body
PF: predicated region fallthrough
CT: control target
= control target key end

     0   :  { %9 = vsyncpa [#allocation4], 0  ;;  %s5615_s0 = inlined_call_operand.hbm [shape: f32[8,128], index: 0, kind: input, shape index: {}]   ;;  %s5616_s1 = inlined_call_operand.hbm [shape: bf16[128,6144], index: 1, kind: input, shape index: {}]   ;;  %s5617_s2 = inlined_call_operand.hbm [shape: f32[8,128], index: 2, kind: output, shape index: {0}]   ;;  %s5618_s3 = inlined_call_operand.hbm [shape: s32[8,128], index: 3, kind: output, shape index: {1}]  }
   0x1   :  { %10 = vsyncpa [#allocation7], 0 }
   0x2   :  { %12 = vsyncpa [#allocation7 + $0x1], 0 }
   0x3   :  { %13 = vsyncpa [#allocation5], 0 }
   0x4   :  { %14 = vsyncpa [#allocation10], 0  ;;  %s3484_s12 = smov 0   ;;  %s3486_s13 = smov 0  }
   0x5   :  { %s3488_s14 = smov 0   ;;  %s3490_s15 = smov 0  }
   0x6   :  { %s3492_s16 = smov 0   ;;  %s3494_s17 = smov 0  }
   0x7 LB: > { %s2483_s18 = sadd.s32 4294967295, %s3453_s17   ;;  %s65_s19 = sadd.s32 1, %s3441_s14  ;;  %s3453_s17 = sphi %s3494_s17, %s20_s17   ;;  %s3449_s16 = sphi %s3492_s16, %s5718_s16   ;;  %s3445_s15 = sphi %s3490_s15, %s5717_s15   ;;  %s3441_s14 = sphi %s3488_s14, %s5716_s14   ;;  %s3437_s13 = sphi %s3486_s13, %s5715_s13   ;;  %s3433_s12 = sphi %s3484_s12, %s5714_s12  }
   0x8   : > { %p72_p0 = scmp.ne.s32.totalorder %s3441_s14, %s3437_s13  ;;  %p73_p1 = scmp.eq.s32.totalorder %s3453_s17, 0 }
   0x9   : > { %p78_p2 = scmp.ne.s32.totalorder %s3437_s13, %s3433_s12  ;;  %p3520_p3 = scmp.eq.s32.totalorder %s2483_s18, 0 }
   0xa   : > { %p3524_p4 = por %p73_p1, %p72_p0  ;;  %p2484_p5 = scmp.ge.s32.totalorder %s3453_s17, 1 }
   0xb   : > { %p3531_p6 = por %p3520_p3, %p78_p2  ;;  %p141_p7 = scmp.lt.s32.totalorder %s3453_s17, 4 }
   0xc   : > { %s155_s25 = sshll.u32 %s5615_s0, 4  ;;  %s3455_s27 = smov [#allocation3]   ;;  %s156_s25 = int_to_ptr.hbm [resolvable:$true] %s155_s25 }
   0xd   : > { %p3539_p8 = pnand %p2484_p5, %p141_p7  ;;  %s157_s28 = sshll.u32 %s3455_s27, 4  ;;  %s158_s28 = int_to_ptr.vmem [resolvable:$true] %s157_s28 }
   0xe   : > { %p3210_p10 = scmp.lt.s32.totalorder %s3453_s17, 3  ;;  %s29_s30 = sadd.s32 1, %s3449_s16 }
   0xf   : > { %p3201_p9 = pneg %p3539_p8  ;;  %p30_p13 = scmp.ge.s32.totalorder %s29_s30, 3 }
  0x10   : > { %p3550_p12 = pnand %p3210_p10, %p3524_p4  ;;  %s168_s4 = sand.u32 1, %s3441_s14  }
  0x11   : > { %p3202_p11 = pnand %p3201_p9, %p3520_p3  ;;  %s3056_s5 = sshll.u32 %s3449_s16, 6 }
  0x12   : > { %s5720_s30 = smov (%p30_p13, %s29_s30), 0  ;;  %s2487_s6 = sshll.u32 %s168_s4, 10 }
  0x13   : > { %3204 = dma.hbm_to_vmem [thread:$0]  (!%p3202_p11), %s156_s25, 128, %s158_s28, [#allocation4]  }
  0x14   : > { %s62_s7 = ssub.s32 %s3449_s16, %s5720_s30  ;;  %s177_s10 = scalar_lea.hbm %s5616_s1, %s3056_s5 }
  0x15   : > { %p63_p0 = scmp.eq.s32.totalorder %s62_s7, 0  ;;  %s178_s11 = sshll.u32 %s177_s10, 4  ;;  %s179_s11 = int_to_ptr.hbm [resolvable:$true] %s178_s11 }
  0x16   : > { %s172_s12 = scalar_lea.vmem [#allocation6], %s2487_s6  ;;  %s169_s24 = scalar_lea.sflag [#allocation7], %s168_s4 }
  0x17   : > { %s180_s21 = sshll.u32 %s172_s12, 4  ;;  %s3456_s25 = smov 3072   ;;  %s181_s21 = int_to_ptr.vmem [resolvable:$true] %s180_s21 }
  0x18   : > { %s3567_s23 = scalar_select %p63_p0, %s3441_s14, %s65_s19  }
  0x19   : > { %s3457_s27 = smov 1024   ;;  %s3458_s28 = smov 64  }
  0x1a   : > { %3208 = dma.hbm_to_vmem [thread:$0]  (!%p3550_p12), %s179_s11, 16384, %s181_s21, %s169_s24, %s3456_s25, %s3457_s27, %s3458_s28  }
  0x1b   : > { %192 = sbr.rel (%p3539_p8) target bundleno = 3159 (0xc57), region = 28 }
  0x20   : > { %3416 = dma.done.wait (%p3520_p3), [#allocation4], 128  }
  0x21   : > { %3418 = vsyncadd (%p3520_p3), [#allocation4], 4294967168  ;;  %s199_s19 = sand.u32 1, %s3437_s13  }
  0x22   : > { %s2492_s5 = sshll.u32 %s199_s19, 10  ;;  %s200_s6 = scalar_lea.sflag [#allocation7], %s199_s19 }
  0x23   : > { %s3578_s4 = scalar_lea.vmem [#allocation6], %s2492_s5 }
  0x24   : > { %3420 = dma.done.wait (%p3531_p6), %s200_s6, 16384  }
  0x25   : > { %3422 = vsyncadd (%p3531_p6), %s200_s6, 4294950912  ;;  %p2493_p1 = scmp.ne.s32.totalorder %s3445_s15, 0 }
  0x27   : > { %226 = sbr.rel (%p2493_p1) target bundleno = 188 (0xbc), region = 40 }
  0x2c   : > { %v229_v0 = vld [vmem:[#allocation3] sm:$0xff]  ;;  %v3459_v1 = vmov -inf   ;;  %v3460_v3 = vmov 0  }
  0x2d   : > { %227 = vst [vmem:[#allocation8] sm:$0xff] %v3459_v1  ;;  %v230_v2 = vmul.f32 %v229_v0, %v229_v0 }
  0x2e   : > { %228 = vst [vmem:[#allocation9] sm:$0xff] %v3460_v3 }
  0x2f   : > { %231 = vadd.xlane.f32.xlu0 %v230_v2 }
  0xa2   : > { %v232_v4 = vpop.xlane.xlu0 %231 }
  0xa3   : > { %v233_v5 = vmax.f32 %v232_v4, 1e-12 }
  0xa5   : > { %3273 = vrsqrt.f32 %v233_v5  ;;  %vm240_vm1 = vweird.f32 %v233_v5 }
  0xab   : > { %v3274_v6 = vpop.eup %3273 }
  0xac   : > { %v235_v7 = vmul.f32 %v3274_v6, %v233_v5  ;;  %vm241_vm0 = vweird.f32 %v3274_v6 }
  0xad   : > { %vm242_vm2 = vmor %vm240_vm1, %vm241_vm0 }
  0xae   : > { %v236_v8 = vmul.f32 %v3274_v6, %v235_v7 }
  0xb0   : > { %v237_v9 = vmul.f32 0.5, %v236_v8 }
  0xb2   : > { %v238_v10 = vsub.f32 1.5, %v237_v9 }
  0xb4   : > { %v239_v11 = vmul.f32 %v3274_v6, %v238_v10 }
  0xb6   : > { %v243_v12 = vsel %vm242_vm2, %v3274_v6, %v239_v11 }
  0xb7   : > { %v244_v13 = vmul.f32 %v243_v12, %v229_v0 }
  0xb9   : > { %v245_v14 = vpack.c.bf16 %v244_v13, %v244_v13 }
  0xbb   : > { %246 = vst [vmem:[#allocation2] sm:$0xf] %v245_v14 }
  0xbc PF: > { %v2944_v15 = vld [vmem:[%s3578_s4 + $0x380] sm:$0xf]  ;;  %v3169_v17 = vld [vmem:[%s3578_s4 + $0x384] sm:$0xf]  ;;  %v2952_v20 = vld [vmem:[%s3578_s4 + $0x388] sm:$0xf] }
  0xbd   : > { %v3177_v16 = vld [vmem:[%s3578_s4 + $0x3bc] sm:$0xf0]  ;;  %v2946_v19 = vld [vmem:[%s3578_s4 + $0x3c0] sm:$0xf0]  ;;  %v3178_v21 = vld [vmem:[%s3578_s4 + $0x3c4] sm:$0xf0] }
  0xbe   : > { %v2945_v18 = vor.u32 %v3177_v16, %v2944_v15  ;;  %v2949_v22 = vor.u32 %v3169_v17, %v2946_v19  ;;  %v2953_v23 = vor.u32 %v3178_v21, %v2952_v20  ;;  %v3170_v24 = vld [vmem:[%s3578_s4 + $0x38c] sm:$0xf]  ;;  %v2880_v26 = vld [vmem:[%s3578_s4 + $0x300] sm:$0xf]  ;;  %v3153_v29 = vld [vmem:[%s3578_s4 + $0x304] sm:$0xf] }
  0xbf   : > { %v2954_v25 = vld [vmem:[%s3578_s4 + $0x3c8] sm:$0xf0]  ;;  %v3161_v28 = vld [vmem:[%s3578_s4 + $0x33c] sm:$0xf0]  ;;  %v2882_v30 = vld [vmem:[%s3578_s4 + $0x340] sm:$0xf0] }
  0xc0   : > { %1016 = vmatpush.bf16.msra.mxu0 %v2945_v18  ;;  %v2957_v27 = vor.u32 %v3170_v24, %v2954_v25  ;;  %1029 = vmatpush.bf16.msra.mxu1 %v2949_v22  ;;  %v2881_v31 = vor.u32 %v3161_v28, %v2880_v26  ;;  %v2885_v32 = vor.u32 %v3153_v29, %v2882_v30  ;;  %v2888_v33 = vld [vmem:[%s3578_s4 + $0x308] sm:$0xf]  ;;  %v3154_v35 = vld [vmem:[%s3578_s4 + $0x30c] sm:$0xf]  ;;  %v2816_v38 = vld [vmem:[%s3578_s4 + $0x280] sm:$0xf] }
  0xc1   : > { %1042 = vmatpush.bf16.msra.mxu2 %v2953_v23  ;;  %v3162_v34 = vld [vmem:[%s3578_s4 + $0x344] sm:$0xf0]  ;;  %v2890_v37 = vld [vmem:[%s3578_s4 + $0x348] sm:$0xf0]  ;;  %v3145_v39 = vld [vmem:[%s3578_s4 + $0x2bc] sm:$0xf0] }
  0xc2   : > { %1055 = vmatpush.bf16.msra.mxu3 %v2957_v27  ;;  %v2889_v36 = vor.u32 %v3162_v34, %v2888_v33  ;;  %v2893_v40 = vor.u32 %v3154_v35, %v2890_v37  ;;  %v3137_v41 = vld [vmem:[%s3578_s4 + $0x284] sm:$0xf]  ;;  %v2824_v43 = vld [vmem:[%s3578_s4 + $0x288] sm:$0xf]  ;;  %v2817_v44 = vor.u32 %v3145_v39, %v2816_v38  ;;  %v3138_v46 = vld [vmem:[%s3578_s4 + $0x28c] sm:$0xf] }
  0xc3   : > { %v2818_v42 = vld [vmem:[%s3578_s4 + $0x2c0] sm:$0xf0]  ;;  %v3146_v45 = vld [vmem:[%s3578_s4 + $0x2c4] sm:$0xf0]  ;;  %v2826_v47 = vld [vmem:[%s3578_s4 + $0x2c8] sm:$0xf0] }
  0xc4   : > { %1017 = vmatpush.bf16.msra.mxu0 %v2881_v31  ;;  %1030 = vmatpush.bf16.msra.mxu1 %v2885_v32  ;;  %v2821_v48 = vor.u32 %v3137_v41, %v2818_v42  ;;  %v2825_v49 = vor.u32 %v3146_v45, %v2824_v43  ;;  %v2752_v50 = vld [vmem:[%s3578_s4 + $0x200] sm:$0xf]  ;;  %v3121_v52 = vld [vmem:[%s3578_s4 + $0x204] sm:$0xf]  ;;  %v2829_v53 = vor.u32 %v3138_v46, %v2826_v47  ;;  %v2760_v55 = vld [vmem:[%s3578_s4 + $0x208] sm:$0xf] }
  0xc5   : > { %1043 = vmatpush.bf16.msra.mxu2 %v2889_v36  ;;  %v3129_v51 = vld [vmem:[%s3578_s4 + $0x23c] sm:$0xf0]  ;;  %v2754_v54 = vld [vmem:[%s3578_s4 + $0x240] sm:$0xf0]  ;;  %v3130_v56 = vld [vmem:[%s3578_s4 + $0x244] sm:$0xf0] }
  0xc6   : > { %1056 = vmatpush.bf16.msra.mxu3 %v2893_v40  ;;  %v3122_v57 = vld [vmem:[%s3578_s4 + $0x20c] sm:$0xf]  ;;  %v2753_v59 = vor.u32 %v3129_v51, %v2752_v50  ;;  %v2757_v60 = vor.u32 %v3121_v52, %v2754_v54  ;;  %v2761_v61 = vor.u32 %v3130_v56, %v2760_v55  ;;  %v2688_v62 = vld [vmem:[%s3578_s4 + $0x180] sm:$0xf]  ;;  %v3105_v0 = vld [vmem:[%s3578_s4 + $0x184] sm:$0xf] }
  0xc7   : > { %v2762_v58 = vld [vmem:[%s3578_s4 + $0x248] sm:$0xf0]  ;;  %v3113_v63 = vld [vmem:[%s3578_s4 + $0x1bc] sm:$0xf0]  ;;  %v2690_v2 = vld [vmem:[%s3578_s4 + $0x1c0] sm:$0xf0] }
  0xc8   : > { %1018 = vmatpush.bf16.msra.mxu0 %v2817_v44  ;;  %1031 = vmatpush.bf16.msra.mxu1 %v2821_v48  ;;  %v2765_v1 = vor.u32 %v3122_v57, %v2762_v58  ;;  %v2696_v3 = vld [vmem:[%s3578_s4 + $0x188] sm:$0xf]  ;;  %v3106_v5 = vld [vmem:[%s3578_s4 + $0x18c] sm:$0xf]  ;;  %v2689_v7 = vor.u32 %v3113_v63, %v2688_v62  ;;  %v2693_v8 = vor.u32 %v3105_v0, %v2690_v2  ;;  %v2624_v10 = vld [vmem:[%s3578_s4 + $0x100] sm:$0xf] }
  0xc9   : > { %1044 = vmatpush.bf16.msra.mxu2 %v2825_v49  ;;  %v3114_v4 = vld [vmem:[%s3578_s4 + $0x1c4] sm:$0xf0]  ;;  %v2698_v6 = vld [vmem:[%s3578_s4 + $0x1c8] sm:$0xf0]  ;;  %v3097_v11 = vld [vmem:[%s3578_s4 + $0x13c] sm:$0xf0] }
  0xca   : > { %1057 = vmatpush.bf16.msra.mxu3 %v2829_v53  ;;  %v2697_v9 = vor.u32 %v3114_v4, %v2696_v3  ;;  %v3089_v12 = vld [vmem:[%s3578_s4 + $0x104] sm:$0xf]  ;;  %v2701_v13 = vor.u32 %v3106_v5, %v2698_v6  ;;  %v2632_v15 = vld [vmem:[%s3578_s4 + $0x108] sm:$0xf]  ;;  %v3090_v17 = vld [vmem:[%s3578_s4 + $0x10c] sm:$0xf]  ;;  %v2625_v19 = vor.u32 %v3097_v11, %v2624_v10 }
  0xcb   : > { %v2626_v14 = vld [vmem:[%s3578_s4 + $0x140] sm:$0xf0]  ;;  %v3098_v16 = vld [vmem:[%s3578_s4 + $0x144] sm:$0xf0]  ;;  %v2634_v18 = vld [vmem:[%s3578_s4 + $0x148] sm:$0xf0] }
  0xcc   : > { %1019 = vmatpush.bf16.msra.mxu0 %v2753_v59  ;;  %1032 = vmatpush.bf16.msra.mxu1 %v2757_v60  ;;  %v2629_v20 = vor.u32 %v3089_v12, %v2626_v14  ;;  %v2633_v21 = vor.u32 %v3098_v16, %v2632_v15  ;;  %v2560_v22 = vld [vmem:[%s3578_s4 + $0x80] sm:$0xf]  ;;  %v3073_v24 = vld [vmem:[%s3578_s4 + $0x84] sm:$0xf]  ;;  %v2637_v25 = vor.u32 %v3090_v17, %v2634_v18  ;;  %v2568_v27 = vld [vmem:[%s3578_s4 + $0x88] sm:$0xf] }
  0xcd   : > { %1045 = vmatpush.bf16.msra.mxu2 %v2761_v61  ;;  %v3081_v23 = vld [vmem:[%s3578_s4 + $0xbc] sm:$0xf0]  ;;  %v2562_v26 = vld [vmem:[%s3578_s4 + $0xc0] sm:$0xf0]  ;;  %v3082_v28 = vld [vmem:[%s3578_s4 + $0xc4] sm:$0xf0] }
  0xce   : > { %1058 = vmatpush.bf16.msra.mxu3 %v2765_v1  ;;  %v3074_v29 = vld [vmem:[%s3578_s4 + $0x8c] sm:$0xf]  ;;  %v2561_v31 = vor.u32 %v3081_v23, %v2560_v22  ;;  %v2496_v32 = vld [vmem:[%s3578_s4] sm:$0xf]  ;;  %v2565_v34 = vor.u32 %v3073_v24, %v2562_v26  ;;  %v2569_v35 = vor.u32 %v3082_v28, %v2568_v27  ;;  %v3057_v36 = vld [vmem:[%s3578_s4 + $0x4] sm:$0xf] }
  0xcf   : > { %v2570_v30 = vld [vmem:[%s3578_s4 + $0xc8] sm:$0xf0]  ;;  %v3065_v33 = vld [vmem:[%s3578_s4 + $0x3c] sm:$0xf0]  ;;  %v2498_v37 = vld [vmem:[%s3578_s4 + $0x40] sm:$0xf0] }
  0xd0   : > { %1020 = vmatpush.bf16.msra.mxu0 %v2689_v7  ;;  %1033 = vmatpush.bf16.msra.mxu1 %v2693_v8  ;;  %v2504_v38 = vld [vmem:[%s3578_s4 + $0x8] sm:$0xf]  ;;  %v2573_v39 = vor.u32 %v3074_v29, %v2570_v30  ;;  %v3058_v41 = vld [vmem:[%s3578_s4 + $0xc] sm:$0xf]  ;;  %v2960_v43 = vld [vmem:[%s3578_s4 + $0x390] sm:$0xf]  ;;  %v2497_v46 = vor.u32 %v3065_v33, %v2496_v32  ;;  %v2501_v50 = vor.u32 %v3057_v36, %v2498_v37 }
  0xd1   : > { %1046 = vmatpush.bf16.msra.mxu2 %v2697_v9  ;;  %v3066_v40 = vld [vmem:[%s3578_s4 + $0x44] sm:$0xf0]  ;;  %v2506_v42 = vld [vmem:[%s3578_s4 + $0x48] sm:$0xf0]  ;;  %v3179_v44 = vld [vmem:[%s3578_s4 + $0x3cc] sm:$0xf0] }
  0xd2   : > { %1059 = vmatpush.bf16.msra.mxu3 %v2701_v13  ;;  %v3171_v45 = vld [vmem:[%s3578_s4 + $0x394] sm:$0xf]  ;;  %v2968_v48 = vld [vmem:[%s3578_s4 + $0x398] sm:$0xf]  ;;  %v2505_v51 = vor.u32 %v3066_v40, %v2504_v38  ;;  %v3172_v52 = vld [vmem:[%s3578_s4 + $0x39c] sm:$0xf]  ;;  %v2509_v54 = vor.u32 %v3058_v41, %v2506_v42  ;;  %v2961_v55 = vor.u32 %v3179_v44, %v2960_v43 }
  0xd3   : > { %v2962_v47 = vld [vmem:[%s3578_s4 + $0x3d0] sm:$0xf0]  ;;  %v3180_v49 = vld [vmem:[%s3578_s4 + $0x3d4] sm:$0xf0]  ;;  %v2970_v53 = vld [vmem:[%s3578_s4 + $0x3d8] sm:$0xf0] }
  0xd4   : > { %1021 = vmatpush.bf16.msra.mxu0 %v2625_v19  ;;  %1034 = vmatpush.bf16.msra.mxu1 %v2629_v20  ;;  %v2965_v56 = vor.u32 %v3171_v45, %v2962_v47  ;;  %v2969_v57 = vor.u32 %v3180_v49, %v2968_v48  ;;  %v2896_v58 = vld [vmem:[%s3578_s4 + $0x310] sm:$0xf]  ;;  %v3155_v60 = vld [vmem:[%s3578_s4 + $0x314] sm:$0xf]  ;;  %v2973_v61 = vor.u32 %v3172_v52, %v2970_v53  ;;  %v2904_v63 = vld [vmem:[%s3578_s4 + $0x318] sm:$0xf] }
  0xd5   : > { %1047 = vmatpush.bf16.msra.mxu2 %v2633_v21  ;;  %v3163_v59 = vld [vmem:[%s3578_s4 + $0x34c] sm:$0xf0]  ;;  %v2898_v62 = vld [vmem:[%s3578_s4 + $0x350] sm:$0xf0]  ;;  %v3164_v0 = vld [vmem:[%s3578_s4 + $0x354] sm:$0xf0] }
  0xd6   : > { %1060 = vmatpush.bf16.msra.mxu3 %v2637_v25  ;;  %v3156_v1 = vld [vmem:[%s3578_s4 + $0x31c] sm:$0xf]  ;;  %v3665_v3 = vld [vmem:[#allocation2] sm:$0xf]  ;;  %v2897_v4 = vor.u32 %v3163_v59, %v2896_v58  ;;  %v2901_v5 = vor.u32 %v3155_v60, %v2898_v62  ;;  %v2905_v6 = vor.u32 %v3164_v0, %v2904_v63  ;;  %v2832_v7 = vld [vmem:[%s3578_s4 + $0x290] sm:$0xf] }
  0xd7   : > { %v2906_v2 = vld [vmem:[%s3578_s4 + $0x358] sm:$0xf0]  ;;  %v3147_v8 = vld [vmem:[%s3578_s4 + $0x2cc] sm:$0xf0]  ;;  %v3139_v9 = vld [vmem:[%s3578_s4 + $0x294] sm:$0xf] }
  0xd8   : > { %1022 = vmatpush.bf16.msra.mxu0 %v2561_v31  ;;  %1035 = vmatpush.bf16.msra.mxu1 %v2565_v34  ;;  %v2909_v10 = vor.u32 %v3156_v1, %v2906_v2  ;;  %v2834_v11 = vld [vmem:[%s3578_s4 + $0x2d0] sm:$0xf0]  ;;  %v2840_v12 = vld [vmem:[%s3578_s4 + $0x298] sm:$0xf]  ;;  %v3140_v14 = vld [vmem:[%s3578_s4 + $0x29c] sm:$0xf]  ;;  %v2833_v16 = vor.u32 %v3147_v8, %v2832_v7 }
  0xd9   : > { %1048 = vmatpush.bf16.msra.mxu2 %v2569_v35  ;;  %v3148_v13 = vld [vmem:[%s3578_s4 + $0x2d4] sm:$0xf0]  ;;  %v2842_v15 = vld [vmem:[%s3578_s4 + $0x2d8] sm:$0xf0]  ;;  %v2837_v17 = vor.u32 %v3139_v9, %v2834_v11  ;;  %v2768_v19 = vld [vmem:[%s3578_s4 + $0x210] sm:$0xf] }
  0xda   : > { %1061 = vmatpush.bf16.msra.mxu3 %v2573_v39  ;;  %v2841_v18 = vor.u32 %v3148_v13, %v2840_v12  ;;  %v3131_v20 = vld [vmem:[%s3578_s4 + $0x24c] sm:$0xf0]  ;;  %v3123_v21 = vld [vmem:[%s3578_s4 + $0x214] sm:$0xf]  ;;  %v2845_v22 = vor.u32 %v3140_v14, %v2842_v15  ;;  %v2776_v24 = vld [vmem:[%s3578_s4 + $0x218] sm:$0xf] }
  0xdb   : > { %v2770_v23 = vld [vmem:[%s3578_s4 + $0x250] sm:$0xf0]  ;;  %v3132_v25 = vld [vmem:[%s3578_s4 + $0x254] sm:$0xf0]  ;;  %v3124_v26 = vld [vmem:[%s3578_s4 + $0x21c] sm:$0xf]  ;;  %v2769_v28 = vor.u32 %v3131_v20, %v2768_v19 }
  0xdc   : > { %1023 = vmatpush.bf16.msra.mxu0 %v2497_v46  ;;  %1036 = vmatpush.bf16.msra.mxu1 %v2501_v50  ;;  %v2778_v27 = vld [vmem:[%s3578_s4 + $0x258] sm:$0xf0]  ;;  %v2773_v29 = vor.u32 %v3123_v21, %v2770_v23  ;;  %v2777_v30 = vor.u32 %v3132_v25, %v2776_v24  ;;  %v2704_v31 = vld [vmem:[%s3578_s4 + $0x190] sm:$0xf]  ;;  %v3107_v33 = vld [vmem:[%s3578_s4 + $0x194] sm:$0xf] }
  0xdd   : > { %1049 = vmatpush.bf16.msra.mxu2 %v2505_v51  ;;  %v3115_v32 = vld [vmem:[%s3578_s4 + $0x1cc] sm:$0xf0]  ;;  %v2781_v34 = vor.u32 %v3124_v26, %v2778_v27  ;;  %v2706_v35 = vld [vmem:[%s3578_s4 + $0x1d0] sm:$0xf0]  ;;  %v2712_v36 = vld [vmem:[%s3578_s4 + $0x198] sm:$0xf] }
  0xde   : > { %1062 = vmatpush.bf16.msra.mxu3 %v2509_v54  ;;  %v3116_v37 = vld [vmem:[%s3578_s4 + $0x1d4] sm:$0xf0]  ;;  %v3108_v38 = vld [vmem:[%s3578_s4 + $0x19c] sm:$0xf]  ;;  %v2705_v40 = vor.u32 %v3115_v32, %v2704_v31  ;;  %v2709_v41 = vor.u32 %v3107_v33, %v2706_v35  ;;  %v2640_v43 = vld [vmem:[%s3578_s4 + $0x110] sm:$0xf] }
  0xdf   : > { %1024 = vmatmul.bf16.vlgmr.msra.gmra.mxu0 %v3665_v3  ;;  %1037 = vmatmul.bf16.vlgmr.msra.gmra.mxu1 %v3665_v3  ;;  %v2714_v39 = vld [vmem:[%s3578_s4 + $0x1d8] sm:$0xf0]  ;;  %v2713_v42 = vor.u32 %v3116_v37, %v2712_v36  ;;  %v3099_v44 = vld [vmem:[%s3578_s4 + $0x14c] sm:$0xf0]  ;;  %v3091_v45 = vld [vmem:[%s3578_s4 + $0x114] sm:$0xf] }
  0xe0   : > { %1068 = vmatpush.bf16.msrb.mxu0 %v2961_v55  ;;  %1081 = vmatpush.bf16.msrb.mxu1 %v2965_v56  ;;  %v2717_v46 = vor.u32 %v3108_v38, %v2714_v39  ;;  %v2642_v47 = vld [vmem:[%s3578_s4 + $0x150] sm:$0xf0]  ;;  %v2648_v48 = vld [vmem:[%s3578_s4 + $0x118] sm:$0xf]  ;;  %v3092_v50 = vld [vmem:[%s3578_s4 + $0x11c] sm:$0xf]  ;;  %v2641_v52 = vor.u32 %v3099_v44, %v2640_v43 }
  0xe1   : > { %1094 = vmatpush.bf16.msrb.mxu2 %v2969_v57  ;;  %1063 = vmatmul.bf16.vlgmr.msra.gmra.mxu3 %v3665_v3  ;;  %v3100_v49 = vld [vmem:[%s3578_s4 + $0x154] sm:$0xf0]  ;;  %v2650_v51 = vld [vmem:[%s3578_s4 + $0x158] sm:$0xf0]  ;;  %v2645_v53 = vor.u32 %v3091_v45, %v2642_v47  ;;  %v2576_v55 = vld [vmem:[%s3578_s4 + $0x90] sm:$0xf] }
  0xe2   : > { %1107 = vmatpush.bf16.msrb.mxu3 %v2973_v61  ;;  %1050 = vmatmul.bf16.vlgmr.msra.gmra.mxu2 %v3665_v3  ;;  %v2649_v54 = vor.u32 %v3100_v49, %v2648_v48  ;;  %v3083_v56 = vld [vmem:[%s3578_s4 + $0xcc] sm:$0xf0]  ;;  %v3075_v57 = vld [vmem:[%s3578_s4 + $0x94] sm:$0xf]  ;;  %v2653_v58 = vor.u32 %v3092_v50, %v2650_v51  ;;  %v2584_v60 = vld [vmem:[%s3578_s4 + $0x98] sm:$0xf] }
  0xe3   : > { %v2578_v59 = vld [vmem:[%s3578_s4 + $0xd0] sm:$0xf0]  ;;  %v3084_v61 = vld [vmem:[%s3578_s4 + $0xd4] sm:$0xf0]  ;;  %v3076_v62 = vld [vmem:[%s3578_s4 + $0x9c] sm:$0xf]  ;;  %v2577_v0 = vor.u32 %v3083_v56, %v2576_v55 }
  0xe4   : > { %1069 = vmatpush.bf16.msrb.mxu0 %v2897_v4  ;;  %1082 = vmatpush.bf16.msrb.mxu1 %v2901_v5  ;;  %v2586_v63 = vld [vmem:[%s3578_s4 + $0xd8] sm:$0xf0]  ;;  %v2512_v1 = vld [vmem:[%s3578_s4 + $0x10] sm:$0xf]  ;;  %v2581_v4 = vor.u32 %v3075_v57, %v2578_v59  ;;  %v2585_v5 = vor.u32 %v3084_v61, %v2584_v60  ;;  %v2514_v7 = vld [vmem:[%s3578_s4 + $0x50] sm:$0xf0] }
  0xe5   : > { %1095 = vmatpush.bf16.msrb.mxu2 %v2905_v6  ;;  %v3067_v2 = vld [vmem:[%s3578_s4 + $0x4c] sm:$0xf0]  ;;  %v3059_v6 = vld [vmem:[%s3578_s4 + $0x14] sm:$0xf]  ;;  %v2520_v8 = vld [vmem:[%s3578_s4 + $0x18] sm:$0xf]  ;;  %v2589_v9 = vor.u32 %v3076_v62, %v2586_v63 }
  0xe6   : > { %1108 = vmatpush.bf16.msrb.mxu3 %v2909_v10  ;;  %v3068_v10 = vld [vmem:[%s3578_s4 + $0x54] sm:$0xf0]  ;;  %v3060_v11 = vld [vmem:[%s3578_s4 + $0x1c] sm:$0xf]  ;;  %v2976_v13 = vld [vmem:[%s3578_s4 + $0x3a0] sm:$0xf]  ;;  %v2517_v20 = vor.u32 %v3059_v6, %v2514_v7 }
  0xe7   : > { %v2522_v12 = vld [vmem:[%s3578_s4 + $0x58] sm:$0xf0]  ;;  %v3181_v14 = vld [vmem:[%s3578_s4 + $0x3dc] sm:$0xf0]  ;;  %v3173_v15 = vld [vmem:[%s3578_s4 + $0x3a4] sm:$0xf]  ;;  %v2521_v21 = vor.u32 %v3068_v10, %v2520_v8 }
  0xe8   : > { %1070 = vmatpush.bf16.msrb.mxu0 %v2833_v16  ;;  %1083 = vmatpush.bf16.msrb.mxu1 %v2837_v17  ;;  %v2513_v16 = vor.u32 %v3067_v2, %v2512_v1  ;;  %v2978_v17 = vld [vmem:[%s3578_s4 + $0x3e0] sm:$0xf0]  ;;  %v3182_v19 = vld [vmem:[%s3578_s4 + $0x3e4] sm:$0xf0]  ;;  %v2986_v23 = vld [vmem:[%s3578_s4 + $0x3e8] sm:$0xf0]  ;;  %v2525_v24 = vor.u32 %v3060_v11, %v2522_v12  ;;  %v2977_v25 = vor.u32 %v3181_v14, %v2976_v13 }
  0xe9   : > { %1096 = vmatpush.bf16.msrb.mxu2 %v2841_v18  ;;  %v2984_v18 = vld [vmem:[%s3578_s4 + $0x3a8] sm:$0xf]  ;;  %v2981_v26 = vor.u32 %v3173_v15, %v2978_v17  ;;  %v2914_v32 = vld [vmem:[%s3578_s4 + $0x360] sm:$0xf0]  ;;  %v3158_v35 = vld [vmem:[%s3578_s4 + $0x32c] sm:$0xf] }
  0xea   : > { %1109 = vmatpush.bf16.msrb.mxu3 %v2845_v22  ;;  %v3174_v22 = vld [vmem:[%s3578_s4 + $0x3ac] sm:$0xf]  ;;  %v2985_v27 = vor.u32 %v3182_v19, %v2984_v18  ;;  %v2920_v33 = vld [vmem:[%s3578_s4 + $0x328] sm:$0xf]  ;;  %v2850_v44 = vld [vmem:[%s3578_s4 + $0x2e0] sm:$0xf0] }
  0xeb   : > { %v2989_v31 = vor.u32 %v3174_v22, %v2986_v23  ;;  %v2922_v36 = vld [vmem:[%s3578_s4 + $0x368] sm:$0xf0]  ;;  %v2856_v45 = vld [vmem:[%s3578_s4 + $0x2a8] sm:$0xf]  ;;  %v2786_v56 = vld [vmem:[%s3578_s4 + $0x260] sm:$0xf0] }
  0xec   : > { %1071 = vmatpush.bf16.msrb.mxu0 %v2769_v28  ;;  %1084 = vmatpush.bf16.msrb.mxu1 %v2773_v29  ;;  %v2912_v28 = vld [vmem:[%s3578_s4 + $0x320] sm:$0xf]  ;;  %v2925_v43 = vor.u32 %v3158_v35, %v2922_v36  ;;  %v3142_v47 = vld [vmem:[%s3578_s4 + $0x2ac] sm:$0xf]  ;;  %v2792_v57 = vld [vmem:[%s3578_s4 + $0x228] sm:$0xf] }
  0xed   : > { %1097 = vmatpush.bf16.msrb.mxu2 %v2777_v30  ;;  %v3165_v29 = vld [vmem:[%s3578_s4 + $0x35c] sm:$0xf0]  ;;  %v3157_v30 = vld [vmem:[%s3578_s4 + $0x324] sm:$0xf]  ;;  %v2858_v48 = vld [vmem:[%s3578_s4 + $0x2e8] sm:$0xf0] }
  0xee   : > { %1110 = vmatpush.bf16.msrb.mxu3 %v2781_v34  ;;  %v3166_v34 = vld [vmem:[%s3578_s4 + $0x364] sm:$0xf0]  ;;  %v2913_v37 = vor.u32 %v3165_v29, %v2912_v28  ;;  %v2917_v38 = vor.u32 %v3157_v30, %v2914_v32  ;;  %v2861_v55 = vor.u32 %v3142_v47, %v2858_v48  ;;  %v3126_v59 = vld [vmem:[%s3578_s4 + $0x22c] sm:$0xf]  ;;  %v3117_v1 = vld [vmem:[%s3578_s4 + $0x1dc] sm:$0xf0] }
  0xef   : > { %v2921_v39 = vor.u32 %v3166_v34, %v2920_v33  ;;  %v2794_v60 = vld [vmem:[%s3578_s4 + $0x268] sm:$0xf0]  ;;  %v3109_v2 = vld [vmem:[%s3578_s4 + $0x1a4] sm:$0xf]  ;;  %v2728_v6 = vld [vmem:[%s3578_s4 + $0x1a8] sm:$0xf] }
  0xf0   : > { %1072 = vmatpush.bf16.msrb.mxu0 %v2705_v40  ;;  %1085 = vmatpush.bf16.msrb.mxu1 %v2709_v41  ;;  %v2848_v40 = vld [vmem:[%s3578_s4 + $0x2a0] sm:$0xf]  ;;  %v3118_v7 = vld [vmem:[%s3578_s4 + $0x1e4] sm:$0xf0]  ;;  %v3110_v8 = vld [vmem:[%s3578_s4 + $0x1ac] sm:$0xf] }
  0xf1   : > { %1098 = vmatpush.bf16.msrb.mxu2 %v2713_v42  ;;  %v3149_v41 = vld [vmem:[%s3578_s4 + $0x2dc] sm:$0xf0]  ;;  %v3141_v42 = vld [vmem:[%s3578_s4 + $0x2a4] sm:$0xf]  ;;  %v2729_v12 = vor.u32 %v3118_v7, %v2728_v6  ;;  %v2664_v18 = vld [vmem:[%s3578_s4 + $0x128] sm:$0xf] }
  0xf2   : > { %1111 = vmatpush.bf16.msrb.mxu3 %v2717_v46  ;;  %v3150_v46 = vld [vmem:[%s3578_s4 + $0x2e4] sm:$0xf0]  ;;  %v2849_v49 = vor.u32 %v3149_v41, %v2848_v40  ;;  %v2853_v50 = vor.u32 %v3141_v42, %v2850_v44  ;;  %v2656_v13 = vld [vmem:[%s3578_s4 + $0x120] sm:$0xf]  ;;  %v3093_v15 = vld [vmem:[%s3578_s4 + $0x124] sm:$0xf] }
  0xf3   : > { %v2857_v51 = vor.u32 %v3150_v46, %v2856_v45  ;;  %v3101_v14 = vld [vmem:[%s3578_s4 + $0x15c] sm:$0xf0]  ;;  %v2658_v17 = vld [vmem:[%s3578_s4 + $0x160] sm:$0xf0]  ;;  %v3102_v19 = vld [vmem:[%s3578_s4 + $0x164] sm:$0xf0] }
  0xf4   : > { %1073 = vmatpush.bf16.msrb.mxu0 %v2641_v52  ;;  %1086 = vmatpush.bf16.msrb.mxu1 %v2645_v53  ;;  %v2784_v52 = vld [vmem:[%s3578_s4 + $0x220] sm:$0xf]  ;;  %v2657_v22 = vor.u32 %v3101_v14, %v2656_v13  ;;  %v2661_v23 = vor.u32 %v3093_v15, %v2658_v17  ;;  %v2594_v29 = vld [vmem:[%s3578_s4 + $0xe0] sm:$0xf0]  ;;  %v2600_v30 = vld [vmem:[%s3578_s4 + $0xa8] sm:$0xf] }
  0xf5   : > { %1099 = vmatpush.bf16.msrb.mxu2 %v2649_v54  ;;  %v3133_v53 = vld [vmem:[%s3578_s4 + $0x25c] sm:$0xf0]  ;;  %v3125_v54 = vld [vmem:[%s3578_s4 + $0x224] sm:$0xf]  ;;  %v3078_v32 = vld [vmem:[%s3578_s4 + $0xac] sm:$0xf] }
  0xf6   : > { %1112 = vmatpush.bf16.msrb.mxu3 %v2653_v58  ;;  %v3134_v58 = vld [vmem:[%s3578_s4 + $0x264] sm:$0xf0]  ;;  %v2785_v61 = vor.u32 %v3133_v53, %v2784_v52  ;;  %v2789_v62 = vor.u32 %v3125_v54, %v2786_v56  ;;  %v2602_v33 = vld [vmem:[%s3578_s4 + $0xe8] sm:$0xf0]  ;;  %v2528_v35 = vld [vmem:[%s3578_s4 + $0x20] sm:$0xf] }
  0xf7   : > { %v2793_v63 = vor.u32 %v3134_v58, %v2792_v57  ;;  %v3069_v36 = vld [vmem:[%s3578_s4 + $0x5c] sm:$0xf0]  ;;  %v2530_v40 = vld [vmem:[%s3578_s4 + $0x60] sm:$0xf0]  ;;  %v2536_v41 = vld [vmem:[%s3578_s4 + $0x28] sm:$0xf]  ;;  %v2605_v42 = vor.u32 %v3078_v32, %v2602_v33 }
  0xf8   : > { %1074 = vmatpush.bf16.msrb.mxu0 %v2577_v0  ;;  %1087 = vmatpush.bf16.msrb.mxu1 %v2581_v4  ;;  %v2720_v0 = vld [vmem:[%s3578_s4 + $0x1a0] sm:$0xf]  ;;  %v2797_v4 = vor.u32 %v3126_v59, %v2794_v60  ;;  %v3062_v44 = vld [vmem:[%s3578_s4 + $0x2c] sm:$0xf]  ;;  %v2992_v46 = vld [vmem:[%s3578_s4 + $0x3b0] sm:$0xf] }
  0xf9   : > { %1100 = vmatpush.bf16.msrb.mxu2 %v2585_v5  ;;  %v2722_v5 = vld [vmem:[%s3578_s4 + $0x1e0] sm:$0xf0]  ;;  %v2721_v10 = vor.u32 %v3117_v1, %v2720_v0  ;;  %v2538_v45 = vld [vmem:[%s3578_s4 + $0x68] sm:$0xf0]  ;;  %v3183_v47 = vld [vmem:[%s3578_s4 + $0x3ec] sm:$0xf0] }
  0xfa   : > { %1113 = vmatpush.bf16.msrb.mxu3 %v2589_v9  ;;  %v2730_v9 = vld [vmem:[%s3578_s4 + $0x1e8] sm:$0xf0]  ;;  %v2725_v11 = vor.u32 %v3109_v2, %v2722_v5  ;;  %v3175_v48 = vld [vmem:[%s3578_s4 + $0x3b4] sm:$0xf]  ;;  %v3184_v52 = vld [vmem:[%s3578_s4 + $0x3f4] sm:$0xf0]  ;;  %v2541_v57 = vor.u32 %v3062_v44, %v2538_v45  ;;  %v2993_v58 = vor.u32 %v3183_v47, %v2992_v46 }
  0xfb   : > { %v3002_v56 = vld [vmem:[%s3578_s4 + $0x3f8] sm:$0xf0]  ;;  %v2930_v1 = vld [vmem:[%s3578_s4 + $0x370] sm:$0xf0]  ;;  %v2936_v2 = vld [vmem:[%s3578_s4 + $0x338] sm:$0xf] }
  0xfc   : > { %1075 = vmatpush.bf16.msrb.mxu0 %v2513_v16  ;;  %1088 = vmatpush.bf16.msrb.mxu1 %v2517_v20  ;;  %v2733_v16 = vor.u32 %v3110_v8, %v2730_v9  ;;  %v3094_v20 = vld [vmem:[%s3578_s4 + $0x12c] sm:$0xf]  ;;  %v3160_v5 = vld [vmem:[%s3578_s4 + $0x33c] sm:$0xf]  ;;  %v2866_v14 = vld [vmem:[%s3578_s4 + $0x2f0] sm:$0xf0] }
  0xfd   : > { %1101 = vmatpush.bf16.msrb.mxu2 %v2521_v21  ;;  %v2666_v21 = vld [vmem:[%s3578_s4 + $0x168] sm:$0xf0]  ;;  %v2938_v6 = vld [vmem:[%s3578_s4 + $0x378] sm:$0xf0]  ;;  %v2872_v15 = vld [vmem:[%s3578_s4 + $0x2b8] sm:$0xf] }
  0xfe   : > { %1114 = vmatpush.bf16.msrb.mxu3 %v2525_v24  ;;  %v2665_v24 = vor.u32 %v3102_v19, %v2664_v18  ;;  %v2669_v28 = vor.u32 %v3094_v20, %v2666_v21  ;;  %v2941_v13 = vor.u32 %v3160_v5, %v2938_v6  ;;  %v3144_v17 = vld [vmem:[%s3578_s4 + $0x2bc] sm:$0xf]  ;;  %v2672_v46 = vld [vmem:[%s3578_s4 + $0x130] sm:$0xf]  ;;  %s3006_s20 = sshll.u32 %s3445_s15, 11 }
  0xff   : > { %1076 = vmatmul.bf16.vlgmr.msrb.gmra.mxu0 %v3665_v3  ;;  %1089 = vmatmul.bf16.vlgmr.msrb.gmra.mxu1 %v3665_v3  ;;  %v2874_v18 = vld [vmem:[%s3578_s4 + $0x2f8] sm:$0xf0]  ;;  %v3103_v47 = vld [vmem:[%s3578_s4 + $0x16c] sm:$0xf0] }
 0x100   : > { %1120 = vmatpush.bf16.msra.mxu0 %v2977_v25  ;;  %1133 = vmatpush.bf16.msra.mxu1 %v2981_v26  ;;  %v2592_v25 = vld [vmem:[%s3578_s4 + $0xa0] sm:$0xf] }
 0x101   : > { %1146 = vmatpush.bf16.msra.mxu2 %v2985_v27  ;;  %1115 = vmatmul.bf16.vlgmr.msrb.gmra.mxu3 %v3665_v3  ;;  %v3085_v26 = vld [vmem:[%s3578_s4 + $0xdc] sm:$0xf0]  ;;  %v3077_v27 = vld [vmem:[%s3578_s4 + $0xa4] sm:$0xf] }
 0x102   : > { %1159 = vmatpush.bf16.msra.mxu3 %v2989_v31  ;;  %1102 = vmatmul.bf16.vlgmr.msrb.gmra.mxu2 %v3665_v3  ;;  %v3086_v31 = vld [vmem:[%s3578_s4 + $0xe4] sm:$0xf0]  ;;  %v2593_v34 = vor.u32 %v3085_v26, %v2592_v25  ;;  %v2877_v25 = vor.u32 %v3144_v17, %v2874_v18  ;;  %v2802_v26 = vld [vmem:[%s3578_s4 + $0x270] sm:$0xf0] }
 0x104   : > { %1121 = vmatpush.bf16.msra.mxu0 %v2913_v37  ;;  %1134 = vmatpush.bf16.msra.mxu1 %v2917_v38  ;;  %v2597_v37 = vor.u32 %v3077_v27, %v2594_v29  ;;  %v2601_v38 = vor.u32 %v3086_v31, %v2600_v30  ;;  %v2808_v27 = vld [vmem:[%s3578_s4 + $0x238] sm:$0xf]  ;;  %v3128_v29 = vld [vmem:[%s3578_s4 + $0x23c] sm:$0xf] }
 0x105   : > { %1147 = vmatpush.bf16.msra.mxu2 %v2921_v39  ;;  %v3061_v39 = vld [vmem:[%s3578_s4 + $0x24] sm:$0xf]  ;;  %v2810_v30 = vld [vmem:[%s3578_s4 + $0x278] sm:$0xf0] }
 0x106   : > { %1160 = vmatpush.bf16.msra.mxu3 %v2925_v43  ;;  %v3070_v43 = vld [vmem:[%s3578_s4 + $0x64] sm:$0xf0]  ;;  %v2533_v53 = vor.u32 %v3061_v39, %v2530_v40  ;;  %v2744_v39 = vld [vmem:[%s3578_s4 + $0x1b8] sm:$0xf] }
 0x107   : > { %v2537_v54 = vor.u32 %v3070_v43, %v2536_v41  ;;  %v3120_v40 = vld [vmem:[%s3578_s4 + $0x1f4] sm:$0xf0]  ;;  %v3112_v41 = vld [vmem:[%s3578_s4 + $0x1bc] sm:$0xf] }
 0x108   : > { %1122 = vmatpush.bf16.msra.mxu0 %v2849_v49  ;;  %1135 = vmatpush.bf16.msra.mxu1 %v2853_v50  ;;  %v2529_v49 = vor.u32 %v3069_v36, %v2528_v35  ;;  %v2994_v50 = vld [vmem:[%s3578_s4 + $0x3f0] sm:$0xf0]  ;;  %v3119_v35 = vld [vmem:[%s3578_s4 + $0x1ec] sm:$0xf0]  ;;  %v2745_v45 = vor.u32 %v3120_v40, %v2744_v39 }
 0x109   : > { %1148 = vmatpush.bf16.msra.mxu2 %v2857_v51  ;;  %v3000_v51 = vld [vmem:[%s3578_s4 + $0x3b8] sm:$0xf]  ;;  %v2997_v59 = vor.u32 %v3175_v48, %v2994_v50  ;;  %v3111_v36 = vld [vmem:[%s3578_s4 + $0x1b4] sm:$0xf] }
 0x10a   : > { %1161 = vmatpush.bf16.msra.mxu3 %v2861_v55  ;;  %v3176_v55 = vld [vmem:[%s3578_s4 + $0x3bc] sm:$0xf]  ;;  %v3001_v60 = vor.u32 %v3184_v52, %v3000_v51  ;;  %v3095_v48 = vld [vmem:[%s3578_s4 + $0x134] sm:$0xf]  ;;  %v2680_v51 = vld [vmem:[%s3578_s4 + $0x138] sm:$0xf] }
 0x10b   : > { %v3005_v0 = vor.u32 %v3176_v55, %v3002_v56  ;;  %v2674_v50 = vld [vmem:[%s3578_s4 + $0x170] sm:$0xf0]  ;;  %v3104_v52 = vld [vmem:[%s3578_s4 + $0x174] sm:$0xf0]  ;;  %v2673_v55 = vor.u32 %v3103_v47, %v2672_v46 }
 0x10c   : > { %1123 = vmatpush.bf16.msra.mxu0 %v2785_v61  ;;  %1136 = vmatpush.bf16.msra.mxu1 %v2789_v62  ;;  %v2928_v61 = vld [vmem:[%s3578_s4 + $0x330] sm:$0xf]  ;;  %v2677_v56 = vor.u32 %v3095_v48, %v2674_v50 }
 0x10d   : > { %1149 = vmatpush.bf16.msra.mxu2 %v2793_v63  ;;  %v3167_v62 = vld [vmem:[%s3578_s4 + $0x36c] sm:$0xf0]  ;;  %v3159_v63 = vld [vmem:[%s3578_s4 + $0x334] sm:$0xf] }
 0x10e   : > { %1162 = vmatpush.bf16.msra.mxu3 %v2797_v4  ;;  %v3168_v4 = vld [vmem:[%s3578_s4 + $0x374] sm:$0xf0]  ;;  %v2929_v7 = vor.u32 %v3167_v62, %v2928_v61  ;;  %v2933_v8 = vor.u32 %v3159_v63, %v2930_v1  ;;  %v2610_v62 = vld [vmem:[%s3578_s4 + $0xf0] sm:$0xf0]  ;;  %v3080_v1 = vld [vmem:[%s3578_s4 + $0xbc] sm:$0xf] }
 0x10f   : > { %v2937_v9 = vor.u32 %v3168_v4, %v2936_v2  ;;  %v2616_v63 = vld [vmem:[%s3578_s4 + $0xb8] sm:$0xf]  ;;  %v2618_v2 = vld [vmem:[%s3578_s4 + $0xf8] sm:$0xf0] }
 0x110   : > { %1124 = vmatpush.bf16.msra.mxu0 %v2721_v10  ;;  %1137 = vmatpush.bf16.msra.mxu1 %v2725_v11  ;;  %v2864_v10 = vld [vmem:[%s3578_s4 + $0x2b0] sm:$0xf] }
 0x111   : > { %1150 = vmatpush.bf16.msra.mxu2 %v2729_v12  ;;  %v3151_v11 = vld [vmem:[%s3578_s4 + $0x2ec] sm:$0xf0]  ;;  %v3143_v12 = vld [vmem:[%s3578_s4 + $0x2b4] sm:$0xf] }
 0x112   : > { %1163 = vmatpush.bf16.msra.mxu3 %v2733_v16  ;;  %v3152_v16 = vld [vmem:[%s3578_s4 + $0x2f4] sm:$0xf0]  ;;  %v2865_v19 = vor.u32 %v3151_v11, %v2864_v10  ;;  %v2869_v20 = vor.u32 %v3143_v12, %v2866_v14  ;;  %v2621_v10 = vor.u32 %v3080_v1, %v2618_v2  ;;  %v2546_v11 = vld [vmem:[%s3578_s4 + $0x70] sm:$0xf0]  ;;  %v3064_v14 = vld [vmem:[%s3578_s4 + $0x3c] sm:$0xf] }
 0x113   : > { %v2873_v21 = vor.u32 %v3152_v16, %v2872_v15  ;;  %v2552_v12 = vld [vmem:[%s3578_s4 + $0x38] sm:$0xf]  ;;  %v2554_v15 = vld [vmem:[%s3578_s4 + $0x78] sm:$0xf0] }
 0x114   : > { %1125 = vmatpush.bf16.msra.mxu0 %v2657_v22  ;;  %1138 = vmatpush.bf16.msra.mxu1 %v2661_v23  ;;  %v2800_v22 = vld [vmem:[%s3578_s4 + $0x230] sm:$0xf] }
 0x115   : > { %1151 = vmatpush.bf16.msra.mxu2 %v2665_v24  ;;  %v3135_v23 = vld [vmem:[%s3578_s4 + $0x26c] sm:$0xf0]  ;;  %v3127_v24 = vld [vmem:[%s3578_s4 + $0x234] sm:$0xf] }
 0x116   : > { %1164 = vmatpush.bf16.msra.mxu3 %v2669_v28  ;;  %v3136_v28 = vld [vmem:[%s3578_s4 + $0x274] sm:$0xf0]  ;;  %v2801_v31 = vor.u32 %v3135_v23, %v2800_v22  ;;  %v2805_v32 = vor.u32 %v3127_v24, %v2802_v26 }
 0x117   : > { %v2809_v33 = vor.u32 %v3136_v28, %v2808_v27 }
 0x118   : > { %1126 = vmatpush.bf16.msra.mxu0 %v2593_v34  ;;  %1139 = vmatpush.bf16.msra.mxu1 %v2597_v37  ;;  %v2736_v34 = vld [vmem:[%s3578_s4 + $0x1b0] sm:$0xf]  ;;  %v2813_v37 = vor.u32 %v3128_v29, %v2810_v30 }
 0x119   : > { %1152 = vmatpush.bf16.msra.mxu2 %v2601_v38  ;;  %v2738_v38 = vld [vmem:[%s3578_s4 + $0x1f0] sm:$0xf0]  ;;  %v2737_v43 = vor.u32 %v3119_v35, %v2736_v34 }
 0x11a   : > { %1165 = vmatpush.bf16.msra.mxu3 %v2605_v42  ;;  %v2746_v42 = vld [vmem:[%s3578_s4 + $0x1f8] sm:$0xf0]  ;;  %v2741_v44 = vor.u32 %v3111_v36, %v2738_v38 }
 0x11c   : > { %1127 = vmatpush.bf16.msra.mxu0 %v2529_v49  ;;  %1140 = vmatpush.bf16.msra.mxu1 %v2533_v53  ;;  %v2749_v49 = vor.u32 %v3112_v41, %v2746_v42  ;;  %v3096_v53 = vld [vmem:[%s3578_s4 + $0x13c] sm:$0xf] }
 0x11d   : > { %1153 = vmatpush.bf16.msra.mxu2 %v2537_v54  ;;  %v2682_v54 = vld [vmem:[%s3578_s4 + $0x178] sm:$0xf0] }
 0x11e   : > { %1166 = vmatpush.bf16.msra.mxu3 %v2541_v57  ;;  %v2681_v57 = vor.u32 %v3104_v52, %v2680_v51  ;;  %v2685_v61 = vor.u32 %v3096_v53, %v2682_v54 }
 0x11f   : > { %1128 = vmatmul.bf16.vlgmr.msra.gmra.mxu0 %v3665_v3  ;;  %1141 = vmatmul.bf16.vlgmr.msra.gmra.mxu1 %v3665_v3 }
 0x120   : > { %1172 = vmatpush.bf16.msrb.mxu0 %v2993_v58  ;;  %1185 = vmatpush.bf16.msrb.mxu1 %v2997_v59  ;;  %v2608_v58 = vld [vmem:[%s3578_s4 + $0xb0] sm:$0xf] }
 0x121   : > { %1198 = vmatpush.bf16.msrb.mxu2 %v3001_v60  ;;  %1167 = vmatmul.bf16.vlgmr.msra.gmra.mxu3 %v3665_v3  ;;  %v3087_v59 = vld [vmem:[%s3578_s4 + $0xec] sm:$0xf0]  ;;  %v3079_v60 = vld [vmem:[%s3578_s4 + $0xb4] sm:$0xf] }
 0x122   : > { %1211 = vmatpush.bf16.msrb.mxu3 %v3005_v0  ;;  %1154 = vmatmul.bf16.vlgmr.msra.gmra.mxu2 %v3665_v3  ;;  %v3088_v0 = vld [vmem:[%s3578_s4 + $0xf4] sm:$0xf0]  ;;  %v2609_v4 = vor.u32 %v3087_v59, %v2608_v58  ;;  %v2613_v5 = vor.u32 %v3079_v60, %v2610_v62 }
 0x123   : > { %v2617_v6 = vor.u32 %v3088_v0, %v2616_v63 }
 0x124   : > { %1173 = vmatpush.bf16.msrb.mxu0 %v2929_v7  ;;  %1186 = vmatpush.bf16.msrb.mxu1 %v2933_v8  ;;  %v2544_v7 = vld [vmem:[%s3578_s4 + $0x30] sm:$0xf] }
 0x125   : > { %1199 = vmatpush.bf16.msrb.mxu2 %v2937_v9  ;;  %v3071_v8 = vld [vmem:[%s3578_s4 + $0x6c] sm:$0xf0]  ;;  %v3063_v9 = vld [vmem:[%s3578_s4 + $0x34] sm:$0xf] }
 0x126   : > { %1212 = vmatpush.bf16.msrb.mxu3 %v2941_v13  ;;  %v3072_v13 = vld [vmem:[%s3578_s4 + $0x74] sm:$0xf0]  ;;  %v2545_v16 = vor.u32 %v3071_v8, %v2544_v7  ;;  %v2549_v17 = vor.u32 %v3063_v9, %v2546_v11 }
 0x127   : > { %v2553_v18 = vor.u32 %v3072_v13, %v2552_v12 }
 0x128   : > { %1174 = vmatpush.bf16.msrb.mxu0 %v2865_v19  ;;  %1187 = vmatpush.bf16.msrb.mxu1 %v2869_v20  ;;  %v2557_v19 = vor.u32 %v3064_v14, %v2554_v15 }
 0x129   : > { %1200 = vmatpush.bf16.msrb.mxu2 %v2873_v21 }
 0x12a   : > { %1213 = vmatpush.bf16.msrb.mxu3 %v2877_v25 }
 0x12c   : > { %1175 = vmatpush.bf16.msrb.mxu0 %v2801_v31  ;;  %1188 = vmatpush.bf16.msrb.mxu1 %v2805_v32 }
 0x12d   : > { %1201 = vmatpush.bf16.msrb.mxu2 %v2809_v33 }
 0x12e   : > { %1214 = vmatpush.bf16.msrb.mxu3 %v2813_v37  ;;  %v1225_v37 = vlaneseq }
 0x130   : > { %1176 = vmatpush.bf16.msrb.mxu0 %v2737_v43  ;;  %1189 = vmatpush.bf16.msrb.mxu1 %v2741_v44  ;;  %v3871_v41 = vand.u32 127, %v1225_v37  ;;  %v3874_v43 = vstv %s3006_s20 }
 0x131   : > { %1202 = vmatpush.bf16.msrb.mxu2 %v2745_v45  ;;  %5643 = vst [vmem:[#allocation15_spill] sm:$0xff] %v3874_v43 }
 0x132   : > { %1215 = vmatpush.bf16.msrb.mxu3 %v2749_v49  ;;  %v3877_v44 = vadd.s32 512, %v3871_v41  ;;  %v3880_v45 = vadd.s32 128, %v3871_v41  ;;  %v3883_v46 = vadd.s32 640, %v3871_v41  ;;  %v3886_v47 = vadd.s32 1024, %v3871_v41 }
 0x133   : > { %v1243_v49 = vadd.s32 %v3874_v43, %v3871_v41  ;;  %v3891_v50 = vadd.s32 1152, %v3871_v41  ;;  %v3898_v54 = vadd.s32 256, %v3871_v41  ;;  %v3908_v58 = vadd.s32 1536, %v3871_v41 }
 0x134   : > { %1177 = vmatpush.bf16.msrb.mxu0 %v2673_v55  ;;  %1190 = vmatpush.bf16.msrb.mxu1 %v2677_v56  ;;  %5644 = vst [vmem:[#allocation16_spill] sm:$0xff] %v3886_v47  ;;  %v1247_v52 = vadd.s32 %v3874_v43, %v3877_v44  ;;  %v1244_v53 = vadd.s32 %v3874_v43, %v3880_v45  ;;  %v3903_v56 = vadd.s32 384, %v3871_v41  ;;  %v3911_v59 = vadd.s32 768, %v3871_v41 }
 0x135   : > { %1203 = vmatpush.bf16.msrb.mxu2 %v2681_v57  ;;  %5645 = vst [vmem:[#allocation17_spill] sm:$0xff] %v3891_v50  ;;  %v1248_v55 = vadd.s32 %v3874_v43, %v3883_v46  ;;  %v1251_v57 = vadd.s32 %v3874_v43, %v3886_v47  ;;  %vm1259_vm3 = vcmp.lt.s32.totalorder %v1243_v49, 5000  ;;  %v1252_v60 = vadd.s32 %v3874_v43, %v3891_v50 }
 0x136   : > { %1216 = vmatpush.bf16.msrb.mxu3 %v2685_v61  ;;  %5646 = vst [vmem:[#allocation18_spill] sm:$0xff] %v3908_v58  ;;  %v3916_v61 = vadd.s32 1664, %v3871_v41  ;;  %vm1263_vm4 = vcmp.lt.s32.totalorder %v1247_v52, 5000  ;;  %v3919_v62 = vadd.s32 896, %v3871_v41  ;;  %v3922_v63 = vadd.s32 1280, %v3871_v41 }
 0x137   : > { %5647 = vst [vmem:[#allocation19_spill] sm:$0xff] %v3911_v59  ;;  %vm1260_vm5 = vcmp.lt.s32.totalorder %v1244_v53, 5000  ;;  %v1245_v0 = vadd.s32 %v3874_v43, %v3898_v54  ;;  %vm1264_vm6 = vcmp.lt.s32.totalorder %v1248_v55, 5000  ;;  %v3927_v1 = vadd.s32 1408, %v3871_v41 }
 0x138   : > { %1178 = vmatpush.bf16.msrb.mxu0 %v2609_v4  ;;  %1191 = vmatpush.bf16.msrb.mxu1 %v2613_v5  ;;  %5648 = vst [vmem:[#allocation20_spill] sm:$0xff] %v3916_v61  ;;  %v1246_v4 = vadd.s32 %v3874_v43, %v3903_v56  ;;  %vm1267_vm7 = vcmp.lt.s32.totalorder %v1251_v57, 5000  ;;  %v1255_v5 = vadd.s32 %v3874_v43, %v3908_v58  ;;  %vm1268_vm8 = vcmp.lt.s32.totalorder %v1252_v60, 5000 }
 0x139   : > { %1204 = vmatpush.bf16.msrb.mxu2 %v2617_v6  ;;  %5649 = vst [vmem:[#allocation21_spill] sm:$0xff] %v3919_v62  ;;  %v1249_v7 = vadd.s32 %v3874_v43, %v3911_v59  ;;  %v1256_v8 = vadd.s32 %v3874_v43, %v3916_v61  ;;  %v1250_v11 = vadd.s32 %v3874_v43, %v3919_v62  ;;  %v3954_v15 = vadd.s32 1792, %v3871_v41 }
 0x13a   : > { %1217 = vmatpush.bf16.msrb.mxu3 %v2621_v10  ;;  %5650 = vst [vmem:[#allocation22_spill] sm:$0xff] %v3922_v63  ;;  %v1253_v12 = vadd.s32 %v3874_v43, %v3922_v63  ;;  %v1254_v14 = vadd.s32 %v3874_v43, %v3927_v1  ;;  %vm1271_vm9 = vcmp.lt.s32.totalorder %v1255_v5, 5000  ;;  %vm1261_vm10 = vcmp.lt.s32.totalorder %v1245_v0, 5000 }
 0x13b   : > { %5651 = vst [vmem:[#allocation23_spill] sm:$0xff] %v3927_v1  ;;  %vm1265_vm11 = vcmp.lt.s32.totalorder %v1249_v7, 5000  ;;  %vm1272_vm12 = vcmp.lt.s32.totalorder %v1256_v8, 5000  ;;  %vm1262_vm13 = vcmp.lt.s32.totalorder %v1246_v4, 5000  ;;  %vm1266_vm14 = vcmp.lt.s32.totalorder %v1250_v11, 5000 }
 0x13c   : > { %1179 = vmatpush.bf16.msrb.mxu0 %v2545_v16  ;;  %1192 = vmatpush.bf16.msrb.mxu1 %v2549_v17  ;;  %5652 = vst [vmem:[#allocation24_spill] sm:$0xff] %v3954_v15  ;;  %vm1269_vm15 = vcmp.lt.s32.totalorder %v1253_v12, 5000  ;;  %vm1270_vm0 = vcmp.lt.s32.totalorder %v1254_v14, 5000  ;;  %v3461_v8 = vmov 0.0  }
 0x13d   : > { %1205 = vmatpush.bf16.msrb.mxu2 %v2553_v18  ;;  %v3961_v18 = vadd.s32 1920, %v3871_v41 }
 0x13e   : > { %1218 = vmatpush.bf16.msrb.mxu3 %v2557_v19 }
 0x13f   : > { %1180 = vmatmul.bf16.vlgmr.msrb.gmra.mxu0 %v3665_v3  ;;  %1193 = vmatmul.bf16.vlgmr.msrb.gmra.mxu1 %v3665_v3  ;;  %5653 = vst [vmem:[#allocation25_spill] sm:$0xff] %v3961_v18 }
 0x140   : > { %1206 = vmatmul.bf16.vlgmr.msrb.gmra.mxu2 %v3665_v3 }
 0x141   : > { %1219 = vmatmul.bf16.vlgmr.msrb.gmra.mxu3 %v3665_v3 }
 0x15c   : > { %v1025_v20 = vpop.f32.mrf.mxu0  ;;  %v1038_v21 = vpop.f32.mrf.mxu1 }
 0x15d   : > { %v3929_v2 = vsel %vm1259_vm3, %v1025_v20, -inf  ;;  %v3941_v9 = vsel %vm1260_vm5, %v1038_v21, -inf  ;;  %vm1311_vm3 = vcmask 64568  }
 0x164   : > { %v3861_v23 = vpop.f32.mrf.mxu3  ;;  %v1027_v24 = vpop.f32.mrf.mxu0 }
 0x165   : > { %v3859_v22 = vpop.f32.mrf.mxu2  ;;  %v1040_v25 = vpop.f32.mrf.mxu1 }
 0x16c   : > { %v1066_v27 = vpop.f32.mrf.mxu3 }
 0x16d   : > { %v1053_v26 = vpop.f32.mrf.mxu2  ;;  %v1257_v27 = vadd.s32 %v3874_v43, %v3954_v15 }
 0x16f   : > { %vm1273_vm1 = vcmp.lt.s32.totalorder %v1257_v27, 5000 }
 0x17c   : > { %v1077_v28 = vpop.f32.mrf.mxu0  ;;  %v1090_v29 = vpop.f32.mrf.mxu1 }
 0x17d   : > { %v3935_v6 = vsel %vm1263_vm4, %v1077_v28, -inf  ;;  %v3943_v10 = vsel %vm1264_vm6, %v1090_v29, -inf }
 0x17e   : > { %v1292_v16 = vmax.f32 %v3929_v2, %v3935_v6  ;;  %v1293_v19 = vmax.f32 %v3941_v9, %v3943_v10 }
 0x184   : > { %v3865_v31 = vpop.f32.mrf.mxu3  ;;  %v1079_v32 = vpop.f32.mrf.mxu0 }
 0x185   : > { %v3863_v30 = vpop.f32.mrf.mxu2  ;;  %v1092_v33 = vpop.f32.mrf.mxu1 }
 0x186   : > { %v1281_v28 = vsel %vm1265_vm11, %v3863_v30, -inf  ;;  %v1258_v33 = vadd.s32 %v3874_v43, %v3961_v18 }
 0x188   : > { %vm1274_vm2 = vcmp.lt.s32.totalorder %v1258_v33, 5000 }
 0x18c   : > { %v1118_v34 = vpop.f32.mrf.mxu3 }
 0x18d   : > { %v1105_v3 = vpop.f32.mrf.mxu2 }
 0x18e   : > { %v1282_v3 = vsel %vm1266_vm14, %v3865_v31, -inf }
 0x19c   : > { %v1129_v35 = vpop.f32.mrf.mxu0  ;;  %v1142_v36 = vpop.f32.mrf.mxu1 }
 0x19d   : > { %v3949_v13 = vsel %vm1267_vm7, %v1129_v35, -inf  ;;  %v3958_v17 = vsel %vm1268_vm8, %v1142_v36, -inf  ;;  %v1277_v35 = vsel %vm1261_vm10, %v3859_v22, -inf  ;;  %v1278_v36 = vsel %vm1262_vm13, %v3861_v23, -inf }
 0x19e   : > { %v1296_v20 = vmax.f32 %v1292_v16, %v3949_v13  ;;  %v1297_v24 = vmax.f32 %v1293_v19, %v3958_v17 }
 0x1a4   : > { %v3869_v39 = vpop.f32.mrf.mxu3  ;;  %v1131_v40 = vpop.f32.mrf.mxu0 }
 0x1a5   : > { %v3867_v38 = vpop.f32.mrf.mxu2  ;;  %v1144_v42 = vpop.f32.mrf.mxu1  ;;  %v1294_v40 = vmax.f32 %v1277_v35, %v1281_v28  ;;  %v1286_v30 = vsel %vm1270_vm0, %v3869_v39, -inf  ;;  %v1291_v39 = vld [vmem:[#allocation8] sm:$0xff] }
 0x1a6   : > { %v1285_v37 = vsel %vm1269_vm15, %v3867_v38, -inf }
 0x1a7   : > { %v1298_v49 = vmax.f32 %v1294_v40, %v1285_v37 }
 0x1ac   : > { %v1170_v51 = vpop.f32.mrf.mxu3 }
 0x1ad   : > { %v1157_v48 = vpop.f32.mrf.mxu2 }
 0x1ae   : > { %v1295_v48 = vmax.f32 %v1278_v36, %v1282_v3 }
 0x1b0   : > { %v1299_v52 = vmax.f32 %v1295_v48, %v1286_v30 }
 0x1bc   : > { %v1181_v21 = vpop.f32.mrf.mxu0  ;;  %v1194_v26 = vpop.f32.mrf.mxu1 }
 0x1bd   : > { %v3967_v25 = vsel %vm1271_vm9, %v1181_v21, -inf  ;;  %v1288_v32 = vsel %vm1272_vm12, %v1194_v26, -inf }
 0x1be   : > { %v1300_v29 = vmax.f32 %v1296_v20, %v3967_v25  ;;  %v1301_v34 = vmax.f32 %v1297_v24, %v1288_v32 }
 0x1c0   : > { %v1304_v42 = vmax.f32 %v1300_v29, %v1301_v34 }
 0x1c3   : > { %v1207_v51 = vpop.f32.mrf.mxu2 }
 0x1c4   : > { %v1289_v31 = vsel %vm1273_vm1, %v1207_v51, -inf  ;;  %v1220_v53 = vpop.f32.mrf.mxu3  ;;  %v1183_v55 = vpop.f32.mrf.mxu0 }
 0x1c5   : > { %v1302_v57 = vmax.f32 %v1298_v49, %v1289_v31  ;;  %v1290_v22 = vsel %vm1274_vm2, %v1220_v53, -inf  ;;  %v1196_v60 = vpop.f32.mrf.mxu1 }
 0x1c6   : > { %v1303_v0 = vmax.f32 %v1299_v52, %v1290_v22 }
 0x1c8   : > { %v1305_v23 = vmax.f32 %v1302_v57, %v1303_v0 }
 0x1ca   : > { %v1306_v4 = vmax.f32 %v1304_v42, %v1305_v23 }
 0x1cb   : > { %v1209_v38 = vpop.f32.mrf.mxu2 }
 0x1cc   : > { %v1222_v5 = vpop.f32.mrf.mxu3  ;;  %1307 = vmax.xlane.f32.xlu0 %v1306_v4 }
 0x23f   : > { %v1308_v7 = vpop.xlane.xlu0 %1307 }
 0x240   : > { %vm1309_vm4 = vcmp.gt.f32.partialorder %v1308_v7, %v1291_v39 }
 0x241   : > { %v1310_v11 = vsel %vm1309_vm4, 1.0, %v3461_v8 }
 0x242   : > { %v1312_v12 = vsel %vm1311_vm3, %v1310_v11, -inf }
 0x243   : > { %1313 = vmax.xlane.f32.xlu0 %v1312_v12 }
 0x2b6   : > { %v1314_v14 = vpop.xlane.xlu0 %1313 }
 0x2b7   : > { %v1315_v16 = vrot.slane %v1314_v14, 4 }
 0x2b9   : > { %v1316_v19 = vmax.f32 %v1314_v14, %v1315_v16 }
 0x2bb   : > { %v1317_v20 = vrot.slane %v1316_v19, 2 }
 0x2bd   : > { %v1318_v21 = vmax.f32 %v1316_v19, %v1317_v20 }
 0x2bf   : > { %v1319_v24 = vrot.slane %v1318_v21, 1 }
 0x2c1   : > { %v1320_v26 = vmax.f32 %v1318_v21, %v1319_v24 }
 0x2c3   : > { %3185 = vpush %v1320_v26 }
 0x2f4   : > { %s3186_s15 = spop %3185 }
 0x2f5   : > { %p1322_p2 = scmp.gt.f32.partialorder %s3186_s15, 0.0 }
 0x2f7   : > { %1325 = sbr.rel (!%p1322_p2) target bundleno = 3149 (0xc4d), region = 44 }
 0x2fc   : > { %v1326_v27 = vld [vmem:[#allocation8] sm:$0xff]  ;;  %v1338_v29 = vpack.c.bf16 %v3941_v9, %v3929_v2  ;;  %v1339_v34 = vpack.c.bf16 %v1278_v36, %v1277_v35  ;;  %v1340_v40 = vpack.c.bf16 %v3943_v10, %v3935_v6  ;;  %v1336_v42 = vsub.s32 2175, %v3871_v41 }
 0x2fd   : > { %v3007_v33 = vshrl.u32 %v1326_v27, 16  ;;  %vm1330_vm5 = vcmp.lt.s32.totalorder %v1326_v27, 0  ;;  %v1341_v48 = vpack.c.bf16 %v1282_v3, %v1281_v28  ;;  %v1342_v49 = vpack.c.bf16 %v3958_v17, %v3949_v13 }
 0x2fe   : > { %v1343_v53 = vpack.c.bf16 %v1286_v30, %v1285_v37  ;;  %v1344_v55 = vpack.c.bf16 %v1288_v32, %v3967_v25  ;;  %v1345_v57 = vpack.c.bf16 %v1290_v22, %v1289_v31  ;;  %v1346_v60 = vunpack.c.l.bf16 %v1338_v29 }
 0x2ff   : > { %v1331_v51 = vsub.s32 65535, %v3007_v33  ;;  %v1332_v52 = vadd.s32 32768, %v3007_v33  ;;  %v1347_v2 = vunpack.c.h.bf16 %v1338_v29  ;;  %v1348_v9 = vunpack.c.l.bf16 %v1339_v34 }
 0x300   : > { %v1349_v36 = vunpack.c.h.bf16 %v1339_v34  ;;  %v1350_v0 = vunpack.c.l.bf16 %v1340_v40  ;;  %v1351_v6 = vunpack.c.h.bf16 %v1340_v40  ;;  %v1352_v23 = vunpack.c.l.bf16 %v1341_v48 }
 0x301   : > { %v1333_v35 = vsel %vm1330_vm5, %v1331_v51, %v1332_v52  ;;  %v1353_v4 = vunpack.c.h.bf16 %v1341_v48  ;;  %v1354_v28 = vunpack.c.l.bf16 %v1342_v49  ;;  %v1355_v3 = vunpack.c.h.bf16 %v1342_v49 }
 0x302   : > { %v3008_v10 = vadd.s32 4294934528, %v1333_v35  ;;  %v1356_v38 = vunpack.c.l.bf16 %v1343_v53  ;;  %v1357_v13 = vunpack.c.h.bf16 %v1343_v53  ;;  %v1358_v17 = vunpack.c.l.bf16 %v1344_v55 }
 0x303   : > { %v1359_v37 = vunpack.c.h.bf16 %v1344_v55  ;;  %v1360_v30 = vunpack.c.l.bf16 %v1345_v57  ;;  %v1361_v25 = vunpack.c.h.bf16 %v1345_v57  ;;  %v3990_v32 = vshrl.u32 %v1346_v60, 16 }
 0x304   : > { %v1335_v5 = vmul.u32 65536, %v3008_v10  ;;  %v3992_v31 = vshrl.u32 %v1347_v2, 16  ;;  %v3994_v22 = vshrl.u32 %v1348_v9, 16  ;;  %v3996_v39 = vshrl.u32 %v1349_v36, 16 }
 0x305   : > { %v3998_v7 = vshrl.u32 %v1350_v0, 16  ;;  %v4000_v8 = vshrl.u32 %v1351_v6, 16  ;;  %v4002_v11 = vshrl.u32 %v1352_v23, 16  ;;  %v4004_v12 = vshrl.u32 %v1353_v4, 16 }
 0x306   : > { %v4006_v14 = vadd.s32 %v1336_v42, %v1335_v5  ;;  %v4008_v16 = vshrl.u32 %v1354_v28, 16  ;;  %v4010_v19 = vshrl.u32 %v1355_v3, 16  ;;  %v4012_v20 = vshrl.u32 %v1356_v38, 16 }
 0x307   : > { %v4014_v21 = vshrl.u32 %v1357_v13, 16  ;;  %v4016_v24 = vshrl.u32 %v1358_v17, 16  ;;  %v4018_v26 = vshrl.u32 %v1359_v37, 16  ;;  %v4020_v27 = vshrl.u32 %v1360_v30, 16 }
 0x308   : > { %5654 = vst [vmem:[#allocation26_spill] sm:$0xff] %v4006_v14  ;;  %v4022_v29 = vshrl.u32 %v1361_v25, 16  ;;  %vm4024_vm6 = vcmp.lt.s32.totalorder %v1346_v60, 0  ;;  %vm4028_vm7 = vcmp.lt.s32.totalorder %v1347_v2, 0  ;;  %vm4032_vm8 = vcmp.lt.s32.totalorder %v1348_v9, 0 }
 0x309   : > { %vm4036_vm9 = vcmp.lt.s32.totalorder %v1349_v36, 0  ;;  %vm4040_vm10 = vcmp.lt.s32.totalorder %v1350_v0, 0  ;;  %vm4044_vm11 = vcmp.lt.s32.totalorder %v1351_v6, 0  ;;  %vm4048_vm12 = vcmp.lt.s32.totalorder %v1352_v23, 0 }
 0x30a   : > { %vm4052_vm13 = vcmp.lt.s32.totalorder %v1353_v4, 0  ;;  %vm4056_vm14 = vcmp.lt.s32.totalorder %v1354_v28, 0  ;;  %vm4060_vm15 = vcmp.lt.s32.totalorder %v1355_v3, 0  ;;  %vm4064_vm0 = vcmp.lt.s32.totalorder %v1356_v38, 0 }
 0x30b   : > { %vm4068_vm1 = vcmp.lt.s32.totalorder %v1357_v13, 0  ;;  %vm4072_vm2 = vcmp.lt.s32.totalorder %v1358_v17, 0  ;;  %vm4076_vm3 = vcmp.lt.s32.totalorder %v1359_v37, 0  ;;  %vm4080_vm4 = vcmp.lt.s32.totalorder %v1360_v30, 0 }
 0x30c   : > { %v1426_v36 = vsub.s32 65535, %v3990_v32  ;;  %v1427_v0 = vsub.s32 65535, %v3992_v31  ;;  %v1428_v6 = vsub.s32 65535, %v3994_v22  ;;  %vm4087_vm5 = vcmp.lt.s32.totalorder %v1361_v25, 0 }
 0x30d   : > { %v1429_v23 = vsub.s32 65535, %v3996_v39  ;;  %v1430_v4 = vsub.s32 65535, %v3998_v7  ;;  %v1431_v28 = vsub.s32 65535, %v4000_v8  ;;  %v1432_v3 = vsub.s32 65535, %v4002_v11 }
 0x30e   : > { %v1433_v38 = vsub.s32 65535, %v4004_v12  ;;  %v1434_v13 = vsub.s32 65535, %v4008_v16  ;;  %v1435_v17 = vsub.s32 65535, %v4010_v19  ;;  %v1436_v5 = vsub.s32 65535, %v4012_v20 }
 0x30f   : > { %v1437_v37 = vsub.s32 65535, %v4014_v21  ;;  %v1438_v30 = vsub.s32 65535, %v4016_v24  ;;  %v1439_v25 = vsub.s32 65535, %v4018_v26  ;;  %v1440_v43 = vsub.s32 65535, %v4020_v27 }
 0x310   : > { %v1441_v14 = vsub.s32 65535, %v4022_v29  ;;  %v1442_v18 = vadd.s32 32768, %v3990_v32  ;;  %v1443_v15 = vadd.s32 32768, %v3992_v31  ;;  %v1444_v61 = vadd.s32 32768, %v3994_v22 }
 0x311   : > { %v1445_v58 = vadd.s32 32768, %v3996_v39  ;;  %v1446_v1 = vadd.s32 32768, %v3998_v7  ;;  %v1447_v63 = vadd.s32 32768, %v4000_v8  ;;  %v1448_v50 = vadd.s32 32768, %v4002_v11 }
 0x312   : > { %v1449_v47 = vadd.s32 32768, %v4004_v12  ;;  %v1450_v62 = vadd.s32 32768, %v4008_v16  ;;  %v1451_v59 = vadd.s32 32768, %v4010_v19  ;;  %v1452_v32 = vadd.s32 32768, %v4012_v20 }
 0x313   : > { %v1453_v31 = vadd.s32 32768, %v4014_v21  ;;  %v1454_v22 = vadd.s32 32768, %v4016_v24  ;;  %v1455_v39 = vadd.s32 32768, %v4018_v26  ;;  %v1456_v7 = vadd.s32 32768, %v4020_v27 }
 0x314   : > { %v1457_v8 = vadd.s32 32768, %v4022_v29  ;;  %v1458_v11 = vsel %vm4024_vm6, %v1426_v36, %v1442_v18  ;;  %v1459_v12 = vsel %vm4028_vm7, %v1427_v0, %v1443_v15  ;;  %v1460_v16 = vsel %vm4032_vm8, %v1428_v6, %v1444_v61 }
 0x315   : > { %v1461_v19 = vsel %vm4036_vm9, %v1429_v23, %v1445_v58  ;;  %v1462_v20 = vsel %vm4040_vm10, %v1430_v4, %v1446_v1  ;;  %v1463_v21 = vsel %vm4044_vm11, %v1431_v28, %v1447_v63  ;;  %v1464_v24 = vsel %vm4048_vm12, %v1432_v3, %v1448_v50 }
 0x316   : > { %v1465_v18 = vsel %vm4052_vm13, %v1433_v38, %v1449_v47  ;;  %v1466_v15 = vsel %vm4056_vm14, %v1434_v13, %v1450_v62  ;;  %v1467_v61 = vsel %vm4060_vm15, %v1435_v17, %v1451_v59  ;;  %v1468_v58 = vsel %vm4064_vm0, %v1436_v5, %v1452_v32 }
 0x317   : > { %v1469_v1 = vsel %vm4068_vm1, %v1437_v37, %v1453_v31  ;;  %v1470_v63 = vsel %vm4072_vm2, %v1438_v30, %v1454_v22  ;;  %v1471_v50 = vsel %vm4076_vm3, %v1439_v25, %v1455_v39  ;;  %v1472_v47 = vsel %vm4080_vm4, %v1440_v43, %v1456_v7  ;;  %v5687_v22 = vld [vmem:[#allocation19_spill] sm:$0xff]  ;;  %v5688_v7 = vld [vmem:[#allocation21_spill] sm:$0xff] }
 0x318   : > { %v1473_v62 = vsel %vm4087_vm5, %v1441_v14, %v1457_v8  ;;  %v3025_v26 = vadd.s32 4294934528, %v1458_v11  ;;  %v3026_v59 = vadd.s32 4294934528, %v1459_v12  ;;  %v3027_v27 = vadd.s32 4294934528, %v1460_v16  ;;  %v5689_v11 = vld [vmem:[#allocation16_spill] sm:$0xff]  ;;  %v5690_v16 = vld [vmem:[#allocation17_spill] sm:$0xff] }
 0x319   : > { %v3028_v29 = vadd.s32 4294934528, %v1461_v19  ;;  %v3029_v33 = vadd.s32 4294934528, %v1462_v20  ;;  %v3030_v34 = vadd.s32 4294934528, %v1463_v21  ;;  %v3031_v40 = vadd.s32 4294934528, %v1464_v24  ;;  %v5691_v20 = vld [vmem:[#allocation22_spill] sm:$0xff]  ;;  %v5692_v24 = vld [vmem:[#allocation23_spill] sm:$0xff] }
 0x31a   : > { %v3032_v42 = vadd.s32 4294934528, %v1465_v18  ;;  %v3033_v48 = vadd.s32 4294934528, %v1466_v15  ;;  %v3034_v49 = vadd.s32 4294934528, %v1467_v61  ;;  %v3035_v51 = vadd.s32 4294934528, %v1468_v58  ;;  %v5693_v18 = vld [vmem:[#allocation18_spill] sm:$0xff]  ;;  %v5694_v15 = vld [vmem:[#allocation20_spill] sm:$0xff] }
 0x31b   : > { %v3036_v52 = vadd.s32 4294934528, %v1469_v1  ;;  %v3037_v53 = vadd.s32 4294934528, %v1470_v63  ;;  %v3038_v55 = vadd.s32 4294934528, %v1471_v50  ;;  %v3039_v57 = vadd.s32 4294934528, %v1472_v47  ;;  %v5695_v61 = vld [vmem:[#allocation24_spill] sm:$0xff]  ;;  %v5696_v58 = vld [vmem:[#allocation25_spill] sm:$0xff] }
 0x31c   : > { %v3040_v60 = vadd.s32 4294934528, %v1473_v62  ;;  %v1490_v43 = vmul.u32 65536, %v3025_v26  ;;  %v1491_v2 = vmul.u32 65536, %v3026_v59  ;;  %v1492_v9 = vmul.u32 65536, %v3027_v27 }
 0x31d   : > { %v1493_v14 = vmul.u32 65536, %v3028_v29  ;;  %v1494_v35 = vmul.u32 65536, %v3029_v33  ;;  %v1495_v36 = vmul.u32 65536, %v3030_v34  ;;  %v1496_v0 = vmul.u32 65536, %v3031_v40 }
 0x31e   : > { %v1497_v6 = vmul.u32 65536, %v3032_v42  ;;  %v1498_v10 = vmul.u32 65536, %v3033_v48  ;;  %v1499_v23 = vmul.u32 65536, %v3034_v49  ;;  %v1500_v4 = vmul.u32 65536, %v3035_v51 }
 0x31f   : > { %v1501_v28 = vmul.u32 65536, %v3036_v52  ;;  %v1502_v3 = vmul.u32 65536, %v3037_v53  ;;  %v1503_v38 = vmul.u32 65536, %v3038_v55  ;;  %v1504_v13 = vmul.u32 65536, %v3039_v57  ;;  %v5697_v52 = vld [vmem:[#allocation26_spill] sm:$0xff] }
 0x320   : > { %v1505_v17 = vmul.u32 65536, %v3040_v60  ;;  %v1506_v5 = vsub.s32 2047, %v3871_v41  ;;  %v1507_v37 = vsub.s32 2047, %v3880_v45  ;;  %v1508_v30 = vsub.s32 2047, %v3898_v54 }
 0x321   : > { %v1509_v25 = vsub.s32 2047, %v3903_v56  ;;  %v1510_v32 = vsub.s32 2047, %v3877_v44  ;;  %v1511_v31 = vsub.s32 2047, %v3883_v46  ;;  %v1512_v39 = vsub.s32 2047, %v5687_v22 }
 0x322   : > { %v1513_v8 = vsub.s32 2047, %v5688_v7  ;;  %v1514_v12 = vsub.s32 2047, %v5689_v11  ;;  %v1515_v19 = vsub.s32 2047, %v5690_v16  ;;  %v1516_v21 = vsub.s32 2047, %v5691_v20 }
 0x323   : > { %v1517_v45 = vsub.s32 2047, %v5692_v24  ;;  %v1518_v54 = vsub.s32 2047, %v5693_v18  ;;  %v1519_v56 = vsub.s32 2047, %v5694_v15  ;;  %v1520_v44 = vsub.s32 2047, %v5695_v61 }
 0x324   : > { %v1521_v46 = vsub.s32 2047, %v5696_v58  ;;  %v4168_v1 = vadd.s32 %v1506_v5, %v1490_v43  ;;  %v4170_v63 = vadd.s32 %v1507_v37, %v1491_v2  ;;  %v4172_v50 = vadd.s32 %v1508_v30, %v1492_v9 }
 0x325   : > { %v4174_v47 = vadd.s32 %v1509_v25, %v1493_v14  ;;  %v4176_v62 = vadd.s32 %v1510_v32, %v1494_v35  ;;  %v4178_v26 = vadd.s32 %v1511_v31, %v1495_v36  ;;  %v4180_v59 = vadd.s32 %v1512_v39, %v1496_v0 }
 0x326   : > { %v4182_v27 = vadd.s32 %v1513_v8, %v1497_v6  ;;  %v4184_v29 = vadd.s32 %v1514_v12, %v1498_v10  ;;  %v4186_v33 = vadd.s32 %v1515_v19, %v1499_v23  ;;  %v4188_v34 = vadd.s32 %v1516_v21, %v1500_v4 }
 0x327   : > { %v4190_v40 = vadd.s32 %v1517_v45, %v1501_v28  ;;  %v4192_v42 = vadd.s32 %v1518_v54, %v1502_v3  ;;  %v4194_v48 = vadd.s32 %v1519_v56, %v1503_v38  ;;  %v4196_v49 = vadd.s32 %v1520_v44, %v1504_v13 }
 0x328   : > { %v4198_v51 = vadd.s32 %v1521_v46, %v1505_v17  ;;  %vm1539_vm6 = vcmp.gt.s32.totalorder %v5697_v52, %v4174_v47  ;;  %vm1541_vm7 = vcmp.gt.s32.totalorder %v4168_v1, %v4176_v62  ;;  %vm1543_vm8 = vcmp.gt.s32.totalorder %v4170_v63, %v4178_v26 }
 0x329   : > { %v1540_v53 = vsel %vm1539_vm6, %v5697_v52, %v4174_v47  ;;  %v1542_v55 = vsel %vm1541_vm7, %v4168_v1, %v4176_v62  ;;  %v1544_v57 = vsel %vm1543_vm8, %v4170_v63, %v4178_v26  ;;  %vm1545_vm9 = vcmp.gt.s32.totalorder %v4172_v50, %v4180_v59 }
 0x32a   : > { %v1546_v60 = vsel %vm1545_vm9, %v4172_v50, %v4180_v59  ;;  %vm1547_vm10 = vcmp.gt.s32.totalorder %v1540_v53, %v4182_v27  ;;  %vm1549_vm11 = vcmp.gt.s32.totalorder %v1542_v55, %v4184_v29  ;;  %vm1551_vm12 = vcmp.gt.s32.totalorder %v1544_v57, %v4186_v33 }
 0x32b   : > { %v1548_v43 = vsel %vm1547_vm10, %v1540_v53, %v4182_v27  ;;  %v1550_v2 = vsel %vm1549_vm11, %v1542_v55, %v4184_v29  ;;  %v1552_v9 = vsel %vm1551_vm12, %v1544_v57, %v4186_v33  ;;  %vm1553_vm13 = vcmp.gt.s32.totalorder %v1546_v60, %v4188_v34 }
 0x32c   : > { %v1554_v14 = vsel %vm1553_vm13, %v1546_v60, %v4188_v34  ;;  %vm1555_vm14 = vcmp.gt.s32.totalorder %v1548_v43, %v4190_v40  ;;  %vm1557_vm15 = vcmp.gt.s32.totalorder %v1550_v2, %v4192_v42  ;;  %vm1559_vm0 = vcmp.gt.s32.totalorder %v1552_v9, %v4194_v48 }
 0x32d   : > { %v1556_v35 = vsel %vm1555_vm14, %v1548_v43, %v4190_v40  ;;  %v1558_v36 = vsel %vm1557_vm15, %v1550_v2, %v4192_v42  ;;  %v1560_v0 = vsel %vm1559_vm0, %v1552_v9, %v4194_v48  ;;  %vm1561_vm1 = vcmp.gt.s32.totalorder %v1554_v14, %v4196_v49 }
 0x32e   : > { %v1562_v6 = vsel %vm1561_vm1, %v1554_v14, %v4196_v49  ;;  %vm1563_vm2 = vcmp.gt.s32.totalorder %v1556_v35, %v4198_v51 }
 0x32f   : > { %v1564_v10 = vsel %vm1563_vm2, %v1556_v35, %v4198_v51  ;;  %vm1567_vm3 = vcmp.gt.s32.totalorder %v1560_v0, %v1562_v6 }
 0x330   : > { %vm1565_vm4 = vcmp.gt.s32.totalorder %v1564_v10, %v1558_v36  ;;  %v1568_v23 = vsel %vm1567_vm3, %v1560_v0, %v1562_v6 }
 0x331   : > { %v1566_v4 = vsel %vm1565_vm4, %v1564_v10, %v1558_v36 }
 0x332   : > { %vm1569_vm5 = vcmp.gt.s32.totalorder %v1566_v4, %v1568_v23 }
 0x333   : > { %v1570_v28 = vsel %vm1569_vm5, %v1566_v4, %v1568_v23 }
 0x334   : > { %v1572_v3 = vshra.s32 %v1570_v28, 16  ;;  %v1571_v13 = vand.u32 65535, %v1570_v28 }
 0x336   : > { %v1574_v38 = vcvt.s32.f32 %v1572_v3  ;;  %v1573_v17 = vcvt.s32.f32 %v1571_v13 }
 0x338   : > { %1575 = vmax.xlane.f32.xlu0 %v1574_v38 }
 0x3ab   : > { %v1576_v5 = vpop.xlane.xlu0 %1575 }
 0x3ac   : > { %vm1577_vm6 = vcmp.eq.f32.partialorder %v1574_v38, %v1576_v5  ;;  %v1582_v30 = vcvt.f32.s32 %v1576_v5 }
 0x3ad   : > { %v1578_v37 = vsel %vm1577_vm6, %v1573_v17, -inf }
 0x3ae   : > { %1579 = vmax.xlane.f32.xlu0 %v1578_v37  ;;  %v1583_v32 = vshll.u32 %v1582_v30, 16 }
 0x421   : > { %v1580_v25 = vpop.xlane.xlu0 %1579 }
 0x422   : > { %v1581_v31 = vcvt.f32.s32 %v1580_v25 }
 0x424   : > { %v4234_v22 = vadd.s32 %v1583_v32, %v1581_v31 }
 0x426   : > { %vm1612_vm7 = vcmp.eq.s32.totalorder %v5697_v52, %v4234_v22  ;;  %vm1613_vm8 = vcmp.eq.s32.totalorder %v4168_v1, %v4234_v22  ;;  %vm1614_vm9 = vcmp.eq.s32.totalorder %v4170_v63, %v4234_v22  ;;  %vm1615_vm10 = vcmp.eq.s32.totalorder %v4172_v50, %v4234_v22 }
 0x427   : > { %vm1616_vm11 = vcmp.eq.s32.totalorder %v4174_v47, %v4234_v22  ;;  %vm1617_vm12 = vcmp.eq.s32.totalorder %v4176_v62, %v4234_v22  ;;  %vm1618_vm13 = vcmp.eq.s32.totalorder %v4178_v26, %v4234_v22  ;;  %vm1619_vm14 = vcmp.eq.s32.totalorder %v4180_v59, %v4234_v22 }
 0x428   : > { %vm1620_vm15 = vcmp.eq.s32.totalorder %v4182_v27, %v4234_v22  ;;  %vm1622_vm1 = vcmp.eq.s32.totalorder %v4186_v33, %v4234_v22  ;;  %vm1623_vm2 = vcmp.eq.s32.totalorder %v4188_v34, %v4234_v22  ;;  %vm1624_vm3 = vcmp.eq.s32.totalorder %v4190_v40, %v4234_v22 }
 0x429   : > { %vm1625_vm4 = vcmp.eq.s32.totalorder %v4192_v42, %v4234_v22  ;;  %vm1626_vm5 = vcmp.eq.s32.totalorder %v4194_v48, %v4234_v22  ;;  %vm1627_vm6 = vcmp.eq.s32.totalorder %v4196_v49, %v4234_v22  ;;  %vm1628_vm0 = vcmp.eq.s32.totalorder %v4198_v51, %v4234_v22 }
 0x42a   : > { %v4274_v39 = vsel %vm1612_vm7, 2147483648, %v5697_v52  ;;  %v4280_v7 = vsel %vm1613_vm8, 2147483648, %v4168_v1  ;;  %v4286_v8 = vsel %vm1614_vm9, 2147483648, %v4170_v63  ;;  %v4292_v11 = vsel %vm1615_vm10, 2147483648, %v4172_v50 }
 0x42b   : > { %v4298_v12 = vsel %vm1616_vm11, 2147483648, %v4174_v47  ;;  %v4304_v16 = vsel %vm1617_vm12, 2147483648, %v4176_v62  ;;  %v4310_v19 = vsel %vm1618_vm13, 2147483648, %v4178_v26  ;;  %v4316_v20 = vsel %vm1619_vm14, 2147483648, %v4180_v59 }
 0x42c   : > { %v4322_v21 = vsel %vm1620_vm15, 2147483648, %v4182_v27  ;;  %vm5698_vm7 = vcmp.eq.s32.totalorder %v4184_v29, %v4234_v22  ;;  %v4334_v45 = vsel %vm1622_vm1, 2147483648, %v4186_v33  ;;  %v4340_v18 = vsel %vm1623_vm2, 2147483648, %v4188_v34 }
 0x42d   : > { %v4328_v24 = vsel %vm5698_vm7, 2147483648, %v4184_v29  ;;  %v4346_v54 = vsel %vm1624_vm3, 2147483648, %v4190_v40  ;;  %v4352_v15 = vsel %vm1625_vm4, 2147483648, %v4192_v42  ;;  %v4358_v56 = vsel %vm1626_vm5, 2147483648, %v4194_v48 }
 0x42e   : > { %v4364_v61 = vsel %vm1627_vm6, 2147483648, %v4196_v49  ;;  %vm1646_vm8 = vcmp.gt.s32.totalorder %v4274_v39, %v4298_v12  ;;  %vm1648_vm9 = vcmp.gt.s32.totalorder %v4280_v7, %v4304_v16  ;;  %vm1650_vm10 = vcmp.gt.s32.totalorder %v4286_v8, %v4310_v19 }
 0x42f   : > { %v1647_v44 = vsel %vm1646_vm8, %v4274_v39, %v4298_v12  ;;  %v1649_v58 = vsel %vm1648_vm9, %v4280_v7, %v4304_v16  ;;  %vm1652_vm11 = vcmp.gt.s32.totalorder %v4292_v11, %v4316_v20  ;;  %v1651_v46 = vsel %vm1650_vm10, %v4286_v8, %v4310_v19 }
 0x430   : > { %v1653_v1 = vsel %vm1652_vm11, %v4292_v11, %v4316_v20  ;;  %vm1654_vm12 = vcmp.gt.s32.totalorder %v1647_v44, %v4322_v21  ;;  %vm1656_vm13 = vcmp.gt.s32.totalorder %v1649_v58, %v4328_v24  ;;  %vm1658_vm14 = vcmp.gt.s32.totalorder %v1651_v46, %v4334_v45 }
 0x431   : > { %v1655_v63 = vsel %vm1654_vm12, %v1647_v44, %v4322_v21  ;;  %v1657_v50 = vsel %vm1656_vm13, %v1649_v58, %v4328_v24  ;;  %vm1660_vm15 = vcmp.gt.s32.totalorder %v1653_v1, %v4340_v18  ;;  %v1659_v47 = vsel %vm1658_vm14, %v1651_v46, %v4334_v45 }
 0x432   : > { %v1661_v62 = vsel %vm1660_vm15, %v1653_v1, %v4340_v18  ;;  %vm1662_vm1 = vcmp.gt.s32.totalorder %v1655_v63, %v4346_v54  ;;  %vm1664_vm2 = vcmp.gt.s32.totalorder %v1657_v50, %v4352_v15  ;;  %v4396_v26 = vsel %vm1628_vm0, 2147483648, %v4198_v51 }
 0x433   : > { %v1663_v59 = vsel %vm1662_vm1, %v1655_v63, %v4346_v54  ;;  %vm1666_vm3 = vcmp.gt.s32.totalorder %v1659_v47, %v4358_v56  ;;  %vm1668_vm4 = vcmp.gt.s32.totalorder %v1661_v62, %v4364_v61  ;;  %v1665_v33 = vsel %vm1664_vm2, %v1657_v50, %v4352_v15 }
 0x434   : > { %v1667_v27 = vsel %vm1666_vm3, %v1659_v47, %v4358_v56  ;;  %v1669_v29 = vsel %vm1668_vm4, %v1661_v62, %v4364_v61  ;;  %vm1670_vm5 = vcmp.gt.s32.totalorder %v1663_v59, %v4396_v26  ;;  %v1587_v14 = vshra.s32 %v4234_v22, 16 }
 0x435   : > { %v1671_v34 = vsel %vm1670_vm5, %v1663_v59, %v4396_v26  ;;  %vm1674_vm6 = vcmp.gt.s32.totalorder %v1667_v27, %v1669_v29 }
 0x436   : > { %vm1672_vm7 = vcmp.gt.s32.totalorder %v1671_v34, %v1665_v33  ;;  %v1675_v42 = vsel %vm1674_vm6, %v1667_v27, %v1669_v29  ;;  %v4415_v36 = vadd.s32 32768, %v1587_v14 }
 0x437   : > { %v1673_v40 = vsel %vm1672_vm7, %v1671_v34, %v1665_v33 }
 0x438   : > { %vm1676_vm0 = vcmp.gt.s32.totalorder %v1673_v40, %v1675_v42 }
 0x439   : > { %v1677_v48 = vsel %vm1676_vm0, %v1673_v40, %v1675_v42 }
 0x43a   : > { %v1679_v49 = vshra.s32 %v1677_v48, 16  ;;  %v1678_v52 = vand.u32 65535, %v1677_v48 }
 0x43c   : > { %v1681_v51 = vcvt.s32.f32 %v1679_v49  ;;  %v1680_v55 = vcvt.s32.f32 %v1678_v52 }
 0x43e   : > { %1682 = vmax.xlane.f32.xlu1 %v1681_v51 }
 0x4b1   : > { %v1683_v53 = vpop.xlane.xlu1 %1682 }
 0x4b2   : > { %vm1684_vm8 = vcmp.eq.f32.partialorder %v1681_v51, %v1683_v53  ;;  %v1689_v60 = vcvt.f32.s32 %v1683_v53 }
 0x4b3   : > { %v1685_v57 = vsel %vm1684_vm8, %v1680_v55, -inf }
 0x4b4   : > { %1686 = vmax.xlane.f32.xlu1 %v1685_v57  ;;  %v1690_v2 = vshll.u32 %v1689_v60, 16 }
 0x527   : > { %v1687_v43 = vpop.xlane.xlu1 %1686 }
 0x528   : > { %v1688_v9 = vcvt.f32.s32 %v1687_v43 }
 0x52a   : > { %v4407_v35 = vadd.s32 %v1690_v2, %v1688_v9 }
 0x52c   : > { %vm1719_vm9 = vcmp.eq.s32.totalorder %v4274_v39, %v4407_v35  ;;  %vm1720_vm10 = vcmp.eq.s32.totalorder %v4280_v7, %v4407_v35  ;;  %vm1721_vm11 = vcmp.eq.s32.totalorder %v4286_v8, %v4407_v35  ;;  %vm1722_vm12 = vcmp.eq.s32.totalorder %v4292_v11, %v4407_v35 }
 0x52d   : > { %vm1723_vm13 = vcmp.eq.s32.totalorder %v4298_v12, %v4407_v35  ;;  %vm1724_vm14 = vcmp.eq.s32.totalorder %v4304_v16, %v4407_v35  ;;  %vm1725_vm15 = vcmp.eq.s32.totalorder %v4310_v19, %v4407_v35  ;;  %vm1726_vm1 = vcmp.eq.s32.totalorder %v4316_v20, %v4407_v35 }
 0x52e   : > { %vm1727_vm2 = vcmp.eq.s32.totalorder %v4322_v21, %v4407_v35  ;;  %vm1729_vm4 = vcmp.eq.s32.totalorder %v4334_v45, %v4407_v35  ;;  %vm1730_vm5 = vcmp.eq.s32.totalorder %v4340_v18, %v4407_v35  ;;  %vm1731_vm6 = vcmp.eq.s32.totalorder %v4346_v54, %v4407_v35 }
 0x52f   : > { %vm1732_vm7 = vcmp.eq.s32.totalorder %v4352_v15, %v4407_v35  ;;  %vm1733_vm0 = vcmp.eq.s32.totalorder %v4358_v56, %v4407_v35  ;;  %vm1734_vm8 = vcmp.eq.s32.totalorder %v4364_v61, %v4407_v35  ;;  %vm1735_vm3 = vcmp.eq.s32.totalorder %v4396_v26, %v4407_v35 }
 0x530   : > { %v4449_v0 = vsel %vm1719_vm9, 2147483648, %v4274_v39  ;;  %v4455_v6 = vsel %vm1720_vm10, 2147483648, %v4280_v7  ;;  %v4461_v10 = vsel %vm1721_vm11, 2147483648, %v4286_v8  ;;  %v4467_v23 = vsel %vm1722_vm12, 2147483648, %v4292_v11 }
 0x531   : > { %v4473_v4 = vsel %vm1723_vm13, 2147483648, %v4298_v12  ;;  %v4479_v28 = vsel %vm1724_vm14, 2147483648, %v4304_v16  ;;  %v4485_v3 = vsel %vm1725_vm15, 2147483648, %v4310_v19  ;;  %v4491_v38 = vsel %vm1726_vm1, 2147483648, %v4316_v20 }
 0x532   : > { %v4497_v13 = vsel %vm1727_vm2, 2147483648, %v4322_v21  ;;  %vm5699_vm9 = vcmp.eq.s32.totalorder %v4328_v24, %v4407_v35  ;;  %v4509_v5 = vsel %vm1729_vm4, 2147483648, %v4334_v45  ;;  %v4515_v37 = vsel %vm1730_vm5, 2147483648, %v4340_v18 }
 0x533   : > { %v4503_v17 = vsel %vm5699_vm9, 2147483648, %v4328_v24  ;;  %v4521_v30 = vsel %vm1731_vm6, 2147483648, %v4346_v54  ;;  %v4527_v25 = vsel %vm1732_vm7, 2147483648, %v4352_v15  ;;  %v4533_v32 = vsel %vm1733_vm0, 2147483648, %v4358_v56 }
 0x534   : > { %v4539_v31 = vsel %vm1734_vm8, 2147483648, %v4364_v61  ;;  %vm1753_vm10 = vcmp.gt.s32.totalorder %v4449_v0, %v4473_v4  ;;  %vm1755_vm11 = vcmp.gt.s32.totalorder %v4455_v6, %v4479_v28  ;;  %vm1757_vm12 = vcmp.gt.s32.totalorder %v4461_v10, %v4485_v3 }
 0x535   : > { %v1754_v39 = vsel %vm1753_vm10, %v4449_v0, %v4473_v4  ;;  %v1756_v7 = vsel %vm1755_vm11, %v4455_v6, %v4479_v28  ;;  %vm1759_vm13 = vcmp.gt.s32.totalorder %v4467_v23, %v4491_v38  ;;  %v1758_v8 = vsel %vm1757_vm12, %v4461_v10, %v4485_v3 }
 0x536   : > { %v1760_v11 = vsel %vm1759_vm13, %v4467_v23, %v4491_v38  ;;  %vm1761_vm14 = vcmp.gt.s32.totalorder %v1754_v39, %v4497_v13  ;;  %vm1763_vm15 = vcmp.gt.s32.totalorder %v1756_v7, %v4503_v17  ;;  %vm1765_vm1 = vcmp.gt.s32.totalorder %v1758_v8, %v4509_v5 }
 0x537   : > { %v1762_v12 = vsel %vm1761_vm14, %v1754_v39, %v4497_v13  ;;  %v1764_v16 = vsel %vm1763_vm15, %v1756_v7, %v4503_v17  ;;  %vm1767_vm2 = vcmp.gt.s32.totalorder %v1760_v11, %v4515_v37  ;;  %v1766_v19 = vsel %vm1765_vm1, %v1758_v8, %v4509_v5 }
 0x538   : > { %v1768_v20 = vsel %vm1767_vm2, %v1760_v11, %v4515_v37  ;;  %vm1769_vm4 = vcmp.gt.s32.totalorder %v1762_v12, %v4521_v30  ;;  %vm1771_vm5 = vcmp.gt.s32.totalorder %v1764_v16, %v4527_v25  ;;  %v4571_v21 = vsel %vm1735_vm3, 2147483648, %v4396_v26 }
 0x539   : > { %v1770_v24 = vsel %vm1769_vm4, %v1762_v12, %v4521_v30  ;;  %vm1773_vm6 = vcmp.gt.s32.totalorder %v1766_v19, %v4533_v32  ;;  %vm1775_vm7 = vcmp.gt.s32.totalorder %v1768_v20, %v4539_v31  ;;  %vm5633_vm8 = vcmp.eq.s32.totalorder %v3871_v41, 0 }
 0x53a   : > { %v1774_v45 = vsel %vm1773_vm6, %v1766_v19, %v4533_v32  ;;  %v1776_v18 = vsel %vm1775_vm7, %v1768_v20, %v4539_v31  ;;  %vm1777_vm0 = vcmp.gt.s32.totalorder %v1770_v24, %v4571_v21  ;;  %v1772_v54 = vsel %vm1771_vm5, %v1764_v16, %v4527_v25 }
 0x53b   : > { %v1778_v15 = vsel %vm1777_vm0, %v1770_v24, %v4571_v21  ;;  %vm1781_vm3 = vcmp.gt.s32.totalorder %v1774_v45, %v1776_v18  ;;  %v1694_v56 = vshra.s32 %v4407_v35, 16  ;;  %vm5632_vm10 = vcmp.eq.s32.totalorder %v3871_v41, 1 }
 0x53c   : > { %vm1779_vm9 = vcmp.gt.s32.totalorder %v1778_v15, %v1772_v54  ;;  %v1782_v44 = vsel %vm1781_vm3, %v1774_v45, %v1776_v18  ;;  %v1610_v46 = vsel %vm5633_vm8, %v4415_v36, 127 }
 0x53d   : > { %v1780_v61 = vsel %vm1779_vm9, %v1778_v15, %v1772_v54  ;;  %v1695_v58 = vadd.s32 32768, %v1694_v56 }
 0x53e   : > { %vm1783_vm11 = vcmp.gt.s32.totalorder %v1780_v61, %v1782_v44 }
 0x53f   : > { %v1784_v1 = vsel %vm1783_vm11, %v1780_v61, %v1782_v44  ;;  %v4589_v63 = vsel %vm5632_vm10, %v1695_v58, %v1610_v46 }
 0x540   : > { %v1786_v50 = vshra.s32 %v1784_v1, 16  ;;  %v1785_v62 = vand.u32 65535, %v1784_v1 }
 0x542   : > { %v1788_v47 = vcvt.s32.f32 %v1786_v50  ;;  %v1787_v59 = vcvt.s32.f32 %v1785_v62 }
 0x544   : > { %1789 = vmax.xlane.f32.xlu2 %v1788_v47 }
 0x5b7   : > { %v1790_v26 = vpop.xlane.xlu2 %1789 }
 0x5b8   : > { %vm1791_vm12 = vcmp.eq.f32.partialorder %v1788_v47, %v1790_v26  ;;  %v1796_v29 = vcvt.f32.s32 %v1790_v26 }
 0x5b9   : > { %v1792_v27 = vsel %vm1791_vm12, %v1787_v59, -inf }
 0x5ba   : > { %1793 = vmax.xlane.f32.xlu2 %v1792_v27  ;;  %v1797_v34 = vshll.u32 %v1796_v29, 16 }
 0x62d   : > { %v1794_v33 = vpop.xlane.xlu2 %1793 }
 0x62e   : > { %v1795_v40 = vcvt.f32.s32 %v1794_v33 }
 0x630   : > { %v4591_v42 = vadd.s32 %v1797_v34, %v1795_v40 }
 0x632   : > { %vm1826_vm13 = vcmp.eq.s32.totalorder %v4449_v0, %v4591_v42  ;;  %vm1827_vm14 = vcmp.eq.s32.totalorder %v4455_v6, %v4591_v42  ;;  %vm1828_vm15 = vcmp.eq.s32.totalorder %v4461_v10, %v4591_v42  ;;  %vm1829_vm1 = vcmp.eq.s32.totalorder %v4467_v23, %v4591_v42 }
 0x633   : > { %vm1830_vm2 = vcmp.eq.s32.totalorder %v4473_v4, %v4591_v42  ;;  %vm1831_vm4 = vcmp.eq.s32.totalorder %v4479_v28, %v4591_v42  ;;  %vm1832_vm5 = vcmp.eq.s32.totalorder %v4485_v3, %v4591_v42  ;;  %vm1833_vm6 = vcmp.eq.s32.totalorder %v4491_v38, %v4591_v42 }
 0x634   : > { %vm1834_vm7 = vcmp.eq.s32.totalorder %v4497_v13, %v4591_v42  ;;  %vm1836_vm3 = vcmp.eq.s32.totalorder %v4509_v5, %v4591_v42  ;;  %vm1837_vm9 = vcmp.eq.s32.totalorder %v4515_v37, %v4591_v42  ;;  %vm1838_vm11 = vcmp.eq.s32.totalorder %v4521_v30, %v4591_v42 }
 0x635   : > { %vm1839_vm12 = vcmp.eq.s32.totalorder %v4527_v25, %v4591_v42  ;;  %vm1840_vm10 = vcmp.eq.s32.totalorder %v4533_v32, %v4591_v42  ;;  %vm1841_vm8 = vcmp.eq.s32.totalorder %v4539_v31, %v4591_v42  ;;  %vm1842_vm0 = vcmp.eq.s32.totalorder %v4571_v21, %v4591_v42 }
 0x636   : > { %v4631_v48 = vsel %vm1826_vm13, 2147483648, %v4449_v0  ;;  %v4637_v49 = vsel %vm1827_vm14, 2147483648, %v4455_v6  ;;  %v4643_v51 = vsel %vm1828_vm15, 2147483648, %v4461_v10  ;;  %v4649_v52 = vsel %vm1829_vm1, 2147483648, %v4467_v23 }
 0x637   : > { %v4655_v53 = vsel %vm1830_vm2, 2147483648, %v4473_v4  ;;  %v4661_v55 = vsel %vm1831_vm4, 2147483648, %v4479_v28  ;;  %v4667_v57 = vsel %vm1832_vm5, 2147483648, %v4485_v3  ;;  %v4673_v60 = vsel %vm1833_vm6, 2147483648, %v4491_v38 }
 0x638   : > { %v4679_v43 = vsel %vm1834_vm7, 2147483648, %v4497_v13  ;;  %vm5700_vm13 = vcmp.eq.s32.totalorder %v4503_v17, %v4591_v42  ;;  %v4691_v9 = vsel %vm1836_vm3, 2147483648, %v4509_v5  ;;  %v4697_v14 = vsel %vm1837_vm9, 2147483648, %v4515_v37 }
 0x639   : > { %v4685_v2 = vsel %vm5700_vm13, 2147483648, %v4503_v17  ;;  %v4703_v36 = vsel %vm1838_vm11, 2147483648, %v4521_v30  ;;  %v4709_v0 = vsel %vm1839_vm12, 2147483648, %v4527_v25  ;;  %v4715_v6 = vsel %vm1840_vm10, 2147483648, %v4533_v32 }
 0x63a   : > { %v4721_v10 = vsel %vm1841_vm8, 2147483648, %v4539_v31  ;;  %vm1860_vm14 = vcmp.gt.s32.totalorder %v4631_v48, %v4655_v53  ;;  %vm1862_vm15 = vcmp.gt.s32.totalorder %v4637_v49, %v4661_v55  ;;  %vm1864_vm10 = vcmp.gt.s32.totalorder %v4643_v51, %v4667_v57 }
 0x63b   : > { %v1861_v23 = vsel %vm1860_vm14, %v4631_v48, %v4655_v53  ;;  %v1863_v4 = vsel %vm1862_vm15, %v4637_v49, %v4661_v55  ;;  %vm1866_vm1 = vcmp.gt.s32.totalorder %v4649_v52, %v4673_v60  ;;  %v1865_v28 = vsel %vm1864_vm10, %v4643_v51, %v4667_v57 }
 0x63c   : > { %v1867_v3 = vsel %vm1866_vm1, %v4649_v52, %v4673_v60  ;;  %vm1868_vm8 = vcmp.gt.s32.totalorder %v1861_v23, %v4679_v43  ;;  %vm1870_vm2 = vcmp.gt.s32.totalorder %v1863_v4, %v4685_v2  ;;  %vm1872_vm4 = vcmp.gt.s32.totalorder %v1865_v28, %v4691_v9 }
 0x63d   : > { %v1869_v38 = vsel %vm1868_vm8, %v1861_v23, %v4679_v43  ;;  %v1871_v13 = vsel %vm1870_vm2, %v1863_v4, %v4685_v2  ;;  %vm1874_vm5 = vcmp.gt.s32.totalorder %v1867_v3, %v4697_v14  ;;  %v1873_v17 = vsel %vm1872_vm4, %v1865_v28, %v4691_v9 }
 0x63e   : > { %v1875_v5 = vsel %vm1874_vm5, %v1867_v3, %v4697_v14  ;;  %vm1876_vm6 = vcmp.gt.s32.totalorder %v1869_v38, %v4703_v36  ;;  %vm1878_vm7 = vcmp.gt.s32.totalorder %v1871_v13, %v4709_v0  ;;  %v4753_v37 = vsel %vm1842_vm0, 2147483648, %v4571_v21 }
 0x63f   : > { %v1877_v30 = vsel %vm1876_vm6, %v1869_v38, %v4703_v36  ;;  %vm1880_vm3 = vcmp.gt.s32.totalorder %v1873_v17, %v4715_v6  ;;  %vm1882_vm9 = vcmp.gt.s32.totalorder %v1875_v5, %v4721_v10  ;;  %v1879_v31 = vsel %vm1878_vm7, %v1871_v13, %v4709_v0 }
 0x640   : > { %v1881_v25 = vsel %vm1880_vm3, %v1873_v17, %v4715_v6  ;;  %v1883_v32 = vsel %vm1882_vm9, %v1875_v5, %v4721_v10  ;;  %vm1884_vm11 = vcmp.gt.s32.totalorder %v1877_v30, %v4753_v37  ;;  %v1801_v7 = vshra.s32 %v4591_v42, 16 }
 0x641   : > { %v1885_v39 = vsel %vm1884_vm11, %v1877_v30, %v4753_v37  ;;  %vm1888_vm12 = vcmp.gt.s32.totalorder %v1881_v25, %v1883_v32  ;;  %vm5634_vm13 = vcmp.eq.s32.totalorder %v3871_v41, 2 }
 0x642   : > { %vm1886_vm0 = vcmp.gt.s32.totalorder %v1885_v39, %v1879_v31  ;;  %v1889_v11 = vsel %vm1888_vm12, %v1881_v25, %v1883_v32  ;;  %v1802_v12 = vadd.s32 32768, %v1801_v7 }
 0x643   : > { %v1887_v8 = vsel %vm1886_vm0, %v1885_v39, %v1879_v31 }
 0x644   : > { %vm1890_vm14 = vcmp.gt.s32.totalorder %v1887_v8, %v1889_v11  ;;  %v4768_v19 = vsel %vm5634_vm13, %v1802_v12, %v4589_v63 }
 0x645   : > { %v1891_v16 = vsel %vm1890_vm14, %v1887_v8, %v1889_v11 }
 0x646   : > { %v1893_v20 = vshra.s32 %v1891_v16, 16  ;;  %v1892_v24 = vand.u32 65535, %v1891_v16 }
 0x648   : > { %v1895_v21 = vcvt.s32.f32 %v1893_v20  ;;  %v1894_v18 = vcvt.s32.f32 %v1892_v24 }
 0x64a   : > { %1896 = vmax.xlane.f32.xlu0 %v1895_v21 }
 0x6bd   : > { %v1897_v45 = vpop.xlane.xlu0 %1896 }
 0x6be   : > { %vm1898_vm15 = vcmp.eq.f32.partialorder %v1895_v21, %v1897_v45  ;;  %v1903_v15 = vcvt.f32.s32 %v1897_v45 }
 0x6bf   : > { %v1899_v54 = vsel %vm1898_vm15, %v1894_v18, -inf }
 0x6c0   : > { %1900 = vmax.xlane.f32.xlu1 %v1899_v54  ;;  %v1904_v61 = vshll.u32 %v1903_v15, 16 }
 0x733   : > { %v1901_v56 = vpop.xlane.xlu1 %1900 }
 0x734   : > { %v1902_v44 = vcvt.f32.s32 %v1901_v56 }
 0x736   : > { %v4770_v58 = vadd.s32 %v1904_v61, %v1902_v44 }
 0x738   : > { %vm1933_vm10 = vcmp.eq.s32.totalorder %v4631_v48, %v4770_v58  ;;  %vm1934_vm1 = vcmp.eq.s32.totalorder %v4637_v49, %v4770_v58  ;;  %vm1935_vm8 = vcmp.eq.s32.totalorder %v4643_v51, %v4770_v58  ;;  %vm1936_vm2 = vcmp.eq.s32.totalorder %v4649_v52, %v4770_v58 }
 0x739   : > { %vm1937_vm4 = vcmp.eq.s32.totalorder %v4655_v53, %v4770_v58  ;;  %vm1938_vm5 = vcmp.eq.s32.totalorder %v4661_v55, %v4770_v58  ;;  %vm1939_vm6 = vcmp.eq.s32.totalorder %v4667_v57, %v4770_v58  ;;  %vm1940_vm7 = vcmp.eq.s32.totalorder %v4673_v60, %v4770_v58 }
 0x73a   : > { %vm1941_vm3 = vcmp.eq.s32.totalorder %v4679_v43, %v4770_v58  ;;  %vm1943_vm11 = vcmp.eq.s32.totalorder %v4691_v9, %v4770_v58  ;;  %vm1944_vm12 = vcmp.eq.s32.totalorder %v4697_v14, %v4770_v58  ;;  %vm1945_vm0 = vcmp.eq.s32.totalorder %v4703_v36, %v4770_v58 }
 0x73b   : > { %vm1946_vm14 = vcmp.eq.s32.totalorder %v4709_v0, %v4770_v58  ;;  %vm1947_vm15 = vcmp.eq.s32.totalorder %v4715_v6, %v4770_v58  ;;  %vm1948_vm13 = vcmp.eq.s32.totalorder %v4721_v10, %v4770_v58  ;;  %vm1949_vm9 = vcmp.eq.s32.totalorder %v4753_v37, %v4770_v58 }
 0x73c   : > { %v4810_v46 = vsel %vm1933_vm10, 2147483648, %v4631_v48  ;;  %v4816_v1 = vsel %vm1934_vm1, 2147483648, %v4637_v49  ;;  %v4822_v63 = vsel %vm1935_vm8, 2147483648, %v4643_v51  ;;  %v4828_v50 = vsel %vm1936_vm2, 2147483648, %v4649_v52 }
 0x73d   : > { %v4834_v47 = vsel %vm1937_vm4, 2147483648, %v4655_v53  ;;  %v4840_v62 = vsel %vm1938_vm5, 2147483648, %v4661_v55  ;;  %v4846_v26 = vsel %vm1939_vm6, 2147483648, %v4667_v57  ;;  %v4852_v59 = vsel %vm1940_vm7, 2147483648, %v4673_v60 }
 0x73e   : > { %v4858_v27 = vsel %vm1941_vm3, 2147483648, %v4679_v43  ;;  %vm5701_vm10 = vcmp.eq.s32.totalorder %v4685_v2, %v4770_v58  ;;  %v4870_v33 = vsel %vm1943_vm11, 2147483648, %v4691_v9  ;;  %v4876_v34 = vsel %vm1944_vm12, 2147483648, %v4697_v14 }
 0x73f   : > { %v4864_v29 = vsel %vm5701_vm10, 2147483648, %v4685_v2  ;;  %v4882_v40 = vsel %vm1945_vm0, 2147483648, %v4703_v36  ;;  %v4888_v48 = vsel %vm1946_vm14, 2147483648, %v4709_v0  ;;  %v4894_v49 = vsel %vm1947_vm15, 2147483648, %v4715_v6 }
 0x740   : > { %v4900_v51 = vsel %vm1948_vm13, 2147483648, %v4721_v10  ;;  %vm1967_vm1 = vcmp.gt.s32.totalorder %v4810_v46, %v4834_v47  ;;  %vm1969_vm8 = vcmp.gt.s32.totalorder %v4816_v1, %v4840_v62  ;;  %vm1971_vm2 = vcmp.gt.s32.totalorder %v4822_v63, %v4846_v26 }
 0x741   : > { %v1968_v52 = vsel %vm1967_vm1, %v4810_v46, %v4834_v47  ;;  %v1970_v53 = vsel %vm1969_vm8, %v4816_v1, %v4840_v62  ;;  %vm1973_vm4 = vcmp.gt.s32.totalorder %v4828_v50, %v4852_v59  ;;  %v1972_v55 = vsel %vm1971_vm2, %v4822_v63, %v4846_v26 }
 0x742   : > { %v1974_v57 = vsel %vm1973_vm4, %v4828_v50, %v4852_v59  ;;  %vm1975_vm13 = vcmp.gt.s32.totalorder %v1968_v52, %v4858_v27  ;;  %vm1977_vm5 = vcmp.gt.s32.totalorder %v1970_v53, %v4864_v29  ;;  %vm1979_vm6 = vcmp.gt.s32.totalorder %v1972_v55, %v4870_v33 }
 0x743   : > { %v1976_v60 = vsel %vm1975_vm13, %v1968_v52, %v4858_v27  ;;  %v1978_v43 = vsel %vm1977_vm5, %v1970_v53, %v4864_v29  ;;  %vm1981_vm7 = vcmp.gt.s32.totalorder %v1974_v57, %v4876_v34  ;;  %v1980_v2 = vsel %vm1979_vm6, %v1972_v55, %v4870_v33 }
 0x744   : > { %v1982_v9 = vsel %vm1981_vm7, %v1974_v57, %v4876_v34  ;;  %vm1983_vm3 = vcmp.gt.s32.totalorder %v1976_v60, %v4882_v40  ;;  %vm1985_vm11 = vcmp.gt.s32.totalorder %v1978_v43, %v4888_v48  ;;  %v4932_v14 = vsel %vm1949_vm9, 2147483648, %v4753_v37 }
 0x745   : > { %v1984_v36 = vsel %vm1983_vm3, %v1976_v60, %v4882_v40  ;;  %vm1987_vm12 = vcmp.gt.s32.totalorder %v1980_v2, %v4894_v49  ;;  %vm1989_vm0 = vcmp.gt.s32.totalorder %v1982_v9, %v4900_v51  ;;  %v1986_v10 = vsel %vm1985_vm11, %v1978_v43, %v4888_v48 }
 0x746   : > { %v1988_v0 = vsel %vm1987_vm12, %v1980_v2, %v4894_v49  ;;  %v1990_v6 = vsel %vm1989_vm0, %v1982_v9, %v4900_v51  ;;  %vm1991_vm14 = vcmp.gt.s32.totalorder %v1984_v36, %v4932_v14  ;;  %v1908_v4 = vshra.s32 %v4770_v58, 16 }
 0x747   : > { %v1992_v23 = vsel %vm1991_vm14, %v1984_v36, %v4932_v14  ;;  %vm1995_vm15 = vcmp.gt.s32.totalorder %v1988_v0, %v1990_v6  ;;  %vm5635_vm10 = vcmp.eq.s32.totalorder %v3871_v41, 3 }
 0x748   : > { %vm1993_vm9 = vcmp.gt.s32.totalorder %v1992_v23, %v1986_v10  ;;  %v1996_v3 = vsel %vm1995_vm15, %v1988_v0, %v1990_v6  ;;  %v1909_v38 = vadd.s32 32768, %v1908_v4 }
 0x749   : > { %v1994_v28 = vsel %vm1993_vm9, %v1992_v23, %v1986_v10 }
 0x74a   : > { %vm1997_vm1 = vcmp.gt.s32.totalorder %v1994_v28, %v1996_v3  ;;  %v4947_v17 = vsel %vm5635_vm10, %v1909_v38, %v4768_v19 }
 0x74b   : > { %v1998_v13 = vsel %vm1997_vm1, %v1994_v28, %v1996_v3 }
 0x74c   : > { %v2000_v5 = vshra.s32 %v1998_v13, 16  ;;  %v1999_v30 = vand.u32 65535, %v1998_v13 }
 0x74e   : > { %v2002_v37 = vcvt.s32.f32 %v2000_v5  ;;  %v2001_v32 = vcvt.s32.f32 %v1999_v30 }
 0x750   : > { %2003 = vmax.xlane.f32.xlu2 %v2002_v37 }
 0x7c3   : > { %v2004_v25 = vpop.xlane.xlu2 %2003 }
 0x7c4   : > { %vm2005_vm8 = vcmp.eq.f32.partialorder %v2002_v37, %v2004_v25  ;;  %v2010_v39 = vcvt.f32.s32 %v2004_v25 }
 0x7c5   : > { %v2006_v31 = vsel %vm2005_vm8, %v2001_v32, -inf }
 0x7c6   : > { %2007 = vmax.xlane.f32.xlu0 %v2006_v31  ;;  %v2011_v8 = vshll.u32 %v2010_v39, 16 }
 0x839   : > { %v2008_v7 = vpop.xlane.xlu0 %2007 }
 0x83a   : > { %v2009_v11 = vcvt.f32.s32 %v2008_v7 }
 0x83c   : > { %v4949_v12 = vadd.s32 %v2011_v8, %v2009_v11 }
 0x83e   : > { %vm2040_vm2 = vcmp.eq.s32.totalorder %v4810_v46, %v4949_v12  ;;  %vm2041_vm4 = vcmp.eq.s32.totalorder %v4816_v1, %v4949_v12  ;;  %vm2042_vm13 = vcmp.eq.s32.totalorder %v4822_v63, %v4949_v12  ;;  %vm2043_vm5 = vcmp.eq.s32.totalorder %v4828_v50, %v4949_v12 }
 0x83f   : > { %vm2044_vm6 = vcmp.eq.s32.totalorder %v4834_v47, %v4949_v12  ;;  %vm2045_vm7 = vcmp.eq.s32.totalorder %v4840_v62, %v4949_v12  ;;  %vm2046_vm3 = vcmp.eq.s32.totalorder %v4846_v26, %v4949_v12  ;;  %vm2047_vm11 = vcmp.eq.s32.totalorder %v4852_v59, %v4949_v12 }
 0x840   : > { %vm2048_vm12 = vcmp.eq.s32.totalorder %v4858_v27, %v4949_v12  ;;  %vm2050_vm14 = vcmp.eq.s32.totalorder %v4870_v33, %v4949_v12  ;;  %vm2051_vm15 = vcmp.eq.s32.totalorder %v4876_v34, %v4949_v12  ;;  %vm2052_vm9 = vcmp.eq.s32.totalorder %v4882_v40, %v4949_v12 }
 0x841   : > { %vm2053_vm1 = vcmp.eq.s32.totalorder %v4888_v48, %v4949_v12  ;;  %vm2054_vm8 = vcmp.eq.s32.totalorder %v4894_v49, %v4949_v12  ;;  %vm2055_vm10 = vcmp.eq.s32.totalorder %v4900_v51, %v4949_v12  ;;  %vm2056_vm0 = vcmp.eq.s32.totalorder %v4932_v14, %v4949_v12 }
 0x842   : > { %v4989_v16 = vsel %vm2040_vm2, 2147483648, %v4810_v46  ;;  %v4995_v19 = vsel %vm2041_vm4, 2147483648, %v4816_v1  ;;  %v5001_v20 = vsel %vm2042_vm13, 2147483648, %v4822_v63  ;;  %v5007_v21 = vsel %vm2043_vm5, 2147483648, %v4828_v50 }
 0x843   : > { %v5013_v24 = vsel %vm2044_vm6, 2147483648, %v4834_v47  ;;  %v5019_v45 = vsel %vm2045_vm7, 2147483648, %v4840_v62  ;;  %v5025_v18 = vsel %vm2046_vm3, 2147483648, %v4846_v26  ;;  %v5031_v54 = vsel %vm2047_vm11, 2147483648, %v4852_v59 }
 0x844   : > { %v5037_v15 = vsel %vm2048_vm12, 2147483648, %v4858_v27  ;;  %vm5702_vm2 = vcmp.eq.s32.totalorder %v4864_v29, %v4949_v12  ;;  %v5049_v61 = vsel %vm2050_vm14, 2147483648, %v4870_v33  ;;  %v5055_v44 = vsel %vm2051_vm15, 2147483648, %v4876_v34 }
 0x845   : > { %v5043_v56 = vsel %vm5702_vm2, 2147483648, %v4864_v29  ;;  %v5061_v46 = vsel %vm2052_vm9, 2147483648, %v4882_v40  ;;  %v5067_v1 = vsel %vm2053_vm1, 2147483648, %v4888_v48  ;;  %v5073_v63 = vsel %vm2054_vm8, 2147483648, %v4894_v49 }
 0x846   : > { %v5079_v50 = vsel %vm2055_vm10, 2147483648, %v4900_v51  ;;  %vm2074_vm4 = vcmp.gt.s32.totalorder %v4989_v16, %v5013_v24  ;;  %vm2076_vm13 = vcmp.gt.s32.totalorder %v4995_v19, %v5019_v45  ;;  %vm2078_vm5 = vcmp.gt.s32.totalorder %v5001_v20, %v5025_v18 }
 0x847   : > { %v2075_v47 = vsel %vm2074_vm4, %v4989_v16, %v5013_v24  ;;  %v2077_v62 = vsel %vm2076_vm13, %v4995_v19, %v5019_v45  ;;  %vm2080_vm6 = vcmp.gt.s32.totalorder %v5007_v21, %v5031_v54  ;;  %v2079_v26 = vsel %vm2078_vm5, %v5001_v20, %v5025_v18 }
 0x848   : > { %v2081_v59 = vsel %vm2080_vm6, %v5007_v21, %v5031_v54  ;;  %vm2082_vm10 = vcmp.gt.s32.totalorder %v2075_v47, %v5037_v15  ;;  %vm2084_vm7 = vcmp.gt.s32.totalorder %v2077_v62, %v5043_v56  ;;  %vm2086_vm3 = vcmp.gt.s32.totalorder %v2079_v26, %v5049_v61 }
 0x849   : > { %v2083_v27 = vsel %vm2082_vm10, %v2075_v47, %v5037_v15  ;;  %v2085_v29 = vsel %vm2084_vm7, %v2077_v62, %v5043_v56  ;;  %vm2088_vm11 = vcmp.gt.s32.totalorder %v2081_v59, %v5055_v44  ;;  %v2087_v33 = vsel %vm2086_vm3, %v2079_v26, %v5049_v61 }
 0x84a   : > { %v2089_v34 = vsel %vm2088_vm11, %v2081_v59, %v5055_v44  ;;  %vm2090_vm12 = vcmp.gt.s32.totalorder %v2083_v27, %v5061_v46  ;;  %vm2092_vm14 = vcmp.gt.s32.totalorder %v2085_v29, %v5067_v1  ;;  %v5111_v40 = vsel %vm2056_vm0, 2147483648, %v4932_v14 }
 0x84b   : > { %v2091_v48 = vsel %vm2090_vm12, %v2083_v27, %v5061_v46  ;;  %vm2094_vm15 = vcmp.gt.s32.totalorder %v2087_v33, %v5073_v63  ;;  %vm2096_vm9 = vcmp.gt.s32.totalorder %v2089_v34, %v5079_v50  ;;  %v2093_v52 = vsel %vm2092_vm14, %v2085_v29, %v5067_v1 }
 0x84c   : > { %v2095_v49 = vsel %vm2094_vm15, %v2087_v33, %v5073_v63  ;;  %v2097_v51 = vsel %vm2096_vm9, %v2089_v34, %v5079_v50  ;;  %vm2098_vm1 = vcmp.gt.s32.totalorder %v2091_v48, %v5111_v40  ;;  %v2015_v55 = vshra.s32 %v4949_v12, 16 }
 0x84d   : > { %v2099_v53 = vsel %vm2098_vm1, %v2091_v48, %v5111_v40  ;;  %vm2102_vm8 = vcmp.gt.s32.totalorder %v2095_v49, %v2097_v51  ;;  %vm5636_vm2 = vcmp.eq.s32.totalorder %v3871_v41, 4 }
 0x84e   : > { %vm2100_vm0 = vcmp.gt.s32.totalorder %v2099_v53, %v2093_v52  ;;  %v2103_v60 = vsel %vm2102_vm8, %v2095_v49, %v2097_v51  ;;  %v2016_v43 = vadd.s32 32768, %v2015_v55  ;;  %v1585_v51 = vand.u32 65535, %v4234_v22  ;;  %v5310_v55 = vld [vmem:[#allocation9] sm:$0xff] }
 0x84f   : > { %v2101_v57 = vsel %vm2100_vm0, %v2099_v53, %v2093_v52 }
 0x850   : > { %vm2104_vm4 = vcmp.gt.s32.totalorder %v2101_v57, %v2103_v60  ;;  %v5126_v9 = vsel %vm5636_vm2, %v2016_v43, %v4947_v17  ;;  %v5308_v52 = vsub.s32 2175, %v1585_v51 }
 0x851   : > { %v2105_v2 = vsel %vm2104_vm4, %v2101_v57, %v2103_v60  ;;  %v1906_v57 = vand.u32 65535, %v4770_v58 }
 0x852   : > { %v2107_v14 = vshra.s32 %v2105_v2, 16  ;;  %v2106_v0 = vand.u32 65535, %v2105_v2 }
 0x854   : > { %v2109_v36 = vcvt.s32.f32 %v2107_v14  ;;  %v2108_v10 = vcvt.s32.f32 %v2106_v0  ;;  %v5318_v14 = vsub.s32 2175, %v1906_v57 }
 0x856   : > { %2110 = vmax.xlane.f32.xlu1 %v2109_v36 }
 0x8c9   : > { %v2111_v6 = vpop.xlane.xlu1 %2110 }
 0x8ca   : > { %vm2112_vm13 = vcmp.eq.f32.partialorder %v2109_v36, %v2111_v6  ;;  %v2117_v4 = vcvt.f32.s32 %v2111_v6 }
 0x8cb   : > { %v2113_v23 = vsel %vm2112_vm13, %v2108_v10, -inf }
 0x8cc   : > { %2114 = vmax.xlane.f32.xlu2 %v2113_v23  ;;  %v2118_v3 = vshll.u32 %v2117_v4, 16 }
 0x93f   : > { %v2115_v28 = vpop.xlane.xlu2 %2114 }
 0x940   : > { %v2116_v38 = vcvt.f32.s32 %v2115_v28 }
 0x942   : > { %v5128_v13 = vadd.s32 %v2118_v3, %v2116_v38 }
 0x944   : > { %vm2147_vm5 = vcmp.eq.s32.totalorder %v4989_v16, %v5128_v13  ;;  %vm2148_vm6 = vcmp.eq.s32.totalorder %v4995_v19, %v5128_v13  ;;  %vm2149_vm10 = vcmp.eq.s32.totalorder %v5001_v20, %v5128_v13  ;;  %vm2150_vm7 = vcmp.eq.s32.totalorder %v5007_v21, %v5128_v13 }
 0x945   : > { %vm2151_vm3 = vcmp.eq.s32.totalorder %v5013_v24, %v5128_v13  ;;  %vm2152_vm11 = vcmp.eq.s32.totalorder %v5019_v45, %v5128_v13  ;;  %vm2153_vm12 = vcmp.eq.s32.totalorder %v5025_v18, %v5128_v13  ;;  %vm2154_vm14 = vcmp.eq.s32.totalorder %v5031_v54, %v5128_v13 }
 0x946   : > { %vm2155_vm15 = vcmp.eq.s32.totalorder %v5037_v15, %v5128_v13  ;;  %vm2157_vm1 = vcmp.eq.s32.totalorder %v5049_v61, %v5128_v13  ;;  %vm2158_vm8 = vcmp.eq.s32.totalorder %v5055_v44, %v5128_v13  ;;  %vm2159_vm0 = vcmp.eq.s32.totalorder %v5061_v46, %v5128_v13 }
 0x947   : > { %vm2160_vm4 = vcmp.eq.s32.totalorder %v5067_v1, %v5128_v13  ;;  %vm2161_vm13 = vcmp.eq.s32.totalorder %v5073_v63, %v5128_v13  ;;  %vm2162_vm2 = vcmp.eq.s32.totalorder %v5079_v50, %v5128_v13  ;;  %vm2163_vm9 = vcmp.eq.s32.totalorder %v5111_v40, %v5128_v13 }
 0x948   : > { %v5168_v17 = vsel %vm2147_vm5, 2147483648, %v4989_v16  ;;  %v5174_v5 = vsel %vm2148_vm6, 2147483648, %v4995_v19  ;;  %v5180_v37 = vsel %vm2149_vm10, 2147483648, %v5001_v20  ;;  %v5186_v30 = vsel %vm2150_vm7, 2147483648, %v5007_v21 }
 0x949   : > { %v5192_v25 = vsel %vm2151_vm3, 2147483648, %v5013_v24  ;;  %v5198_v32 = vsel %vm2152_vm11, 2147483648, %v5019_v45  ;;  %v5204_v31 = vsel %vm2153_vm12, 2147483648, %v5025_v18  ;;  %v5210_v39 = vsel %vm2154_vm14, 2147483648, %v5031_v54 }
 0x94a   : > { %v5216_v7 = vsel %vm2155_vm15, 2147483648, %v5037_v15  ;;  %vm5703_vm5 = vcmp.eq.s32.totalorder %v5043_v56, %v5128_v13  ;;  %v5228_v11 = vsel %vm2157_vm1, 2147483648, %v5049_v61  ;;  %v5234_v16 = vsel %vm2158_vm8, 2147483648, %v5055_v44 }
 0x94b   : > { %v5222_v8 = vsel %vm5703_vm5, 2147483648, %v5043_v56  ;;  %v5240_v19 = vsel %vm2159_vm0, 2147483648, %v5061_v46  ;;  %v5246_v20 = vsel %vm2160_vm4, 2147483648, %v5067_v1  ;;  %v5252_v21 = vsel %vm2161_vm13, 2147483648, %v5073_v63 }
 0x94c   : > { %v5258_v24 = vsel %vm2162_vm2, 2147483648, %v5079_v50  ;;  %vm2181_vm6 = vcmp.gt.s32.totalorder %v5168_v17, %v5192_v25  ;;  %vm2183_vm10 = vcmp.gt.s32.totalorder %v5174_v5, %v5198_v32  ;;  %vm2185_vm7 = vcmp.gt.s32.totalorder %v5180_v37, %v5204_v31 }
 0x94d   : > { %v2182_v45 = vsel %vm2181_vm6, %v5168_v17, %v5192_v25  ;;  %v2184_v18 = vsel %vm2183_vm10, %v5174_v5, %v5198_v32  ;;  %vm2187_vm3 = vcmp.gt.s32.totalorder %v5186_v30, %v5210_v39  ;;  %v2186_v54 = vsel %vm2185_vm7, %v5180_v37, %v5204_v31 }
 0x94e   : > { %v2188_v15 = vsel %vm2187_vm3, %v5186_v30, %v5210_v39  ;;  %vm2189_vm2 = vcmp.gt.s32.totalorder %v2182_v45, %v5216_v7  ;;  %vm2191_vm11 = vcmp.gt.s32.totalorder %v2184_v18, %v5222_v8  ;;  %vm2193_vm12 = vcmp.gt.s32.totalorder %v2186_v54, %v5228_v11 }
 0x94f   : > { %v2190_v56 = vsel %vm2189_vm2, %v2182_v45, %v5216_v7  ;;  %v2192_v61 = vsel %vm2191_vm11, %v2184_v18, %v5222_v8  ;;  %vm2195_vm14 = vcmp.gt.s32.totalorder %v2188_v15, %v5234_v16  ;;  %v2194_v44 = vsel %vm2193_vm12, %v2186_v54, %v5228_v11 }
 0x950   : > { %v2196_v46 = vsel %vm2195_vm14, %v2188_v15, %v5234_v16  ;;  %vm2197_vm15 = vcmp.gt.s32.totalorder %v2190_v56, %v5240_v19  ;;  %vm2199_vm1 = vcmp.gt.s32.totalorder %v2192_v61, %v5246_v20  ;;  %v5290_v1 = vsel %vm2163_vm9, 2147483648, %v5111_v40 }
 0x951   : > { %v2198_v63 = vsel %vm2197_vm15, %v2190_v56, %v5240_v19  ;;  %vm2201_vm8 = vcmp.gt.s32.totalorder %v2194_v44, %v5252_v21  ;;  %vm2203_vm0 = vcmp.gt.s32.totalorder %v2196_v46, %v5258_v24  ;;  %v2200_v62 = vsel %vm2199_vm1, %v2192_v61, %v5246_v20 }
 0x952   : > { %v2202_v50 = vsel %vm2201_vm8, %v2194_v44, %v5252_v21  ;;  %v2204_v47 = vsel %vm2203_vm0, %v2196_v46, %v5258_v24  ;;  %vm2205_vm4 = vcmp.gt.s32.totalorder %v2198_v63, %v5290_v1  ;;  %v2122_v59 = vshra.s32 %v5128_v13, 16 }
 0x953   : > { %v2206_v26 = vsel %vm2205_vm4, %v2198_v63, %v5290_v1  ;;  %vm2209_vm13 = vcmp.gt.s32.totalorder %v2202_v50, %v2204_v47  ;;  %vm5637_vm5 = vcmp.eq.s32.totalorder %v3871_v41, 5  ;;  %vm1589_vm10 = vcmp.eq.s32.totalorder %v3871_v41, %v5308_v52 }
 0x954   : > { %vm2207_vm9 = vcmp.gt.s32.totalorder %v2206_v26, %v2200_v62  ;;  %v2210_v29 = vsel %vm2209_vm13, %v2202_v50, %v2204_v47  ;;  %v2123_v33 = vadd.s32 32768, %v2122_v59  ;;  %vm1910_vm3 = vcmp.eq.s32.totalorder %v3871_v41, %v5318_v14 }
 0x955   : > { %v2208_v27 = vsel %vm2207_vm9, %v2206_v26, %v2200_v62  ;;  %v5326_v0 = vsel %vm1910_vm3, %v5310_v55, 4294967295  ;;  %v1692_v45 = vand.u32 65535, %v4407_v35 }
 0x956   : > { %vm2211_vm6 = vcmp.gt.s32.totalorder %v2208_v27, %v2210_v29  ;;  %v5305_v40 = vsel %vm5637_vm5, %v2123_v33, %v5126_v9  ;;  %v5316_v9 = vsel %vm1589_vm10, %v5310_v55, 4294967295  ;;  %v1913_v58 = vshra.s32 %v5326_v0, 16 }
 0x957   : > { %v2212_v34 = vsel %vm2211_vm6, %v2208_v27, %v2210_v29  ;;  %v1592_v22 = vshra.s32 %v5316_v9, 16 }
 0x958   : > { %v2214_v48 = vshra.s32 %v2212_v34, 16  ;;  %v2213_v53 = vand.u32 65535, %v2212_v34  ;;  %v5330_v6 = vcvt.s32.f32 %v1913_v58 }
 0x959   : > { %v5323_v36 = vcvt.s32.f32 %v1592_v22 }
 0x95a   : > { %v2216_v49 = vcvt.s32.f32 %v2214_v48  ;;  %v2215_v43 = vcvt.s32.f32 %v2213_v53 }
 0x95c   : > { %2217 = vmax.xlane.f32.xlu0 %v2216_v49 }
 0x9cf   : > { %v2218_v60 = vpop.xlane.xlu0 %2217 }
 0x9d0   : > { %vm2219_vm7 = vcmp.eq.f32.partialorder %v2216_v49, %v2218_v60  ;;  %v2224_v10 = vcvt.f32.s32 %v2218_v60 }
 0x9d1   : > { %v2220_v2 = vsel %vm2219_vm7, %v2215_v43, -inf }
 0x9d2   : > { %2221 = vmax.xlane.f32.xlu1 %v2220_v2  ;;  %v2225_v4 = vshll.u32 %v2224_v10, 16  ;;  %v2013_v2 = vand.u32 65535, %v4949_v12 }
 0x9d4   : > { %v5465_v10 = vsub.s32 2175, %v2013_v2 }
 0x9da   : > { %1595 = vmax.xlane.f32.xlu1 %v5323_v36 }
 0x9e2   : > { %1916 = vmax.xlane.f32.xlu1 %v5330_v6 }
 0xa45   : > { %v2222_v23 = vpop.xlane.xlu1 %2221 }
 0xa46   : > { %v2223_v28 = vcvt.f32.s32 %v2222_v23 }
 0xa48   : > { %v5333_v3 = vadd.s32 %v2225_v4, %v2223_v28 }
 0xa4a   : > { %v2227_v38 = vand.u32 65535, %v5333_v3  ;;  %vm2254_vm2 = vcmp.eq.s32.totalorder %v5168_v17, %v5333_v3  ;;  %vm2255_vm11 = vcmp.eq.s32.totalorder %v5174_v5, %v5333_v3  ;;  %vm2256_vm12 = vcmp.eq.s32.totalorder %v5180_v37, %v5333_v3 }
 0xa4b   : > { %vm2257_vm14 = vcmp.eq.s32.totalorder %v5186_v30, %v5333_v3  ;;  %vm2258_vm15 = vcmp.eq.s32.totalorder %v5192_v25, %v5333_v3  ;;  %vm2259_vm1 = vcmp.eq.s32.totalorder %v5198_v32, %v5333_v3  ;;  %vm2260_vm8 = vcmp.eq.s32.totalorder %v5204_v31, %v5333_v3 }
 0xa4c   : > { %v5341_v18 = vsub.s32 2175, %v2227_v38  ;;  %vm2261_vm0 = vcmp.eq.s32.totalorder %v5210_v39, %v5333_v3  ;;  %vm2262_vm4 = vcmp.eq.s32.totalorder %v5216_v7, %v5333_v3  ;;  %vm2263_vm9 = vcmp.eq.s32.totalorder %v5222_v8, %v5333_v3 }
 0xa4d   : > { %vm2266_vm7 = vcmp.eq.s32.totalorder %v5240_v19, %v5333_v3  ;;  %vm2267_vm3 = vcmp.eq.s32.totalorder %v5246_v20, %v5333_v3  ;;  %vm2268_vm5 = vcmp.eq.s32.totalorder %v5252_v21, %v5333_v3  ;;  %vm2269_vm6 = vcmp.eq.s32.totalorder %v5258_v24, %v5333_v3 }
 0xa4e   : > { %vm2231_vm13 = vcmp.eq.s32.totalorder %v3871_v41, %v5341_v18  ;;  %vm2270_vm10 = vcmp.eq.s32.totalorder %v5290_v1, %v5333_v3  ;;  %v2271_v56 = vsel %vm2254_vm2, 2147483648, %v5168_v17  ;;  %v2272_v61 = vsel %vm2255_vm11, 2147483648, %v5174_v5 }
 0xa4f   : > { %v5366_v54 = vsel %vm2231_vm13, %v5310_v55, 4294967295  ;;  %v2273_v44 = vsel %vm2256_vm12, 2147483648, %v5180_v37  ;;  %v2275_v46 = vsel %vm2258_vm15, 2147483648, %v5192_v25  ;;  %v2276_v17 = vsel %vm2259_vm1, 2147483648, %v5198_v32 }
 0xa50   : > { %v2234_v15 = vshra.s32 %v5366_v54, 16  ;;  %v2274_v5 = vsel %vm2257_vm14, 2147483648, %v5186_v30  ;;  %v2277_v37 = vsel %vm2260_vm8, 2147483648, %v5204_v31  ;;  %v2278_v25 = vsel %vm2261_vm0, 2147483648, %v5210_v39 }
 0xa51   : > { %v2279_v32 = vsel %vm2262_vm4, 2147483648, %v5216_v7  ;;  %v2280_v30 = vsel %vm2263_vm9, 2147483648, %v5222_v8  ;;  %vm5704_vm2 = vcmp.eq.s32.totalorder %v5228_v11, %v5333_v3  ;;  %vm5705_vm11 = vcmp.eq.s32.totalorder %v5234_v16, %v5333_v3 }
 0xa52   : > { %v5399_v63 = vcvt.s32.f32 %v2234_v15  ;;  %v2281_v31 = vsel %vm5704_vm2, 2147483648, %v5228_v11  ;;  %v2282_v39 = vsel %vm5705_vm11, 2147483648, %v5234_v16  ;;  %v2283_v7 = vsel %vm2266_vm7, 2147483648, %v5240_v19 }
 0xa53   : > { %v2284_v8 = vsel %vm2267_vm3, 2147483648, %v5246_v20  ;;  %vm2288_vm12 = vcmp.gt.s32.totalorder %v2271_v56, %v2275_v46  ;;  %vm2290_vm14 = vcmp.gt.s32.totalorder %v2272_v61, %v2276_v17  ;;  %vm2292_vm15 = vcmp.gt.s32.totalorder %v2273_v44, %v2277_v37 }
 0xa54   : > { %2237 = vmax.xlane.f32.xlu1 %v5399_v63  ;;  %v2289_v11 = vsel %vm2288_vm12, %v2271_v56, %v2275_v46  ;;  %v2291_v50 = vsel %vm2290_vm14, %v2272_v61, %v2276_v17  ;;  %vm2294_vm1 = vcmp.gt.s32.totalorder %v2274_v5, %v2278_v25  ;;  %v2285_v16 = vsel %vm2268_vm5, 2147483648, %v5252_v21 }
 0xa55   : > { %v2293_v47 = vsel %vm2292_vm15, %v2273_v44, %v2277_v37  ;;  %v2295_v62 = vsel %vm2294_vm1, %v2274_v5, %v2278_v25  ;;  %vm2296_vm8 = vcmp.gt.s32.totalorder %v2289_v11, %v2279_v32  ;;  %vm2298_vm0 = vcmp.gt.s32.totalorder %v2291_v50, %v2280_v30 }
 0xa56   : > { %v2297_v19 = vsel %vm2296_vm8, %v2289_v11, %v2279_v32  ;;  %vm2300_vm4 = vcmp.gt.s32.totalorder %v2293_v47, %v2281_v31  ;;  %vm2302_vm13 = vcmp.gt.s32.totalorder %v2295_v62, %v2282_v39  ;;  %v2286_v20 = vsel %vm2269_vm6, 2147483648, %v5258_v24 }
 0xa57   : > { %v2299_v26 = vsel %vm2298_vm0, %v2291_v50, %v2280_v30  ;;  %v2301_v59 = vsel %vm2300_vm4, %v2293_v47, %v2281_v31  ;;  %v2303_v27 = vsel %vm2302_vm13, %v2295_v62, %v2282_v39  ;;  %vm2304_vm9 = vcmp.gt.s32.totalorder %v2297_v19, %v2283_v7  ;;  %v5496_v50 = vpop.xlane.xlu1 %1595 }
 0xa58   : > { %vm2306_vm7 = vcmp.gt.s32.totalorder %v2299_v26, %v2284_v8  ;;  %vm2308_vm3 = vcmp.gt.s32.totalorder %v2301_v59, %v2285_v16  ;;  %vm2310_vm2 = vcmp.gt.s32.totalorder %v2303_v27, %v2286_v20  ;;  %v2287_v21 = vsel %vm2270_vm10, 2147483648, %v5290_v1 }
 0xa59   : > { %v2305_v29 = vsel %vm2304_vm9, %v2297_v19, %v2283_v7  ;;  %v2309_v33 = vsel %vm2308_vm3, %v2301_v59, %v2285_v16  ;;  %v2311_v34 = vsel %vm2310_vm2, %v2303_v27, %v2286_v20  ;;  %v2307_v48 = vsel %vm2306_vm7, %v2299_v26, %v2284_v8 }
 0xa5a   : > { %vm2312_vm5 = vcmp.gt.s32.totalorder %v2305_v29, %v2287_v21  ;;  %vm2316_vm11 = vcmp.gt.s32.totalorder %v2309_v33, %v2311_v34  ;;  %v5452_v24 = vsub.s32 2175, %v1692_v45  ;;  %v2229_v51 = vshra.s32 %v5333_v3, 16 }
 0xa5b   : > { %v2313_v49 = vsel %vm2312_vm5, %v2305_v29, %v2287_v21  ;;  %v2317_v57 = vsel %vm2316_vm11, %v2309_v33, %v2311_v34  ;;  %vm2251_vm12 = vcmp.eq.s32.totalorder %v3871_v41, 6  ;;  %vm2017_vm15 = vcmp.eq.s32.totalorder %v3871_v41, %v5465_v10 }
 0xa5c   : > { %vm2314_vm6 = vcmp.gt.s32.totalorder %v2313_v49, %v2307_v48  ;;  %v2230_v1 = vadd.s32 32768, %v2229_v51  ;;  %vm1696_vm10 = vcmp.eq.s32.totalorder %v3871_v41, %v5452_v24  ;;  %v2018_v28 = vsel %vm2017_vm15, %v5310_v55, 4294967295 }
 0xa5d   : > { %v2315_v53 = vsel %vm2314_vm6, %v2313_v49, %v2307_v48  ;;  %v1697_v58 = vsel %vm1696_vm10, %v5310_v55, 4294967295  ;;  %v2020_v12 = vshra.s32 %v2018_v28, 16  ;;  %v2120_v15 = vand.u32 65535, %v5128_v13 }
 0xa5e   : > { %vm2318_vm14 = vcmp.gt.s32.totalorder %v2315_v53, %v2317_v57  ;;  %v5462_v35 = vsel %vm2251_vm12, %v2230_v1, %v5305_v40  ;;  %v1699_v23 = vshra.s32 %v1697_v58, 16  ;;  %v1799_v40 = vand.u32 65535, %v4591_v42 }
 0xa5f   : > { %v2319_v60 = vsel %vm2318_vm14, %v2315_v53, %v2317_v57  ;;  %v2022_v3 = vcvt.s32.f32 %v2020_v12  ;;  %v5479_v17 = vsub.s32 2175, %v2120_v15  ;;  %v1698_v5 = vand.u32 65535, %v1697_v58  ;;  %v5502_v20 = vpop.xlane.xlu1 %1916 }
 0xa60   : > { %v2321_v43 = vshra.s32 %v2319_v60, 16  ;;  %v1701_v4 = vcvt.s32.f32 %v1699_v23  ;;  %v5471_v38 = vsub.s32 2175, %v1799_v40  ;;  %v2320_v45 = vand.u32 65535, %v2319_v60  ;;  %v5706_v23 = vld [vmem:[#allocation15_spill] sm:$0xff] }
 0xa61   : > { %vm2124_vm0 = vcmp.eq.s32.totalorder %v3871_v41, %v5479_v17  ;;  %v1700_v25 = vcvt.s32.f32 %v1698_v5  ;;  %v2019_v31 = vand.u32 65535, %v2018_v28  ;;  %v1591_v47 = vand.u32 65535, %v5316_v9 }
 0xa62   : > { %v2323_v22 = vcvt.s32.f32 %v2321_v43  ;;  %vm1803_vm1 = vcmp.eq.s32.totalorder %v3871_v41, %v5471_v38  ;;  %v2322_v61 = vcvt.s32.f32 %v2320_v45  ;;  %v5487_v30 = vsel %vm2124_vm0, %v5310_v55, 4294967295 }
 0xa63   : > { %v5477_v46 = vsel %vm1803_vm1, %v5310_v55, 4294967295  ;;  %v2127_v39 = vshra.s32 %v5487_v30, 16  ;;  %v2021_v8 = vcvt.s32.f32 %v2019_v31  ;;  %vm1597_vm9 = vcmp.eq.f32.partialorder %v5323_v36, %v5496_v50 }
 0xa64   : > { %2324 = vmax.xlane.f32.xlu2 %v2323_v22  ;;  %v1806_v42 = vshra.s32 %v5477_v46, 16  ;;  %v1593_v62 = vcvt.s32.f32 %v1591_v47  ;;  %v1912_v26 = vand.u32 65535, %v5326_v0  ;;  %vm1918_vm7 = vcmp.eq.f32.partialorder %v5330_v6, %v5502_v20 }
 0xa65   : > { %v5493_v11 = vcvt.s32.f32 %v2127_v39  ;;  %v2233_v9 = vand.u32 65535, %v5366_v54  ;;  %v3042_v60 = vadd.s32 4294967168, %v5452_v24  ;;  %vm2358_vm2 = vcmp.eq.s32.totalorder %v3871_v41, 7 }
 0xa66   : > { %v5484_v32 = vcvt.s32.f32 %v1806_v42  ;;  %v1598_v19 = vsel %vm1597_vm9, %v1593_v62, -inf  ;;  %v1914_v59 = vcvt.s32.f32 %v1912_v26  ;;  %vm1712_vm11 = vcmp.lt.s32.totalorder %v5452_v24, 128 }
 0xa67   : > { %v2235_v36 = vcvt.s32.f32 %v2233_v9  ;;  %v1602_v5 = vcvt.f32.s32 %v5496_v50  ;;  %v3041_v24 = vadd.s32 4294967168, %v5308_v52  ;;  %vm1605_vm15 = vcmp.lt.s32.totalorder %v5308_v52, 128 }
 0xa68   : > { %v1919_v27 = vsel %vm1918_vm7, %v1914_v59, -inf  ;;  %vm5707_vm1 = vcmp.eq.s32.totalorder %v3871_v41, 0  ;;  %vm2033_vm9 = vcmp.lt.s32.totalorder %v5465_v10, 128  ;;  %vm5709_vm7 = vcmp.eq.s32.totalorder %v3871_v41, 2 }
 0xa69   : > { %v1607_v39 = vadd.s32 %v3041_v24, %v5706_v23 }
 0xa6c   : > { %1702 = vmax.xlane.f32.xlu2 %v1701_v4 }
 0xa74   : > { %2023 = vmax.xlane.f32.xlu2 %v2022_v3 }
 0xac7   : > { %v5507_v21 = vpop.xlane.xlu1 %2237 }
 0xac8   : > { %vm2239_vm3 = vcmp.eq.f32.partialorder %v5399_v63, %v5507_v21 }
 0xac9   : > { %v2240_v29 = vsel %vm2239_vm3, %v2235_v36, -inf  ;;  %vm5710_vm3 = vcmp.eq.s32.totalorder %v3871_v41, 3 }
 0xad7   : > { %v2325_v56 = vpop.xlane.xlu2 %2324 }
 0xad8   : > { %vm2326_vm8 = vcmp.eq.f32.partialorder %v2323_v22, %v2325_v56  ;;  %v2331_v33 = vcvt.f32.s32 %v2325_v56 }
 0xad9   : > { %v2327_v44 = vsel %vm2326_vm8, %v2322_v61, -inf  ;;  %vm5708_vm8 = vcmp.eq.s32.totalorder %v3871_v41, 1 }
 0xada   : > { %2328 = vmax.xlane.f32.xlu0 %v2327_v44  ;;  %v2332_v48 = vshll.u32 %v2331_v33, 16  ;;  %v3043_v33 = vadd.s32 4294967168, %v5471_v38 }
 0xadf   : > { %v1703_v37 = vpop.xlane.xlu2 %1702 }
 0xae0   : > { %vm1704_vm4 = vcmp.eq.f32.partialorder %v1701_v4, %v1703_v37  ;;  %v1709_v51 = vcvt.f32.s32 %v1703_v37  ;;  %v1714_v4 = vadd.s32 %v3042_v60, %v5706_v23 }
 0xae1   : > { %v1705_v13 = vsel %vm1704_vm4, %v1700_v25, -inf  ;;  %v2126_v25 = vand.u32 65535, %v5487_v30  ;;  %vm1819_vm4 = vcmp.lt.s32.totalorder %v5471_v38, 128  ;;  %v3046_v38 = vadd.s32 4294967168, %v5479_v17 }
 0xae2   : > { %1809 = vmax.xlane.f32.xlu0 %v5484_v32  ;;  %1706 = vmax.xlane.f32.xlu1 %v1705_v13  ;;  %v1710_v43 = vshll.u32 %v1709_v51, 16  ;;  %v1603_v13 = vshll.u32 %v1602_v5, 16 }
 0xae7   : > { %v5491_v7 = vpop.xlane.xlu2 %2023 }
 0xae8   : > { %vm2025_vm13 = vcmp.eq.f32.partialorder %v2022_v3, %v5491_v7 }
 0xae9   : > { %v2026_v16 = vsel %vm2025_vm13, %v2021_v8, -inf  ;;  %vm1926_vm13 = vcmp.lt.s32.totalorder %v5318_v14, 128 }
 0xaea   : > { %2130 = vmax.xlane.f32.xlu0 %v5493_v11  ;;  %2027 = vmax.xlane.f32.xlu1 %v2026_v16 }
 0xaf2   : > { %1599 = vmax.xlane.f32.xlu0 %v1598_v19 }
 0xafa   : > { %1920 = vmax.xlane.f32.xlu0 %v1919_v27  ;;  %v2030_v27 = vcvt.f32.s32 %v5491_v7 }
 0xb02   : > { %2241 = vmax.xlane.f32.xlu0 %v2240_v29 }
 0xb4d   : > { %v2329_v34 = vpop.xlane.xlu0 %2328 }
 0xb4e   : > { %v2330_v0 = vcvt.f32.s32 %v2329_v34 }
 0xb50   : > { %v2333_v49 = vadd.s32 %v2332_v48, %v2330_v0  ;;  %v3044_v48 = vadd.s32 4294967168, %v5318_v14 }
 0xb52   : > { %v2334_v6 = vand.u32 65535, %v2333_v49  ;;  %v2336_v53 = vshra.s32 %v2333_v49, 16  ;;  %v2031_v49 = vshll.u32 %v2030_v27, 16 }
 0xb54   : > { %v5512_v57 = vsub.s32 2175, %v2334_v6  ;;  %v2337_v1 = vadd.s32 32768, %v2336_v53  ;;  %v3045_v6 = vadd.s32 4294967168, %v5465_v10 }
 0xb55   : > { %v1810_v54 = vpop.xlane.xlu0 %1809  ;;  %v1707_v63 = vpop.xlane.xlu1 %1706 }
 0xb56   : > { %v1708_v2 = vcvt.f32.s32 %v1707_v63  ;;  %vm2338_vm5 = vcmp.eq.s32.totalorder %v3871_v41, %v5512_v57  ;;  %v2359_v58 = vsel %vm2358_vm2, %v2337_v1, %v5462_v35  ;;  %vm1811_vm14 = vcmp.eq.f32.partialorder %v5484_v32, %v1810_v54 }
 0xb57   : > { %v2339_v22 = vsel %vm2338_vm5, %v5310_v55, 4294967295  ;;  %vm2361_vm6 = vcmp.ge.s32.totalorder %v2359_v58, 32768  ;;  %v3049_v3 = vadd.s32 4294934528, %v2359_v58  ;;  %v2363_v40 = vsub.s32 65535, %v2359_v58 }
 0xb58   : > { %v1711_v28 = vadd.s32 %v1710_v43, %v1708_v2  ;;  %v2341_v12 = vshra.s32 %v2339_v22, 16  ;;  %v1805_v55 = vand.u32 65535, %v5477_v46  ;;  %v2128_v46 = vcvt.s32.f32 %v2126_v25 }
 0xb59   : > { %v2364_v56 = vsel %vm2361_vm6, %v3049_v3, %v2363_v40  ;;  %v2340_v30 = vand.u32 65535, %v2339_v22  ;;  %v1816_v9 = vcvt.f32.s32 %v1810_v54  ;;  %v1821_v63 = vadd.s32 %v3043_v33, %v5706_v23 }
 0xb5a   : > { %v1715_v45 = vsel %vm1712_vm11, %v1711_v28, %v1714_v4  ;;  %v2343_v15 = vcvt.s32.f32 %v2341_v12  ;;  %v2365_v61 = vshll.u32 %v2364_v56, 16  ;;  %v1807_v35 = vcvt.s32.f32 %v1805_v55 }
 0xb5b   : > { %v2342_v19 = vcvt.s32.f32 %v2340_v30  ;;  %v1817_v51 = vshll.u32 %v1816_v9, 16  ;;  %v2244_v54 = vcvt.f32.s32 %v5507_v21  ;;  %v1928_v43 = vadd.s32 %v3044_v48, %v5706_v23 }
 0xb5c   : > { %2344 = vmax.xlane.f32.xlu2 %v2343_v15  ;;  %2367 = vst [vmem:[#allocation8] sm:$0xff] %v2365_v61  ;;  %v1812_v42 = vsel %vm1811_vm14, %v1807_v35, -inf  ;;  %v2035_v22 = vadd.s32 %v3045_v6, %v5706_v23  ;;  %vm5711_vm5 = vcmp.eq.s32.totalorder %v3871_v41, 4  ;;  %vm2140_vm11 = vcmp.lt.s32.totalorder %v5479_v17, 128 }
 0xb5d   : > { %v5524_v44 = vpop.xlane.xlu0 %2130  ;;  %v2028_v52 = vpop.xlane.xlu1 %2027  ;;  %v2245_v40 = vshll.u32 %v2244_v54, 16  ;;  %vm2247_vm6 = vcmp.lt.s32.totalorder %v5341_v18, 128  ;;  %vm5712_vm14 = vcmp.eq.s32.totalorder %v3871_v41, 5 }
 0xb5e   : > { %vm2132_vm10 = vcmp.eq.f32.partialorder %v5493_v11, %v5524_v44  ;;  %v1923_v11 = vcvt.f32.s32 %v5502_v20  ;;  %v2029_v29 = vcvt.f32.s32 %v2028_v52  ;;  %v2137_v2 = vcvt.f32.s32 %v5524_v44 }
 0xb5f   : > { %v2133_v16 = vsel %vm2132_vm10, %v2128_v46, -inf  ;;  %v2142_v44 = vadd.s32 %v3046_v38, %v5706_v23  ;;  %vm2354_vm10 = vcmp.lt.s32.totalorder %v5512_v57, 128 }
 0xb60   : > { %v1924_v34 = vshll.u32 %v1923_v11, 16  ;;  %v2032_v60 = vadd.s32 %v2031_v49, %v2029_v29  ;;  %v2138_v56 = vshll.u32 %v2137_v2, 16 }
 0xb62   : > { %v2036_v3 = vsel %vm2033_vm9, %v2032_v60, %v2035_v22 }
 0xb64   : > { %1813 = vmax.xlane.f32.xlu2 %v1812_v42 }
 0xb65   : > { %v1600_v37 = vpop.xlane.xlu0 %1599 }
 0xb66   : > { %v1601_v31 = vcvt.f32.s32 %v1600_v37 }
 0xb68   : > { %v1604_v8 = vadd.s32 %v1603_v13, %v1601_v31  ;;  %v3048_v13 = vadd.s32 4294967168, %v5512_v57 }
 0xb6a   : > { %v1608_v32 = vsel %vm1605_vm15, %v1604_v8, %v1607_v39  ;;  %v2356_v46 = vadd.s32 %v3048_v13, %v5706_v23 }
 0xb6b   : > { %v1611_v50 = vsel %vm5707_vm1, %v1608_v32, 0 }
 0xb6c   : > { %v1718_v47 = vsel %vm5708_vm8, %v1715_v45, %v1611_v50  ;;  %2134 = vmax.xlane.f32.xlu2 %v2133_v16  ;;  %v3047_v45 = vadd.s32 4294967168, %v5341_v18 }
 0xb6d   : > { %v1921_v26 = vpop.xlane.xlu0 %1920 }
 0xb6e   : > { %v1922_v36 = vcvt.f32.s32 %v1921_v26  ;;  %v2249_v35 = vadd.s32 %v3047_v45, %v5706_v23 }
 0xb70   : > { %v1925_v1 = vadd.s32 %v1924_v34, %v1922_v36 }
 0xb72   : > { %v1929_v4 = vsel %vm1926_vm13, %v1925_v1, %v1928_v43 }
 0xb75   : > { %v2242_v20 = vpop.xlane.xlu0 %2241 }
 0xb76   : > { %v2243_v28 = vcvt.f32.s32 %v2242_v20 }
 0xb78   : > { %v2246_v61 = vadd.s32 %v2245_v40, %v2243_v28 }
 0xb7a   : > { %v2250_v42 = vsel %vm2247_vm6, %v2246_v61, %v2249_v35 }
 0xbcf   : > { %v2345_v62 = vpop.xlane.xlu2 %2344 }
 0xbd0   : > { %vm2346_vm0 = vcmp.eq.f32.partialorder %v2343_v15, %v2345_v62  ;;  %v2351_v25 = vcvt.f32.s32 %v2345_v62 }
 0xbd1   : > { %v2347_v59 = vsel %vm2346_vm0, %v2342_v19, -inf }
 0xbd2   : > { %2348 = vmax.xlane.f32.xlu1 %v2347_v59  ;;  %v2352_v39 = vshll.u32 %v2351_v25, 16 }
 0xbd7   : > { %v1814_v0 = vpop.xlane.xlu2 %1813 }
 0xbd8   : > { %v1815_v53 = vcvt.f32.s32 %v1814_v0 }
 0xbda   : > { %v1818_v7 = vadd.s32 %v1817_v51, %v1815_v53 }
 0xbdc   : > { %v1822_v58 = vsel %vm1819_vm4, %v1818_v7, %v1821_v63 }
 0xbdd   : > { %v1825_v12 = vsel %vm5709_vm7, %v1822_v58, %v1718_v47 }
 0xbde   : > { %v1932_v21 = vsel %vm5710_vm3, %v1929_v4, %v1825_v12 }
 0xbdf   : > { %v2135_v15 = vpop.xlane.xlu2 %2134  ;;  %v2039_v14 = vsel %vm5711_vm5, %v2036_v3, %v1932_v21 }
 0xbe0   : > { %v2136_v10 = vcvt.f32.s32 %v2135_v15 }
 0xbe2   : > { %v2139_v55 = vadd.s32 %v2138_v56, %v2136_v10 }
 0xbe4   : > { %v2143_v5 = vsel %vm2140_vm11, %v2139_v55, %v2142_v44 }
 0xbe5   : > { %v2146_v24 = vsel %vm5712_vm14, %v2143_v5, %v2039_v14 }
 0xbe6   : > { %v2253_v37 = vsel %vm2251_vm12, %v2250_v42, %v2146_v24 }
 0xc45   : > { %v2349_v31 = vpop.xlane.xlu1 %2348 }
 0xc46   : > { %v2350_v8 = vcvt.f32.s32 %v2349_v31 }
 0xc48   : > { %v2353_v32 = vadd.s32 %v2352_v39, %v2350_v8 }
 0xc4a   : > { %v2357_v18 = vsel %vm2354_vm10, %v2353_v32, %v2356_v46 }
 0xc4b   : > { %v2360_v17 = vsel %vm2358_vm2, %v2357_v18, %v2253_v37 }
 0xc4c   : > { %2368 = vst [vmem:[#allocation9] sm:$0xff] %v2360_v17 }
 0xc4d PF: > { %p5575_p3 = scmp.eq.s32.totalorder %s2483_s18, 2  ;;  %s2379_s7 = sshll.u32 %s5617_s2, 4  ;;  %s2380_s7 = int_to_ptr.hbm [resolvable:$true] %s2379_s7 }
 0xc4e   : > { %s3462_s8 = smov [#allocation8]   ;;  %s3463_s10 = smov [#allocation9]  }
 0xc4f   : > { %s2377_s9 = sshll.u32 %s3462_s8, 4  ;;  %s2391_s11 = sshll.u32 %s3463_s10, 4  ;;  %s2378_s9 = int_to_ptr.vmem [resolvable:$true] %s2377_s9  ;;  %s2392_s11 = int_to_ptr.vmem [resolvable:$true] %s2391_s11 }
 0xc50   : > { %3194 = dma.vmem_to_hbm [thread:$0]  (%p5575_p3), %s2378_s9, 128, %s2380_s7, [#allocation5]  }
 0xc51   : > { %s2393_s21 = sshll.u32 %s5618_s3, 4  ;;  %s2394_s21 = int_to_ptr.hbm [resolvable:$true] %s2393_s21 }
 0xc52   : > { %3196 = dma.vmem_to_hbm [thread:$0]  (%p5575_p3), %s2392_s11, 128, %s2394_s21, [#allocation10]  }
 0xc53   : > { %3424 = dma.done.wait (%p5575_p3), [#allocation5], 128  }
 0xc54   : > { %3426 = vsyncadd (%p5575_p3), [#allocation5], 4294967168 }
 0xc55   : > { %3428 = dma.done.wait (%p5575_p3), [#allocation10], 128  }
 0xc56   : > { %3430 = vsyncadd (%p5575_p3), [#allocation10], 4294967168 }
 0xc57 PF: > { %s20_s17 = sadd.s32 1, %s3453_s17   ;;  %s5714_s12 = smov %s3437_s13 }
 0xc58   : > { %p17_p4 = scmp.ge.s32.totalorder %s20_s17, 5   ;;  %s5715_s13 = smov %s3441_s14 }
 0xc59   : > { %s5716_s14 = smov %s3567_s23  ;;  %s5717_s15 = smov %s3449_s16 }
 0xc5a   : > { %s5718_s16 = smov %s5720_s30  ;;  %19 = sbr.rel (!%p17_p4) target bundleno = 7 (0x7), region = 89 }
 0xc5f   :  { %2412 = vsyncpa [#allocation4], 1 }
 0xc60   :  { %2414 = vsyncpa [#allocation4 + $0x1], 1 }
 0xc61   :  { %2415 = vsyncpa [#allocation7], 1 }
 0xc62   :  { %2417 = vsyncpa [#allocation7 + $0x1], 1 }
 0xc63   :  { %2418 = vsyncpa [#allocation5], 1 }
 0xc64   :  { %2420 = vsyncpa [#allocation5 + $0x1], 1 }
 0xc65   :  { %2421 = vsyncpa [#allocation10], 1 }

</bundles_post_ra>
